<compile_context>
chip_gen: v7x
topology: tpu7x:2x2x1
jax: 0.10.0
libtpu: 0.0.40
codegen_flags: <defaults>
</compile_context>

<pallas_src>
import jax
import jax.numpy as jnp
from jax import lax
from jax.experimental import pallas as pl
from jax.experimental.pallas import tpu as pltpu

# ---------------------------------------------------------------------------
# Model hyper-parameters (small, consistent with the module's constructor).
# ---------------------------------------------------------------------------
INPUT_SIZE = 4
HIDDEN_SIZE = 32
OUTPUT_SIZE = 2
NUM_LAYERS = 2          # fused kernel below is written for exactly 2 layers
BATCH = 2
SEQ = 8

H = HIDDEN_SIZE
BP = 8                  # batch padded to one sublane tile
DPAD = 128              # layer-1 input features padded to one lane tile
GW = 4 * 128            # packed gate width: i | f | o | g groups, each 128-lane aligned
N_REG = OUTPUT_SIZE * INPUT_SIZE
N_CLS = INPUT_SIZE
OUT_PAD = 128           # lane-padded merged output width

_VMEM = pl.BlockSpec(memory_space=pltpu.MemorySpace.VMEM)

# (lane offset of group, PyTorch gate chunk index); PyTorch gate row order is i|f|g|o.
_GATE_GROUPS = ((0, 0), (128, 1), (256, 3), (384, 2))   # -> groups i, f, o, g


# ---------------------------------------------------------------------------
# Fused kernel: 2 x BiLSTM layer -> LayerNorm -> attention pooling -> two heads.
# ---------------------------------------------------------------------------
def _make_fused_kernel(T):
    f32 = jnp.float32
    bf16 = jnp.bfloat16

    def kernel(xcat_ref, wx1_ref, bx1_ref, whh1_ref,
               wx2f_ref, wx2b_ref, bx2_ref, whh2_ref,
               hv_ref, w1_ref, w2_ref, b2_ref, out_ref):
        # lane mask (hoisted once): lanes < H pick the forward half of h.
        lane_lt_h = lax.broadcasted_iota(jnp.int32, (BP, 2 * H), 1) < H

        def run_layer(gx_flat, whh):
            # gx_flat: (T*BP, GW) f32 hoisted input projections; row-group t feeds step t
            # with fwd gates of x[t] and bwd gates of x[T-1-t] already combined.
            h_cat = jnp.zeros((BP, 2 * H), f32)          # [h_fwd | h_bwd]
            c_cat = jnp.zeros((BP, 2 * H), f32)
            h_steps = []
            for t in range(T):                           # static unroll
                gates = gx_flat[t * BP:(t + 1) * BP, :] + jnp.dot(
                    h_cat.astype(bf16), whh, preferred_element_type=f32)
                i_g = jax.nn.sigmoid(gates[:, 0:2 * H])          # lanes 0:64   (i group)
                f_g = jax.nn.sigmoid(gates[:, 128:128 + 2 * H])  # lanes 128:192 (f group)
                o_g = jax.nn.sigmoid(gates[:, 256:256 + 2 * H])  # lanes 256:320 (o group)
                g_g = jnp.tanh(gates[:, 384:384 + 2 * H])        # lanes 384:448 (g group)
                c_cat = f_g * c_cat + i_g * g_g
                h_cat = o_g * jnp.tanh(c_cat)
                h_steps.append(h_cat)
            # y[t] = [h_fwd at step t | h_bwd at step T-1-t]: pure lane select, off-chain.
            return [jnp.where(lane_lt_h, h_steps[t], h_steps[T - 1 - t])
                    for t in range(T)]

        # ---- layer 1: one hoisted gate-projection matmul for both directions ----
        gx1 = jnp.dot(xcat_ref[...], wx1_ref[...],
                      preferred_element_type=f32) + bx1_ref[...]
        y1 = run_layer(gx1, whh1_ref[...])

        # ---- layer 2 ----
        # TODO(synk): inter-layer LSTM dropout is identity (eval mode).
        yf = jnp.concatenate(y1, axis=0).astype(bf16)         # (T*BP, 2H) time order
        yr = jnp.concatenate(y1[::-1], axis=0).astype(bf16)   # time-reversed
        gx2 = (jnp.dot(yf, wx2f_ref[...], preferred_element_type=f32)
               + jnp.dot(yr, wx2b_ref[...], preferred_element_type=f32)
               + bx2_ref[...])
        y2 = run_layer(gx2, whh2_ref[...])

        # ---- LayerNorm over the 2H feature axis (vectorized over all T*BP rows) ----
        ln_g = hv_ref[0:1, :]
        ln_b = hv_ref[1:2, :]
        attn_w = hv_ref[2:3, :]
        b1 = hv_ref[3:4, :]
        y3 = jnp.stack(y2, axis=0)                            # (T, BP, 2H)
        mu = jnp.mean(y3, axis=-1, keepdims=True)
        var = jnp.mean(jnp.square(y3 - mu), axis=-1, keepdims=True)
        xn = (y3 - mu) * lax.rsqrt(var + 1e-5) * ln_g + ln_b

        # ---- attention pooling: softmax over time, vectorized over the stacked value ----
        # (the Linear(2H,1) bias shifts every timestep equally and cancels in the softmax)
        scores = jnp.sum(xn * attn_w, axis=-1, keepdims=True)     # (T, BP, 1)
        m = jnp.max(scores, axis=0, keepdims=True)
        e = jnp.exp(scores - m)
        inv = pl.reciprocal(jnp.sum(e, axis=0, keepdims=True), approx=True)
        ctx = jnp.sum(xn * (e * inv), axis=0)                     # (BP, 2H)
        # TODO(synk): context dropout is identity (eval mode).

        # ---- heads: Linear (+ folded eval-mode BN) + ReLU, then block-diag Linear ----
        h_both = jnp.maximum(
            jnp.dot(ctx.astype(bf16), w1_ref[...], preferred_element_type=f32) + b1,
            0.0)                                                  # (BP, 2H): [reg | cls]
        out_both = jnp.dot(h_both.astype(bf16), w2_ref[...],
                           preferred_element_type=f32) + b2_ref[...]   # (BP, OUT_PAD)
        col = lax.broadcasted_iota(jnp.int32, out_both.shape, 1)
        out_ref[...] = jnp.where(col < N_REG, out_both, jax.nn.sigmoid(out_both))

    return kernel


# ---------------------------------------------------------------------------
# Wrapper: one pallas_call for the whole forward pass.
# ---------------------------------------------------------------------------
@jax.jit
def dual_head_bilstm_forward(x, params):
    B, T, d = x.shape
    xt = jnp.transpose(x, (1, 0, 2)).astype(jnp.float32)        # (T, B, d) time-major
    xt = jnp.pad(xt, ((0, 0), (0, BP - B), (0, DPAD - d)))      # (T, 8, 128)
    # Row t carries [x_t features | x_{T-1-t} features] so the kernel needs no time flip.
    xcat = jnp.concatenate([xt, xt[::-1]], axis=-1)             # (T, 8, 256)
    xcat = xcat.reshape(T * BP, 2 * DPAD).astype(jnp.bfloat16)

    out = pl.pallas_call(
        _make_fused_kernel(T),
        out_shape=jax.ShapeDtypeStruct((BP, OUT_PAD), jnp.float32),
        in_specs=[_VMEM] * 12,
        out_specs=_VMEM,
    )(xcat,
      params["wx1"], params["bx1"], params["whh1"],
      params["wx2f"], params["wx2b"], params["bx2"], params["whh2"],
      params["head_vecs"], params["w1_both"], params["w2_bd"], params["b2_both"])

    reg_out = out[:B, :N_REG]
    cls_out = out[:B, N_REG:N_REG + N_CLS]
    return reg_out, cls_out


# ---------------------------------------------------------------------------
# Parameter initialization (PyTorch-style uniform ranges) + packing.
# ---------------------------------------------------------------------------
def _uniform(key, shape, fan_in):
    k = 1.0 / jnp.sqrt(jnp.float32(fan_in))
    return jax.random.uniform(key, shape, jnp.float32, -k, k)


def _pack_gate_cols(w_t, direction):
    """Scatter (rows, 4H) transposed weights (PyTorch i|f|g|o column order) into the
    128-lane-aligned packed gate layout, at sub-offset direction*H within each group."""
    rows = w_t.shape[0]
    out = jnp.zeros((rows, GW), jnp.float32)
    for off, chunk in _GATE_GROUPS:
        out = out.at[:, off + direction * H: off + (direction + 1) * H].set(
            w_t[:, chunk * H:(chunk + 1) * H])
    return out


def _pack_gate_bias(bias_f, bias_b):
    b = jnp.zeros((1, GW), jnp.float32)
    for off, chunk in _GATE_GROUPS:
        b = b.at[0, off:off + H].set(bias_f[chunk * H:(chunk + 1) * H])
        b = b.at[0, off + H:off + 2 * H].set(bias_b[chunk * H:(chunk + 1) * H])
    return b


def init_params(key):
    D2 = 2 * H
    eps = 1e-5

    def lstm_dir(key, d_in):
        key, k1, k2, k3, k4 = jax.random.split(key, 5)
        return key, {
            "w_ih": _uniform(k1, (4 * H, d_in), H),
            "w_hh": _uniform(k2, (4 * H, H), H),
            "bias": _uniform(k3, (4 * H,), H) + _uniform(k4, (4 * H,), H),  # b_ih + b_hh
        }

    # ---- layer 1 (input size INPUT_SIZE) ----
    key, pf1 = lstm_dir(key, INPUT_SIZE)
    key, pb1 = lstm_dir(key, INPUT_SIZE)
    wx1 = jnp.zeros((2 * DPAD, GW), jnp.float32)     # rows 0:128 -> x_t, rows 128:256 -> x_{T-1-t}
    wx1 = wx1.at[:INPUT_SIZE, :].set(_pack_gate_cols(pf1["w_ih"].T, 0))
    wx1 = wx1.at[DPAD:DPAD + INPUT_SIZE, :].set(_pack_gate_cols(pb1["w_ih"].T, 1))
    bx1 = _pack_gate_bias(pf1["bias"], pb1["bias"])
    whh1 = jnp.concatenate([_pack_gate_cols(pf1["w_hh"].T, 0),      # rows 0:H  = h_fwd
                            _pack_gate_cols(pb1["w_hh"].T, 1)], 0)  # rows H:2H = h_bwd

    # ---- layer 2 (input size 2H) ----
    key, pf2 = lstm_dir(key, D2)
    key, pb2 = lstm_dir(key, D2)
    wx2f = _pack_gate_cols(pf2["w_ih"].T, 0)          # applied to y[t]
    wx2b = _pack_gate_cols(pb2["w_ih"].T, 1)          # applied to y[T-1-t]
    bx2 = _pack_gate_bias(pf2["bias"], pb2["bias"])
    whh2 = jnp.concatenate([_pack_gate_cols(pf2["w_hh"].T, 0),
                            _pack_gate_cols(pb2["w_hh"].T, 1)], 0)

    # ---- LayerNorm + attention ----
    ln_g = jnp.ones((D2,), jnp.float32)
    ln_b = jnp.zeros((D2,), jnp.float32)
    key, k1 = jax.random.split(key)
    attn_w = _uniform(k1, (D2,), D2)
    # The attention Linear(2H,1) bias is dropped: it cancels in the softmax over time.

    # ---- heads: Linear(2H,H) + BatchNorm1d(eval) + ReLU + Dropout + Linear ----
    def head_raw(key, out_dim):
        key, k1, k2, k3, k4 = jax.random.split(key, 5)
        return key, {
            "w1": _uniform(k1, (H, D2), D2), "b1": _uniform(k2, (H,), D2),
            "bn_g": jnp.ones((H,), jnp.float32), "bn_b": jnp.zeros((H,), jnp.float32),
            "bn_m": jnp.zeros((H,), jnp.float32), "bn_v": jnp.ones((H,), jnp.float32),
            "w2": _uniform(k3, (out_dim, H), H), "b2": _uniform(k4, (out_dim,), H),
        }

    key, reg = head_raw(key, N_REG)
    key, cls = head_raw(key, N_CLS)

    def fold_bn(p):   # fold eval-mode BatchNorm1d (running stats) into the first Linear
        scale = p["bn_g"] / jnp.sqrt(p["bn_v"] + eps)
        return p["w1"].T * scale[None, :], (p["b1"] - p["bn_m"]) * scale + p["bn_b"]

    w1r, b1r = fold_bn(reg)
    w1c, b1c = fold_bn(cls)
    w1_both = jnp.concatenate([w1r, w1c], axis=1)                 # (2H, 2H): [reg | cls]
    b1_both = jnp.concatenate([b1r, b1c], axis=0)                 # (2H,)

    w2_bd = jnp.zeros((D2, OUT_PAD), jnp.float32)                 # block-diag, lane-padded
    w2_bd = w2_bd.at[:H, :N_REG].set(reg["w2"].T)
    w2_bd = w2_bd.at[H:, N_REG:N_REG + N_CLS].set(cls["w2"].T)
    b2_both = jnp.zeros((1, OUT_PAD), jnp.float32)
    b2_both = b2_both.at[0, :N_REG].set(reg["b2"])
    b2_both = b2_both.at[0, N_REG:N_REG + N_CLS].set(cls["b2"])

    bf16 = jnp.bfloat16
    return {
        "wx1": wx1.astype(bf16), "bx1": bx1, "whh1": whh1.astype(bf16),
        "wx2f": wx2f.astype(bf16), "wx2b": wx2b.astype(bf16),
        "bx2": bx2, "whh2": whh2.astype(bf16),
        "head_vecs": jnp.stack([ln_g, ln_b, attn_w, b1_both], axis=0),   # (4, 2H) f32
        "w1_both": w1_both.astype(bf16),
        "w2_bd": w2_bd.astype(bf16),
        "b2_both": b2_both,
    }


if __name__ == "__main__":
    key = jax.random.PRNGKey(0)
    k_x, k_p = jax.random.split(key)
    x = jax.random.normal(k_x, (BATCH, SEQ, INPUT_SIZE), jnp.float32)
    params = init_params(k_p)

    reg_out, cls_out = dual_head_bilstm_forward(x, params)
    jax.block_until_ready((reg_out, cls_out))

    assert reg_out.shape == (BATCH, OUTPUT_SIZE * INPUT_SIZE)
    assert cls_out.shape == (BATCH, INPUT_SIZE)
    assert bool(jnp.all(jnp.isfinite(reg_out))) and bool(jnp.all(jnp.isfinite(cls_out)))
    assert bool(jnp.all(cls_out >= 0.0)) and bool(jnp.all(cls_out <= 1.0))
    print("KERNEL_OK")
</pallas_src>

<mosaic_0001>
module attributes {stable_mosaic.version = 11 : i64} {
  func.func @kernel(%arg0: memref<64x256xbf16, #tpu.memory_space<vmem>>, %arg1: memref<256x512xbf16, #tpu.memory_space<vmem>>, %arg2: memref<1x512xf32, #tpu.memory_space<vmem>>, %arg3: memref<64x512xbf16, #tpu.memory_space<vmem>>, %arg4: memref<64x512xbf16, #tpu.memory_space<vmem>>, %arg5: memref<64x512xbf16, #tpu.memory_space<vmem>>, %arg6: memref<1x512xf32, #tpu.memory_space<vmem>>, %arg7: memref<64x512xbf16, #tpu.memory_space<vmem>>, %arg8: memref<4x64xf32, #tpu.memory_space<vmem>>, %arg9: memref<64x64xbf16, #tpu.memory_space<vmem>>, %arg10: memref<64x128xbf16, #tpu.memory_space<vmem>>, %arg11: memref<1x128xf32, #tpu.memory_space<vmem>>, %arg12: memref<8x128xf32, #tpu.memory_space<vmem>>) attributes {dimension_semantics = [], scalar_prefetch = 0 : i64, scratch_operands = 0 : i64, tpu.core_type = #tpu.core_type<tc>} {
    %0 = tpu.iota {dimensions = array<i32: 1>} : vector<8x64xi32>
    %c32_i32 = arith.constant 32 : i32
    %1 = vector.broadcast %c32_i32 : i32 to vector<8x64xi32>
    %2 = arith.cmpi slt, %0, %1 : vector<8x64xi32>
    %c0 = arith.constant 0 : index
    %c0_0 = arith.constant 0 : index
    %3 = vector.load %arg0[%c0, %c0_0] : memref<64x256xbf16, #tpu.memory_space<vmem>>, vector<64x256xbf16>
    %c0_1 = arith.constant 0 : index
    %c0_2 = arith.constant 0 : index
    %4 = vector.load %arg1[%c0_1, %c0_2] : memref<256x512xbf16, #tpu.memory_space<vmem>>, vector<256x512xbf16>
    %cst = arith.constant dense<0.000000e+00> : vector<64x512xf32>
    %5 = tpu.matmul %3, %4, %cst {dimension_numbers = #tpu.dot_dimension_numbers<[1], [0], [0], [1], [0, 0, 1, 1], [], []>} : vector<64x256xbf16>, vector<256x512xbf16>, vector<64x512xf32> -> vector<64x512xf32>
    %c0_3 = arith.constant 0 : index
    %c0_4 = arith.constant 0 : index
    %6 = vector.load %arg2[%c0_3, %c0_4] : memref<1x512xf32, #tpu.memory_space<vmem>>, vector<1x512xf32>
    %7 = vector.broadcast %6 : vector<1x512xf32> to vector<64x512xf32>
    %8 = arith.addf %5, %7 : vector<64x512xf32>
    %c0_5 = arith.constant 0 : index
    %c0_6 = arith.constant 0 : index
    %9 = vector.load %arg3[%c0_5, %c0_6] : memref<64x512xbf16, #tpu.memory_space<vmem>>, vector<64x512xbf16>
    %cst_7 = arith.constant 0.000000e+00 : f32
    %10 = vector.broadcast %cst_7 : f32 to vector<8x64xf32>
    %cst_8 = arith.constant 0.000000e+00 : f32
    %11 = vector.broadcast %cst_8 : f32 to vector<8x64xf32>
    %12 = vector.extract_strided_slice %8 {offsets = [0, 0], sizes = [8, 512], strides = [1, 1]} : vector<64x512xf32> to vector<8x512xf32>
    %13 = arith.truncf %10 : vector<8x64xf32> to vector<8x64xbf16>
    %cst_9 = arith.constant dense<0.000000e+00> : vector<8x512xf32>
    %14 = tpu.matmul %13, %9, %cst_9 {dimension_numbers = #tpu.dot_dimension_numbers<[1], [0], [0], [1], [0, 0, 1, 1], [], []>} : vector<8x64xbf16>, vector<64x512xbf16>, vector<8x512xf32> -> vector<8x512xf32>
    %15 = arith.addf %12, %14 : vector<8x512xf32>
    %16 = vector.extract_strided_slice %15 {offsets = [0, 0], sizes = [8, 64], strides = [1, 1]} : vector<8x512xf32> to vector<8x64xf32>
    %17 = arith.negf %16 : vector<8x64xf32>
    %18 = math.exp %17 : vector<8x64xf32>
    %cst_10 = arith.constant 1.000000e+00 : f32
    %19 = vector.broadcast %cst_10 : f32 to vector<8x64xf32>
    %20 = arith.addf %19, %18 : vector<8x64xf32>
    %21 = arith.divf %19, %20 : vector<8x64xf32>
    %22 = vector.extract_strided_slice %15 {offsets = [0, 128], sizes = [8, 64], strides = [1, 1]} : vector<8x512xf32> to vector<8x64xf32>
    %23 = arith.negf %22 : vector<8x64xf32>
    %24 = math.exp %23 : vector<8x64xf32>
    %cst_11 = arith.constant 1.000000e+00 : f32
    %25 = vector.broadcast %cst_11 : f32 to vector<8x64xf32>
    %26 = arith.addf %25, %24 : vector<8x64xf32>
    %27 = arith.divf %25, %26 : vector<8x64xf32>
    %28 = vector.extract_strided_slice %15 {offsets = [0, 256], sizes = [8, 64], strides = [1, 1]} : vector<8x512xf32> to vector<8x64xf32>
    %29 = arith.negf %28 : vector<8x64xf32>
    %30 = math.exp %29 : vector<8x64xf32>
    %cst_12 = arith.constant 1.000000e+00 : f32
    %31 = vector.broadcast %cst_12 : f32 to vector<8x64xf32>
    %32 = arith.addf %31, %30 : vector<8x64xf32>
    %33 = arith.divf %31, %32 : vector<8x64xf32>
    %34 = vector.extract_strided_slice %15 {offsets = [0, 384], sizes = [8, 64], strides = [1, 1]} : vector<8x512xf32> to vector<8x64xf32>
    %35 = math.tanh %34 : vector<8x64xf32>
    %36 = arith.mulf %27, %11 : vector<8x64xf32>
    %37 = arith.mulf %21, %35 : vector<8x64xf32>
    %38 = arith.addf %36, %37 : vector<8x64xf32>
    %39 = math.tanh %38 : vector<8x64xf32>
    %40 = arith.mulf %33, %39 : vector<8x64xf32>
    %41 = vector.extract_strided_slice %8 {offsets = [8, 0], sizes = [8, 512], strides = [1, 1]} : vector<64x512xf32> to vector<8x512xf32>
    %42 = arith.truncf %40 : vector<8x64xf32> to vector<8x64xbf16>
    %cst_13 = arith.constant dense<0.000000e+00> : vector<8x512xf32>
    %43 = tpu.matmul %42, %9, %cst_13 {dimension_numbers = #tpu.dot_dimension_numbers<[1], [0], [0], [1], [0, 0, 1, 1], [], []>} : vector<8x64xbf16>, vector<64x512xbf16>, vector<8x512xf32> -> vector<8x512xf32>
    %44 = arith.addf %41, %43 : vector<8x512xf32>
    %45 = vector.extract_strided_slice %44 {offsets = [0, 0], sizes = [8, 64], strides = [1, 1]} : vector<8x512xf32> to vector<8x64xf32>
    %46 = arith.negf %45 : vector<8x64xf32>
    %47 = math.exp %46 : vector<8x64xf32>
    %cst_14 = arith.constant 1.000000e+00 : f32
    %48 = vector.broadcast %cst_14 : f32 to vector<8x64xf32>
    %49 = arith.addf %48, %47 : vector<8x64xf32>
    %50 = arith.divf %48, %49 : vector<8x64xf32>
    %51 = vector.extract_strided_slice %44 {offsets = [0, 128], sizes = [8, 64], strides = [1, 1]} : vector<8x512xf32> to vector<8x64xf32>
    %52 = arith.negf %51 : vector<8x64xf32>
    %53 = math.exp %52 : vector<8x64xf32>
    %cst_15 = arith.constant 1.000000e+00 : f32
    %54 = vector.broadcast %cst_15 : f32 to vector<8x64xf32>
    %55 = arith.addf %54, %53 : vector<8x64xf32>
    %56 = arith.divf %54, %55 : vector<8x64xf32>
    %57 = vector.extract_strided_slice %44 {offsets = [0, 256], sizes = [8, 64], strides = [1, 1]} : vector<8x512xf32> to vector<8x64xf32>
    %58 = arith.negf %57 : vector<8x64xf32>
    %59 = math.exp %58 : vector<8x64xf32>
    %cst_16 = arith.constant 1.000000e+00 : f32
    %60 = vector.broadcast %cst_16 : f32 to vector<8x64xf32>
    %61 = arith.addf %60, %59 : vector<8x64xf32>
    %62 = arith.divf %60, %61 : vector<8x64xf32>
    %63 = vector.extract_strided_slice %44 {offsets = [0, 384], sizes = [8, 64], strides = [1, 1]} : vector<8x512xf32> to vector<8x64xf32>
    %64 = math.tanh %63 : vector<8x64xf32>
    %65 = arith.mulf %56, %38 : vector<8x64xf32>
    %66 = arith.mulf %50, %64 : vector<8x64xf32>
    %67 = arith.addf %65, %66 : vector<8x64xf32>
    %68 = math.tanh %67 : vector<8x64xf32>
    %69 = arith.mulf %62, %68 : vector<8x64xf32>
    %70 = vector.extract_strided_slice %8 {offsets = [16, 0], sizes = [8, 512], strides = [1, 1]} : vector<64x512xf32> to vector<8x512xf32>
    %71 = arith.truncf %69 : vector<8x64xf32> to vector<8x64xbf16>
    %cst_17 = arith.constant dense<0.000000e+00> : vector<8x512xf32>
    %72 = tpu.matmul %71, %9, %cst_17 {dimension_numbers = #tpu.dot_dimension_numbers<[1], [0], [0], [1], [0, 0, 1, 1], [], []>} : vector<8x64xbf16>, vector<64x512xbf16>, vector<8x512xf32> -> vector<8x512xf32>
    %73 = arith.addf %70, %72 : vector<8x512xf32>
    %74 = vector.extract_strided_slice %73 {offsets = [0, 0], sizes = [8, 64], strides = [1, 1]} : vector<8x512xf32> to vector<8x64xf32>
    %75 = arith.negf %74 : vector<8x64xf32>
    %76 = math.exp %75 : vector<8x64xf32>
    %cst_18 = arith.constant 1.000000e+00 : f32
    %77 = vector.broadcast %cst_18 : f32 to vector<8x64xf32>
    %78 = arith.addf %77, %76 : vector<8x64xf32>
    %79 = arith.divf %77, %78 : vector<8x64xf32>
    %80 = vector.extract_strided_slice %73 {offsets = [0, 128], sizes = [8, 64], strides = [1, 1]} : vector<8x512xf32> to vector<8x64xf32>
    %81 = arith.negf %80 : vector<8x64xf32>
    %82 = math.exp %81 : vector<8x64xf32>
    %cst_19 = arith.constant 1.000000e+00 : f32
    %83 = vector.broadcast %cst_19 : f32 to vector<8x64xf32>
    %84 = arith.addf %83, %82 : vector<8x64xf32>
    %85 = arith.divf %83, %84 : vector<8x64xf32>
    %86 = vector.extract_strided_slice %73 {offsets = [0, 256], sizes = [8, 64], strides = [1, 1]} : vector<8x512xf32> to vector<8x64xf32>
    %87 = arith.negf %86 : vector<8x64xf32>
    %88 = math.exp %87 : vector<8x64xf32>
    %cst_20 = arith.constant 1.000000e+00 : f32
    %89 = vector.broadcast %cst_20 : f32 to vector<8x64xf32>
    %90 = arith.addf %89, %88 : vector<8x64xf32>
    %91 = arith.divf %89, %90 : vector<8x64xf32>
    %92 = vector.extract_strided_slice %73 {offsets = [0, 384], sizes = [8, 64], strides = [1, 1]} : vector<8x512xf32> to vector<8x64xf32>
    %93 = math.tanh %92 : vector<8x64xf32>
    %94 = arith.mulf %85, %67 : vector<8x64xf32>
    %95 = arith.mulf %79, %93 : vector<8x64xf32>
    %96 = arith.addf %94, %95 : vector<8x64xf32>
    %97 = math.tanh %96 : vector<8x64xf32>
    %98 = arith.mulf %91, %97 : vector<8x64xf32>
    %99 = vector.extract_strided_slice %8 {offsets = [24, 0], sizes = [8, 512], strides = [1, 1]} : vector<64x512xf32> to vector<8x512xf32>
    %100 = arith.truncf %98 : vector<8x64xf32> to vector<8x64xbf16>
    %cst_21 = arith.constant dense<0.000000e+00> : vector<8x512xf32>
    %101 = tpu.matmul %100, %9, %cst_21 {dimension_numbers = #tpu.dot_dimension_numbers<[1], [0], [0], [1], [0, 0, 1, 1], [], []>} : vector<8x64xbf16>, vector<64x512xbf16>, vector<8x512xf32> -> vector<8x512xf32>
    %102 = arith.addf %99, %101 : vector<8x512xf32>
    %103 = vector.extract_strided_slice %102 {offsets = [0, 0], sizes = [8, 64], strides = [1, 1]} : vector<8x512xf32> to vector<8x64xf32>
    %104 = arith.negf %103 : vector<8x64xf32>
    %105 = math.exp %104 : vector<8x64xf32>
    %cst_22 = arith.constant 1.000000e+00 : f32
    %106 = vector.broadcast %cst_22 : f32 to vector<8x64xf32>
    %107 = arith.addf %106, %105 : vector<8x64xf32>
    %108 = arith.divf %106, %107 : vector<8x64xf32>
    %109 = vector.extract_strided_slice %102 {offsets = [0, 128], sizes = [8, 64], strides = [1, 1]} : vector<8x512xf32> to vector<8x64xf32>
    %110 = arith.negf %109 : vector<8x64xf32>
    %111 = math.exp %110 : vector<8x64xf32>
    %cst_23 = arith.constant 1.000000e+00 : f32
    %112 = vector.broadcast %cst_23 : f32 to vector<8x64xf32>
    %113 = arith.addf %112, %111 : vector<8x64xf32>
    %114 = arith.divf %112, %113 : vector<8x64xf32>
    %115 = vector.extract_strided_slice %102 {offsets = [0, 256], sizes = [8, 64], strides = [1, 1]} : vector<8x512xf32> to vector<8x64xf32>
    %116 = arith.negf %115 : vector<8x64xf32>
    %117 = math.exp %116 : vector<8x64xf32>
    %cst_24 = arith.constant 1.000000e+00 : f32
    %118 = vector.broadcast %cst_24 : f32 to vector<8x64xf32>
    %119 = arith.addf %118, %117 : vector<8x64xf32>
    %120 = arith.divf %118, %119 : vector<8x64xf32>
    %121 = vector.extract_strided_slice %102 {offsets = [0, 384], sizes = [8, 64], strides = [1, 1]} : vector<8x512xf32> to vector<8x64xf32>
    %122 = math.tanh %121 : vector<8x64xf32>
    %123 = arith.mulf %114, %96 : vector<8x64xf32>
    %124 = arith.mulf %108, %122 : vector<8x64xf32>
    %125 = arith.addf %123, %124 : vector<8x64xf32>
    %126 = math.tanh %125 : vector<8x64xf32>
    %127 = arith.mulf %120, %126 : vector<8x64xf32>
    %128 = vector.extract_strided_slice %8 {offsets = [32, 0], sizes = [8, 512], strides = [1, 1]} : vector<64x512xf32> to vector<8x512xf32>
    %129 = arith.truncf %127 : vector<8x64xf32> to vector<8x64xbf16>
    %cst_25 = arith.constant dense<0.000000e+00> : vector<8x512xf32>
    %130 = tpu.matmul %129, %9, %cst_25 {dimension_numbers = #tpu.dot_dimension_numbers<[1], [0], [0], [1], [0, 0, 1, 1], [], []>} : vector<8x64xbf16>, vector<64x512xbf16>, vector<8x512xf32> -> vector<8x512xf32>
    %131 = arith.addf %128, %130 : vector<8x512xf32>
    %132 = vector.extract_strided_slice %131 {offsets = [0, 0], sizes = [8, 64], strides = [1, 1]} : vector<8x512xf32> to vector<8x64xf32>
    %133 = arith.negf %132 : vector<8x64xf32>
    %134 = math.exp %133 : vector<8x64xf32>
    %cst_26 = arith.constant 1.000000e+00 : f32
    %135 = vector.broadcast %cst_26 : f32 to vector<8x64xf32>
    %136 = arith.addf %135, %134 : vector<8x64xf32>
    %137 = arith.divf %135, %136 : vector<8x64xf32>
    %138 = vector.extract_strided_slice %131 {offsets = [0, 128], sizes = [8, 64], strides = [1, 1]} : vector<8x512xf32> to vector<8x64xf32>
    %139 = arith.negf %138 : vector<8x64xf32>
    %140 = math.exp %139 : vector<8x64xf32>
    %cst_27 = arith.constant 1.000000e+00 : f32
    %141 = vector.broadcast %cst_27 : f32 to vector<8x64xf32>
    %142 = arith.addf %141, %140 : vector<8x64xf32>
    %143 = arith.divf %141, %142 : vector<8x64xf32>
    %144 = vector.extract_strided_slice %131 {offsets = [0, 256], sizes = [8, 64], strides = [1, 1]} : vector<8x512xf32> to vector<8x64xf32>
    %145 = arith.negf %144 : vector<8x64xf32>
    %146 = math.exp %145 : vector<8x64xf32>
    %cst_28 = arith.constant 1.000000e+00 : f32
    %147 = vector.broadcast %cst_28 : f32 to vector<8x64xf32>
    %148 = arith.addf %147, %146 : vector<8x64xf32>
    %149 = arith.divf %147, %148 : vector<8x64xf32>
    %150 = vector.extract_strided_slice %131 {offsets = [0, 384], sizes = [8, 64], strides = [1, 1]} : vector<8x512xf32> to vector<8x64xf32>
    %151 = math.tanh %150 : vector<8x64xf32>
    %152 = arith.mulf %143, %125 : vector<8x64xf32>
    %153 = arith.mulf %137, %151 : vector<8x64xf32>
    %154 = arith.addf %152, %153 : vector<8x64xf32>
    %155 = math.tanh %154 : vector<8x64xf32>
    %156 = arith.mulf %149, %155 : vector<8x64xf32>
    %157 = vector.extract_strided_slice %8 {offsets = [40, 0], sizes = [8, 512], strides = [1, 1]} : vector<64x512xf32> to vector<8x512xf32>
    %158 = arith.truncf %156 : vector<8x64xf32> to vector<8x64xbf16>
    %cst_29 = arith.constant dense<0.000000e+00> : vector<8x512xf32>
    %159 = tpu.matmul %158, %9, %cst_29 {dimension_numbers = #tpu.dot_dimension_numbers<[1], [0], [0], [1], [0, 0, 1, 1], [], []>} : vector<8x64xbf16>, vector<64x512xbf16>, vector<8x512xf32> -> vector<8x512xf32>
    %160 = arith.addf %157, %159 : vector<8x512xf32>
    %161 = vector.extract_strided_slice %160 {offsets = [0, 0], sizes = [8, 64], strides = [1, 1]} : vector<8x512xf32> to vector<8x64xf32>
    %162 = arith.negf %161 : vector<8x64xf32>
    %163 = math.exp %162 : vector<8x64xf32>
    %cst_30 = arith.constant 1.000000e+00 : f32
    %164 = vector.broadcast %cst_30 : f32 to vector<8x64xf32>
    %165 = arith.addf %164, %163 : vector<8x64xf32>
    %166 = arith.divf %164, %165 : vector<8x64xf32>
    %167 = vector.extract_strided_slice %160 {offsets = [0, 128], sizes = [8, 64], strides = [1, 1]} : vector<8x512xf32> to vector<8x64xf32>
    %168 = arith.negf %167 : vector<8x64xf32>
    %169 = math.exp %168 : vector<8x64xf32>
    %cst_31 = arith.constant 1.000000e+00 : f32
    %170 = vector.broadcast %cst_31 : f32 to vector<8x64xf32>
    %171 = arith.addf %170, %169 : vector<8x64xf32>
    %172 = arith.divf %170, %171 : vector<8x64xf32>
    %173 = vector.extract_strided_slice %160 {offsets = [0, 256], sizes = [8, 64], strides = [1, 1]} : vector<8x512xf32> to vector<8x64xf32>
    %174 = arith.negf %173 : vector<8x64xf32>
    %175 = math.exp %174 : vector<8x64xf32>
    %cst_32 = arith.constant 1.000000e+00 : f32
    %176 = vector.broadcast %cst_32 : f32 to vector<8x64xf32>
    %177 = arith.addf %176, %175 : vector<8x64xf32>
    %178 = arith.divf %176, %177 : vector<8x64xf32>
    %179 = vector.extract_strided_slice %160 {offsets = [0, 384], sizes = [8, 64], strides = [1, 1]} : vector<8x512xf32> to vector<8x64xf32>
    %180 = math.tanh %179 : vector<8x64xf32>
    %181 = arith.mulf %172, %154 : vector<8x64xf32>
    %182 = arith.mulf %166, %180 : vector<8x64xf32>
    %183 = arith.addf %181, %182 : vector<8x64xf32>
    %184 = math.tanh %183 : vector<8x64xf32>
    %185 = arith.mulf %178, %184 : vector<8x64xf32>
    %186 = vector.extract_strided_slice %8 {offsets = [48, 0], sizes = [8, 512], strides = [1, 1]} : vector<64x512xf32> to vector<8x512xf32>
    %187 = arith.truncf %185 : vector<8x64xf32> to vector<8x64xbf16>
    %cst_33 = arith.constant dense<0.000000e+00> : vector<8x512xf32>
    %188 = tpu.matmul %187, %9, %cst_33 {dimension_numbers = #tpu.dot_dimension_numbers<[1], [0], [0], [1], [0, 0, 1, 1], [], []>} : vector<8x64xbf16>, vector<64x512xbf16>, vector<8x512xf32> -> vector<8x512xf32>
    %189 = arith.addf %186, %188 : vector<8x512xf32>
    %190 = vector.extract_strided_slice %189 {offsets = [0, 0], sizes = [8, 64], strides = [1, 1]} : vector<8x512xf32> to vector<8x64xf32>
    %191 = arith.negf %190 : vector<8x64xf32>
    %192 = math.exp %191 : vector<8x64xf32>
    %cst_34 = arith.constant 1.000000e+00 : f32
    %193 = vector.broadcast %cst_34 : f32 to vector<8x64xf32>
    %194 = arith.addf %193, %192 : vector<8x64xf32>
    %195 = arith.divf %193, %194 : vector<8x64xf32>
    %196 = vector.extract_strided_slice %189 {offsets = [0, 128], sizes = [8, 64], strides = [1, 1]} : vector<8x512xf32> to vector<8x64xf32>
    %197 = arith.negf %196 : vector<8x64xf32>
    %198 = math.exp %197 : vector<8x64xf32>
    %cst_35 = arith.constant 1.000000e+00 : f32
    %199 = vector.broadcast %cst_35 : f32 to vector<8x64xf32>
    %200 = arith.addf %199, %198 : vector<8x64xf32>
    %201 = arith.divf %199, %200 : vector<8x64xf32>
    %202 = vector.extract_strided_slice %189 {offsets = [0, 256], sizes = [8, 64], strides = [1, 1]} : vector<8x512xf32> to vector<8x64xf32>
    %203 = arith.negf %202 : vector<8x64xf32>
    %204 = math.exp %203 : vector<8x64xf32>
    %cst_36 = arith.constant 1.000000e+00 : f32
    %205 = vector.broadcast %cst_36 : f32 to vector<8x64xf32>
    %206 = arith.addf %205, %204 : vector<8x64xf32>
    %207 = arith.divf %205, %206 : vector<8x64xf32>
    %208 = vector.extract_strided_slice %189 {offsets = [0, 384], sizes = [8, 64], strides = [1, 1]} : vector<8x512xf32> to vector<8x64xf32>
    %209 = math.tanh %208 : vector<8x64xf32>
    %210 = arith.mulf %201, %183 : vector<8x64xf32>
    %211 = arith.mulf %195, %209 : vector<8x64xf32>
    %212 = arith.addf %210, %211 : vector<8x64xf32>
    %213 = math.tanh %212 : vector<8x64xf32>
    %214 = arith.mulf %207, %213 : vector<8x64xf32>
    %215 = vector.extract_strided_slice %8 {offsets = [56, 0], sizes = [8, 512], strides = [1, 1]} : vector<64x512xf32> to vector<8x512xf32>
    %216 = arith.truncf %214 : vector<8x64xf32> to vector<8x64xbf16>
    %cst_37 = arith.constant dense<0.000000e+00> : vector<8x512xf32>
    %217 = tpu.matmul %216, %9, %cst_37 {dimension_numbers = #tpu.dot_dimension_numbers<[1], [0], [0], [1], [0, 0, 1, 1], [], []>} : vector<8x64xbf16>, vector<64x512xbf16>, vector<8x512xf32> -> vector<8x512xf32>
    %218 = arith.addf %215, %217 : vector<8x512xf32>
    %219 = vector.extract_strided_slice %218 {offsets = [0, 0], sizes = [8, 64], strides = [1, 1]} : vector<8x512xf32> to vector<8x64xf32>
    %220 = arith.negf %219 : vector<8x64xf32>
    %221 = math.exp %220 : vector<8x64xf32>
    %cst_38 = arith.constant 1.000000e+00 : f32
    %222 = vector.broadcast %cst_38 : f32 to vector<8x64xf32>
    %223 = arith.addf %222, %221 : vector<8x64xf32>
    %224 = arith.divf %222, %223 : vector<8x64xf32>
    %225 = vector.extract_strided_slice %218 {offsets = [0, 128], sizes = [8, 64], strides = [1, 1]} : vector<8x512xf32> to vector<8x64xf32>
    %226 = arith.negf %225 : vector<8x64xf32>
    %227 = math.exp %226 : vector<8x64xf32>
    %cst_39 = arith.constant 1.000000e+00 : f32
    %228 = vector.broadcast %cst_39 : f32 to vector<8x64xf32>
    %229 = arith.addf %228, %227 : vector<8x64xf32>
    %230 = arith.divf %228, %229 : vector<8x64xf32>
    %231 = vector.extract_strided_slice %218 {offsets = [0, 256], sizes = [8, 64], strides = [1, 1]} : vector<8x512xf32> to vector<8x64xf32>
    %232 = arith.negf %231 : vector<8x64xf32>
    %233 = math.exp %232 : vector<8x64xf32>
    %cst_40 = arith.constant 1.000000e+00 : f32
    %234 = vector.broadcast %cst_40 : f32 to vector<8x64xf32>
    %235 = arith.addf %234, %233 : vector<8x64xf32>
    %236 = arith.divf %234, %235 : vector<8x64xf32>
    %237 = vector.extract_strided_slice %218 {offsets = [0, 384], sizes = [8, 64], strides = [1, 1]} : vector<8x512xf32> to vector<8x64xf32>
    %238 = math.tanh %237 : vector<8x64xf32>
    %239 = arith.mulf %230, %212 : vector<8x64xf32>
    %240 = arith.mulf %224, %238 : vector<8x64xf32>
    %241 = arith.addf %239, %240 : vector<8x64xf32>
    %242 = math.tanh %241 : vector<8x64xf32>
    %243 = arith.mulf %236, %242 : vector<8x64xf32>
    %244 = arith.select %2, %40, %243 : vector<8x64xi1>, vector<8x64xf32>
    %245 = arith.select %2, %69, %214 : vector<8x64xi1>, vector<8x64xf32>
    %246 = arith.select %2, %98, %185 : vector<8x64xi1>, vector<8x64xf32>
    %247 = arith.select %2, %127, %156 : vector<8x64xi1>, vector<8x64xf32>
    %248 = arith.select %2, %156, %127 : vector<8x64xi1>, vector<8x64xf32>
    %249 = arith.select %2, %185, %98 : vector<8x64xi1>, vector<8x64xf32>
    %250 = arith.select %2, %214, %69 : vector<8x64xi1>, vector<8x64xf32>
    %251 = arith.select %2, %243, %40 : vector<8x64xi1>, vector<8x64xf32>
    %252 = tpu.concatenate %244, %245, %246, %247, %248, %249, %250, %251 in 0 : vector<8x64xf32>, vector<8x64xf32>, vector<8x64xf32>, vector<8x64xf32>, vector<8x64xf32>, vector<8x64xf32>, vector<8x64xf32>, vector<8x64xf32> -> vector<64x64xf32>
    %253 = arith.truncf %252 : vector<64x64xf32> to vector<64x64xbf16>
    %254 = tpu.concatenate %251, %250, %249, %248, %247, %246, %245, %244 in 0 : vector<8x64xf32>, vector<8x64xf32>, vector<8x64xf32>, vector<8x64xf32>, vector<8x64xf32>, vector<8x64xf32>, vector<8x64xf32>, vector<8x64xf32> -> vector<64x64xf32>
    %255 = arith.truncf %254 : vector<64x64xf32> to vector<64x64xbf16>
    %c0_41 = arith.constant 0 : index
    %c0_42 = arith.constant 0 : index
    %256 = vector.load %arg4[%c0_41, %c0_42] : memref<64x512xbf16, #tpu.memory_space<vmem>>, vector<64x512xbf16>
    %cst_43 = arith.constant dense<0.000000e+00> : vector<64x512xf32>
    %257 = tpu.matmul %253, %256, %cst_43 {dimension_numbers = #tpu.dot_dimension_numbers<[1], [0], [0], [1], [0, 0, 1, 1], [], []>} : vector<64x64xbf16>, vector<64x512xbf16>, vector<64x512xf32> -> vector<64x512xf32>
    %c0_44 = arith.constant 0 : index
    %c0_45 = arith.constant 0 : index
    %258 = vector.load %arg5[%c0_44, %c0_45] : memref<64x512xbf16, #tpu.memory_space<vmem>>, vector<64x512xbf16>
    %cst_46 = arith.constant dense<0.000000e+00> : vector<64x512xf32>
    %259 = tpu.matmul %255, %258, %cst_46 {dimension_numbers = #tpu.dot_dimension_numbers<[1], [0], [0], [1], [0, 0, 1, 1], [], []>} : vector<64x64xbf16>, vector<64x512xbf16>, vector<64x512xf32> -> vector<64x512xf32>
    %260 = arith.addf %257, %259 : vector<64x512xf32>
    %c0_47 = arith.constant 0 : index
    %c0_48 = arith.constant 0 : index
    %261 = vector.load %arg6[%c0_47, %c0_48] : memref<1x512xf32, #tpu.memory_space<vmem>>, vector<1x512xf32>
    %262 = vector.broadcast %261 : vector<1x512xf32> to vector<64x512xf32>
    %263 = arith.addf %260, %262 : vector<64x512xf32>
    %c0_49 = arith.constant 0 : index
    %c0_50 = arith.constant 0 : index
    %264 = vector.load %arg7[%c0_49, %c0_50] : memref<64x512xbf16, #tpu.memory_space<vmem>>, vector<64x512xbf16>
    %cst_51 = arith.constant 0.000000e+00 : f32
    %265 = vector.broadcast %cst_51 : f32 to vector<8x64xf32>
    %cst_52 = arith.constant 0.000000e+00 : f32
    %266 = vector.broadcast %cst_52 : f32 to vector<8x64xf32>
    %267 = vector.extract_strided_slice %263 {offsets = [0, 0], sizes = [8, 512], strides = [1, 1]} : vector<64x512xf32> to vector<8x512xf32>
    %268 = arith.truncf %265 : vector<8x64xf32> to vector<8x64xbf16>
    %cst_53 = arith.constant dense<0.000000e+00> : vector<8x512xf32>
    %269 = tpu.matmul %268, %264, %cst_53 {dimension_numbers = #tpu.dot_dimension_numbers<[1], [0], [0], [1], [0, 0, 1, 1], [], []>} : vector<8x64xbf16>, vector<64x512xbf16>, vector<8x512xf32> -> vector<8x512xf32>
    %270 = arith.addf %267, %269 : vector<8x512xf32>
    %271 = vector.extract_strided_slice %270 {offsets = [0, 0], sizes = [8, 64], strides = [1, 1]} : vector<8x512xf32> to vector<8x64xf32>
    %272 = arith.negf %271 : vector<8x64xf32>
    %273 = math.exp %272 : vector<8x64xf32>
    %cst_54 = arith.constant 1.000000e+00 : f32
    %274 = vector.broadcast %cst_54 : f32 to vector<8x64xf32>
    %275 = arith.addf %274, %273 : vector<8x64xf32>
    %276 = arith.divf %274, %275 : vector<8x64xf32>
    %277 = vector.extract_strided_slice %270 {offsets = [0, 128], sizes = [8, 64], strides = [1, 1]} : vector<8x512xf32> to vector<8x64xf32>
    %278 = arith.negf %277 : vector<8x64xf32>
    %279 = math.exp %278 : vector<8x64xf32>
    %cst_55 = arith.constant 1.000000e+00 : f32
    %280 = vector.broadcast %cst_55 : f32 to vector<8x64xf32>
    %281 = arith.addf %280, %279 : vector<8x64xf32>
    %282 = arith.divf %280, %281 : vector<8x64xf32>
    %283 = vector.extract_strided_slice %270 {offsets = [0, 256], sizes = [8, 64], strides = [1, 1]} : vector<8x512xf32> to vector<8x64xf32>
    %284 = arith.negf %283 : vector<8x64xf32>
    %285 = math.exp %284 : vector<8x64xf32>
    %cst_56 = arith.constant 1.000000e+00 : f32
    %286 = vector.broadcast %cst_56 : f32 to vector<8x64xf32>
    %287 = arith.addf %286, %285 : vector<8x64xf32>
    %288 = arith.divf %286, %287 : vector<8x64xf32>
    %289 = vector.extract_strided_slice %270 {offsets = [0, 384], sizes = [8, 64], strides = [1, 1]} : vector<8x512xf32> to vector<8x64xf32>
    %290 = math.tanh %289 : vector<8x64xf32>
    %291 = arith.mulf %282, %266 : vector<8x64xf32>
    %292 = arith.mulf %276, %290 : vector<8x64xf32>
    %293 = arith.addf %291, %292 : vector<8x64xf32>
    %294 = math.tanh %293 : vector<8x64xf32>
    %295 = arith.mulf %288, %294 : vector<8x64xf32>
    %296 = vector.extract_strided_slice %263 {offsets = [8, 0], sizes = [8, 512], strides = [1, 1]} : vector<64x512xf32> to vector<8x512xf32>
    %297 = arith.truncf %295 : vector<8x64xf32> to vector<8x64xbf16>
    %cst_57 = arith.constant dense<0.000000e+00> : vector<8x512xf32>
    %298 = tpu.matmul %297, %264, %cst_57 {dimension_numbers = #tpu.dot_dimension_numbers<[1], [0], [0], [1], [0, 0, 1, 1], [], []>} : vector<8x64xbf16>, vector<64x512xbf16>, vector<8x512xf32> -> vector<8x512xf32>
    %299 = arith.addf %296, %298 : vector<8x512xf32>
    %300 = vector.extract_strided_slice %299 {offsets = [0, 0], sizes = [8, 64], strides = [1, 1]} : vector<8x512xf32> to vector<8x64xf32>
    %301 = arith.negf %300 : vector<8x64xf32>
    %302 = math.exp %301 : vector<8x64xf32>
    %cst_58 = arith.constant 1.000000e+00 : f32
    %303 = vector.broadcast %cst_58 : f32 to vector<8x64xf32>
    %304 = arith.addf %303, %302 : vector<8x64xf32>
    %305 = arith.divf %303, %304 : vector<8x64xf32>
    %306 = vector.extract_strided_slice %299 {offsets = [0, 128], sizes = [8, 64], strides = [1, 1]} : vector<8x512xf32> to vector<8x64xf32>
    %307 = arith.negf %306 : vector<8x64xf32>
    %308 = math.exp %307 : vector<8x64xf32>
    %cst_59 = arith.constant 1.000000e+00 : f32
    %309 = vector.broadcast %cst_59 : f32 to vector<8x64xf32>
    %310 = arith.addf %309, %308 : vector<8x64xf32>
    %311 = arith.divf %309, %310 : vector<8x64xf32>
    %312 = vector.extract_strided_slice %299 {offsets = [0, 256], sizes = [8, 64], strides = [1, 1]} : vector<8x512xf32> to vector<8x64xf32>
    %313 = arith.negf %312 : vector<8x64xf32>
    %314 = math.exp %313 : vector<8x64xf32>
    %cst_60 = arith.constant 1.000000e+00 : f32
    %315 = vector.broadcast %cst_60 : f32 to vector<8x64xf32>
    %316 = arith.addf %315, %314 : vector<8x64xf32>
    %317 = arith.divf %315, %316 : vector<8x64xf32>
    %318 = vector.extract_strided_slice %299 {offsets = [0, 384], sizes = [8, 64], strides = [1, 1]} : vector<8x512xf32> to vector<8x64xf32>
    %319 = math.tanh %318 : vector<8x64xf32>
    %320 = arith.mulf %311, %293 : vector<8x64xf32>
    %321 = arith.mulf %305, %319 : vector<8x64xf32>
    %322 = arith.addf %320, %321 : vector<8x64xf32>
    %323 = math.tanh %322 : vector<8x64xf32>
    %324 = arith.mulf %317, %323 : vector<8x64xf32>
    %325 = vector.extract_strided_slice %263 {offsets = [16, 0], sizes = [8, 512], strides = [1, 1]} : vector<64x512xf32> to vector<8x512xf32>
    %326 = arith.truncf %324 : vector<8x64xf32> to vector<8x64xbf16>
    %cst_61 = arith.constant dense<0.000000e+00> : vector<8x512xf32>
    %327 = tpu.matmul %326, %264, %cst_61 {dimension_numbers = #tpu.dot_dimension_numbers<[1], [0], [0], [1], [0, 0, 1, 1], [], []>} : vector<8x64xbf16>, vector<64x512xbf16>, vector<8x512xf32> -> vector<8x512xf32>
    %328 = arith.addf %325, %327 : vector<8x512xf32>
    %329 = vector.extract_strided_slice %328 {offsets = [0, 0], sizes = [8, 64], strides = [1, 1]} : vector<8x512xf32> to vector<8x64xf32>
    %330 = arith.negf %329 : vector<8x64xf32>
    %331 = math.exp %330 : vector<8x64xf32>
    %cst_62 = arith.constant 1.000000e+00 : f32
    %332 = vector.broadcast %cst_62 : f32 to vector<8x64xf32>
    %333 = arith.addf %332, %331 : vector<8x64xf32>
    %334 = arith.divf %332, %333 : vector<8x64xf32>
    %335 = vector.extract_strided_slice %328 {offsets = [0, 128], sizes = [8, 64], strides = [1, 1]} : vector<8x512xf32> to vector<8x64xf32>
    %336 = arith.negf %335 : vector<8x64xf32>
    %337 = math.exp %336 : vector<8x64xf32>
    %cst_63 = arith.constant 1.000000e+00 : f32
    %338 = vector.broadcast %cst_63 : f32 to vector<8x64xf32>
    %339 = arith.addf %338, %337 : vector<8x64xf32>
    %340 = arith.divf %338, %339 : vector<8x64xf32>
    %341 = vector.extract_strided_slice %328 {offsets = [0, 256], sizes = [8, 64], strides = [1, 1]} : vector<8x512xf32> to vector<8x64xf32>
    %342 = arith.negf %341 : vector<8x64xf32>
    %343 = math.exp %342 : vector<8x64xf32>
    %cst_64 = arith.constant 1.000000e+00 : f32
    %344 = vector.broadcast %cst_64 : f32 to vector<8x64xf32>
    %345 = arith.addf %344, %343 : vector<8x64xf32>
    %346 = arith.divf %344, %345 : vector<8x64xf32>
    %347 = vector.extract_strided_slice %328 {offsets = [0, 384], sizes = [8, 64], strides = [1, 1]} : vector<8x512xf32> to vector<8x64xf32>
    %348 = math.tanh %347 : vector<8x64xf32>
    %349 = arith.mulf %340, %322 : vector<8x64xf32>
    %350 = arith.mulf %334, %348 : vector<8x64xf32>
    %351 = arith.addf %349, %350 : vector<8x64xf32>
    %352 = math.tanh %351 : vector<8x64xf32>
    %353 = arith.mulf %346, %352 : vector<8x64xf32>
    %354 = vector.extract_strided_slice %263 {offsets = [24, 0], sizes = [8, 512], strides = [1, 1]} : vector<64x512xf32> to vector<8x512xf32>
    %355 = arith.truncf %353 : vector<8x64xf32> to vector<8x64xbf16>
    %cst_65 = arith.constant dense<0.000000e+00> : vector<8x512xf32>
    %356 = tpu.matmul %355, %264, %cst_65 {dimension_numbers = #tpu.dot_dimension_numbers<[1], [0], [0], [1], [0, 0, 1, 1], [], []>} : vector<8x64xbf16>, vector<64x512xbf16>, vector<8x512xf32> -> vector<8x512xf32>
    %357 = arith.addf %354, %356 : vector<8x512xf32>
    %358 = vector.extract_strided_slice %357 {offsets = [0, 0], sizes = [8, 64], strides = [1, 1]} : vector<8x512xf32> to vector<8x64xf32>
    %359 = arith.negf %358 : vector<8x64xf32>
    %360 = math.exp %359 : vector<8x64xf32>
    %cst_66 = arith.constant 1.000000e+00 : f32
    %361 = vector.broadcast %cst_66 : f32 to vector<8x64xf32>
    %362 = arith.addf %361, %360 : vector<8x64xf32>
    %363 = arith.divf %361, %362 : vector<8x64xf32>
    %364 = vector.extract_strided_slice %357 {offsets = [0, 128], sizes = [8, 64], strides = [1, 1]} : vector<8x512xf32> to vector<8x64xf32>
    %365 = arith.negf %364 : vector<8x64xf32>
    %366 = math.exp %365 : vector<8x64xf32>
    %cst_67 = arith.constant 1.000000e+00 : f32
    %367 = vector.broadcast %cst_67 : f32 to vector<8x64xf32>
    %368 = arith.addf %367, %366 : vector<8x64xf32>
    %369 = arith.divf %367, %368 : vector<8x64xf32>
    %370 = vector.extract_strided_slice %357 {offsets = [0, 256], sizes = [8, 64], strides = [1, 1]} : vector<8x512xf32> to vector<8x64xf32>
    %371 = arith.negf %370 : vector<8x64xf32>
    %372 = math.exp %371 : vector<8x64xf32>
    %cst_68 = arith.constant 1.000000e+00 : f32
    %373 = vector.broadcast %cst_68 : f32 to vector<8x64xf32>
    %374 = arith.addf %373, %372 : vector<8x64xf32>
    %375 = arith.divf %373, %374 : vector<8x64xf32>
    %376 = vector.extract_strided_slice %357 {offsets = [0, 384], sizes = [8, 64], strides = [1, 1]} : vector<8x512xf32> to vector<8x64xf32>
    %377 = math.tanh %376 : vector<8x64xf32>
    %378 = arith.mulf %369, %351 : vector<8x64xf32>
    %379 = arith.mulf %363, %377 : vector<8x64xf32>
    %380 = arith.addf %378, %379 : vector<8x64xf32>
    %381 = math.tanh %380 : vector<8x64xf32>
    %382 = arith.mulf %375, %381 : vector<8x64xf32>
    %383 = vector.extract_strided_slice %263 {offsets = [32, 0], sizes = [8, 512], strides = [1, 1]} : vector<64x512xf32> to vector<8x512xf32>
    %384 = arith.truncf %382 : vector<8x64xf32> to vector<8x64xbf16>
    %cst_69 = arith.constant dense<0.000000e+00> : vector<8x512xf32>
    %385 = tpu.matmul %384, %264, %cst_69 {dimension_numbers = #tpu.dot_dimension_numbers<[1], [0], [0], [1], [0, 0, 1, 1], [], []>} : vector<8x64xbf16>, vector<64x512xbf16>, vector<8x512xf32> -> vector<8x512xf32>
    %386 = arith.addf %383, %385 : vector<8x512xf32>
    %387 = vector.extract_strided_slice %386 {offsets = [0, 0], sizes = [8, 64], strides = [1, 1]} : vector<8x512xf32> to vector<8x64xf32>
    %388 = arith.negf %387 : vector<8x64xf32>
    %389 = math.exp %388 : vector<8x64xf32>
    %cst_70 = arith.constant 1.000000e+00 : f32
    %390 = vector.broadcast %cst_70 : f32 to vector<8x64xf32>
    %391 = arith.addf %390, %389 : vector<8x64xf32>
    %392 = arith.divf %390, %391 : vector<8x64xf32>
    %393 = vector.extract_strided_slice %386 {offsets = [0, 128], sizes = [8, 64], strides = [1, 1]} : vector<8x512xf32> to vector<8x64xf32>
    %394 = arith.negf %393 : vector<8x64xf32>
    %395 = math.exp %394 : vector<8x64xf32>
    %cst_71 = arith.constant 1.000000e+00 : f32
    %396 = vector.broadcast %cst_71 : f32 to vector<8x64xf32>
    %397 = arith.addf %396, %395 : vector<8x64xf32>
    %398 = arith.divf %396, %397 : vector<8x64xf32>
    %399 = vector.extract_strided_slice %386 {offsets = [0, 256], sizes = [8, 64], strides = [1, 1]} : vector<8x512xf32> to vector<8x64xf32>
    %400 = arith.negf %399 : vector<8x64xf32>
    %401 = math.exp %400 : vector<8x64xf32>
    %cst_72 = arith.constant 1.000000e+00 : f32
    %402 = vector.broadcast %cst_72 : f32 to vector<8x64xf32>
    %403 = arith.addf %402, %401 : vector<8x64xf32>
    %404 = arith.divf %402, %403 : vector<8x64xf32>
    %405 = vector.extract_strided_slice %386 {offsets = [0, 384], sizes = [8, 64], strides = [1, 1]} : vector<8x512xf32> to vector<8x64xf32>
    %406 = math.tanh %405 : vector<8x64xf32>
    %407 = arith.mulf %398, %380 : vector<8x64xf32>
    %408 = arith.mulf %392, %406 : vector<8x64xf32>
    %409 = arith.addf %407, %408 : vector<8x64xf32>
    %410 = math.tanh %409 : vector<8x64xf32>
    %411 = arith.mulf %404, %410 : vector<8x64xf32>
    %412 = vector.extract_strided_slice %263 {offsets = [40, 0], sizes = [8, 512], strides = [1, 1]} : vector<64x512xf32> to vector<8x512xf32>
    %413 = arith.truncf %411 : vector<8x64xf32> to vector<8x64xbf16>
    %cst_73 = arith.constant dense<0.000000e+00> : vector<8x512xf32>
    %414 = tpu.matmul %413, %264, %cst_73 {dimension_numbers = #tpu.dot_dimension_numbers<[1], [0], [0], [1], [0, 0, 1, 1], [], []>} : vector<8x64xbf16>, vector<64x512xbf16>, vector<8x512xf32> -> vector<8x512xf32>
    %415 = arith.addf %412, %414 : vector<8x512xf32>
    %416 = vector.extract_strided_slice %415 {offsets = [0, 0], sizes = [8, 64], strides = [1, 1]} : vector<8x512xf32> to vector<8x64xf32>
    %417 = arith.negf %416 : vector<8x64xf32>
    %418 = math.exp %417 : vector<8x64xf32>
    %cst_74 = arith.constant 1.000000e+00 : f32
    %419 = vector.broadcast %cst_74 : f32 to vector<8x64xf32>
    %420 = arith.addf %419, %418 : vector<8x64xf32>
    %421 = arith.divf %419, %420 : vector<8x64xf32>
    %422 = vector.extract_strided_slice %415 {offsets = [0, 128], sizes = [8, 64], strides = [1, 1]} : vector<8x512xf32> to vector<8x64xf32>
    %423 = arith.negf %422 : vector<8x64xf32>
    %424 = math.exp %423 : vector<8x64xf32>
    %cst_75 = arith.constant 1.000000e+00 : f32
    %425 = vector.broadcast %cst_75 : f32 to vector<8x64xf32>
    %426 = arith.addf %425, %424 : vector<8x64xf32>
    %427 = arith.divf %425, %426 : vector<8x64xf32>
    %428 = vector.extract_strided_slice %415 {offsets = [0, 256], sizes = [8, 64], strides = [1, 1]} : vector<8x512xf32> to vector<8x64xf32>
    %429 = arith.negf %428 : vector<8x64xf32>
    %430 = math.exp %429 : vector<8x64xf32>
    %cst_76 = arith.constant 1.000000e+00 : f32
    %431 = vector.broadcast %cst_76 : f32 to vector<8x64xf32>
    %432 = arith.addf %431, %430 : vector<8x64xf32>
    %433 = arith.divf %431, %432 : vector<8x64xf32>
    %434 = vector.extract_strided_slice %415 {offsets = [0, 384], sizes = [8, 64], strides = [1, 1]} : vector<8x512xf32> to vector<8x64xf32>
    %435 = math.tanh %434 : vector<8x64xf32>
    %436 = arith.mulf %427, %409 : vector<8x64xf32>
    %437 = arith.mulf %421, %435 : vector<8x64xf32>
    %438 = arith.addf %436, %437 : vector<8x64xf32>
    %439 = math.tanh %438 : vector<8x64xf32>
    %440 = arith.mulf %433, %439 : vector<8x64xf32>
    %441 = vector.extract_strided_slice %263 {offsets = [48, 0], sizes = [8, 512], strides = [1, 1]} : vector<64x512xf32> to vector<8x512xf32>
    %442 = arith.truncf %440 : vector<8x64xf32> to vector<8x64xbf16>
    %cst_77 = arith.constant dense<0.000000e+00> : vector<8x512xf32>
    %443 = tpu.matmul %442, %264, %cst_77 {dimension_numbers = #tpu.dot_dimension_numbers<[1], [0], [0], [1], [0, 0, 1, 1], [], []>} : vector<8x64xbf16>, vector<64x512xbf16>, vector<8x512xf32> -> vector<8x512xf32>
    %444 = arith.addf %441, %443 : vector<8x512xf32>
    %445 = vector.extract_strided_slice %444 {offsets = [0, 0], sizes = [8, 64], strides = [1, 1]} : vector<8x512xf32> to vector<8x64xf32>
    %446 = arith.negf %445 : vector<8x64xf32>
    %447 = math.exp %446 : vector<8x64xf32>
    %cst_78 = arith.constant 1.000000e+00 : f32
    %448 = vector.broadcast %cst_78 : f32 to vector<8x64xf32>
    %449 = arith.addf %448, %447 : vector<8x64xf32>
    %450 = arith.divf %448, %449 : vector<8x64xf32>
    %451 = vector.extract_strided_slice %444 {offsets = [0, 128], sizes = [8, 64], strides = [1, 1]} : vector<8x512xf32> to vector<8x64xf32>
    %452 = arith.negf %451 : vector<8x64xf32>
    %453 = math.exp %452 : vector<8x64xf32>
    %cst_79 = arith.constant 1.000000e+00 : f32
    %454 = vector.broadcast %cst_79 : f32 to vector<8x64xf32>
    %455 = arith.addf %454, %453 : vector<8x64xf32>
    %456 = arith.divf %454, %455 : vector<8x64xf32>
    %457 = vector.extract_strided_slice %444 {offsets = [0, 256], sizes = [8, 64], strides = [1, 1]} : vector<8x512xf32> to vector<8x64xf32>
    %458 = arith.negf %457 : vector<8x64xf32>
    %459 = math.exp %458 : vector<8x64xf32>
    %cst_80 = arith.constant 1.000000e+00 : f32
    %460 = vector.broadcast %cst_80 : f32 to vector<8x64xf32>
    %461 = arith.addf %460, %459 : vector<8x64xf32>
    %462 = arith.divf %460, %461 : vector<8x64xf32>
    %463 = vector.extract_strided_slice %444 {offsets = [0, 384], sizes = [8, 64], strides = [1, 1]} : vector<8x512xf32> to vector<8x64xf32>
    %464 = math.tanh %463 : vector<8x64xf32>
    %465 = arith.mulf %456, %438 : vector<8x64xf32>
    %466 = arith.mulf %450, %464 : vector<8x64xf32>
    %467 = arith.addf %465, %466 : vector<8x64xf32>
    %468 = math.tanh %467 : vector<8x64xf32>
    %469 = arith.mulf %462, %468 : vector<8x64xf32>
    %470 = vector.extract_strided_slice %263 {offsets = [56, 0], sizes = [8, 512], strides = [1, 1]} : vector<64x512xf32> to vector<8x512xf32>
    %471 = arith.truncf %469 : vector<8x64xf32> to vector<8x64xbf16>
    %cst_81 = arith.constant dense<0.000000e+00> : vector<8x512xf32>
    %472 = tpu.matmul %471, %264, %cst_81 {dimension_numbers = #tpu.dot_dimension_numbers<[1], [0], [0], [1], [0, 0, 1, 1], [], []>} : vector<8x64xbf16>, vector<64x512xbf16>, vector<8x512xf32> -> vector<8x512xf32>
    %473 = arith.addf %470, %472 : vector<8x512xf32>
    %474 = vector.extract_strided_slice %473 {offsets = [0, 0], sizes = [8, 64], strides = [1, 1]} : vector<8x512xf32> to vector<8x64xf32>
    %475 = arith.negf %474 : vector<8x64xf32>
    %476 = math.exp %475 : vector<8x64xf32>
    %cst_82 = arith.constant 1.000000e+00 : f32
    %477 = vector.broadcast %cst_82 : f32 to vector<8x64xf32>
    %478 = arith.addf %477, %476 : vector<8x64xf32>
    %479 = arith.divf %477, %478 : vector<8x64xf32>
    %480 = vector.extract_strided_slice %473 {offsets = [0, 128], sizes = [8, 64], strides = [1, 1]} : vector<8x512xf32> to vector<8x64xf32>
    %481 = arith.negf %480 : vector<8x64xf32>
    %482 = math.exp %481 : vector<8x64xf32>
    %cst_83 = arith.constant 1.000000e+00 : f32
    %483 = vector.broadcast %cst_83 : f32 to vector<8x64xf32>
    %484 = arith.addf %483, %482 : vector<8x64xf32>
    %485 = arith.divf %483, %484 : vector<8x64xf32>
    %486 = vector.extract_strided_slice %473 {offsets = [0, 256], sizes = [8, 64], strides = [1, 1]} : vector<8x512xf32> to vector<8x64xf32>
    %487 = arith.negf %486 : vector<8x64xf32>
    %488 = math.exp %487 : vector<8x64xf32>
    %cst_84 = arith.constant 1.000000e+00 : f32
    %489 = vector.broadcast %cst_84 : f32 to vector<8x64xf32>
    %490 = arith.addf %489, %488 : vector<8x64xf32>
    %491 = arith.divf %489, %490 : vector<8x64xf32>
    %492 = vector.extract_strided_slice %473 {offsets = [0, 384], sizes = [8, 64], strides = [1, 1]} : vector<8x512xf32> to vector<8x64xf32>
    %493 = math.tanh %492 : vector<8x64xf32>
    %494 = arith.mulf %485, %467 : vector<8x64xf32>
    %495 = arith.mulf %479, %493 : vector<8x64xf32>
    %496 = arith.addf %494, %495 : vector<8x64xf32>
    %497 = math.tanh %496 : vector<8x64xf32>
    %498 = arith.mulf %491, %497 : vector<8x64xf32>
    %499 = arith.select %2, %295, %498 : vector<8x64xi1>, vector<8x64xf32>
    %500 = arith.select %2, %324, %469 : vector<8x64xi1>, vector<8x64xf32>
    %501 = arith.select %2, %353, %440 : vector<8x64xi1>, vector<8x64xf32>
    %502 = arith.select %2, %382, %411 : vector<8x64xi1>, vector<8x64xf32>
    %503 = arith.select %2, %411, %382 : vector<8x64xi1>, vector<8x64xf32>
    %504 = arith.select %2, %440, %353 : vector<8x64xi1>, vector<8x64xf32>
    %505 = arith.select %2, %469, %324 : vector<8x64xi1>, vector<8x64xf32>
    %506 = arith.select %2, %498, %295 : vector<8x64xi1>, vector<8x64xf32>
    %c0_85 = arith.constant 0 : index
    %c0_86 = arith.constant 0 : index
    %507 = vector.load %arg8[%c0_85, %c0_86] : memref<4x64xf32, #tpu.memory_space<vmem>>, vector<1x64xf32>
    %c1 = arith.constant 1 : index
    %c0_87 = arith.constant 0 : index
    %508 = vector.load %arg8[%c1, %c0_87] : memref<4x64xf32, #tpu.memory_space<vmem>>, vector<1x64xf32>
    %c2 = arith.constant 2 : index
    %c0_88 = arith.constant 0 : index
    %509 = vector.load %arg8[%c2, %c0_88] : memref<4x64xf32, #tpu.memory_space<vmem>>, vector<1x64xf32>
    %c3 = arith.constant 3 : index
    %c0_89 = arith.constant 0 : index
    %510 = vector.load %arg8[%c3, %c0_89] : memref<4x64xf32, #tpu.memory_space<vmem>>, vector<1x64xf32>
    %511 = vector.shape_cast %499 : vector<8x64xf32> to vector<1x8x64xf32>
    %512 = vector.shape_cast %500 : vector<8x64xf32> to vector<1x8x64xf32>
    %513 = vector.shape_cast %501 : vector<8x64xf32> to vector<1x8x64xf32>
    %514 = vector.shape_cast %502 : vector<8x64xf32> to vector<1x8x64xf32>
    %515 = vector.shape_cast %503 : vector<8x64xf32> to vector<1x8x64xf32>
    %516 = vector.shape_cast %504 : vector<8x64xf32> to vector<1x8x64xf32>
    %517 = vector.shape_cast %505 : vector<8x64xf32> to vector<1x8x64xf32>
    %518 = vector.shape_cast %506 : vector<8x64xf32> to vector<1x8x64xf32>
    %519 = tpu.concatenate %511, %512, %513, %514, %515, %516, %517, %518 in 0 : vector<1x8x64xf32>, vector<1x8x64xf32>, vector<1x8x64xf32>, vector<1x8x64xf32>, vector<1x8x64xf32>, vector<1x8x64xf32>, vector<1x8x64xf32>, vector<1x8x64xf32> -> vector<8x8x64xf32>
    %cst_90 = arith.constant dense<0.000000e+00> : vector<8x8xf32>
    %520 = vector.multi_reduction <add>, %519, %cst_90 [2] : vector<8x8x64xf32> to vector<8x8xf32>
    %521 = vector.shape_cast %520 : vector<8x8xf32> to vector<8x8x1xf32>
    %cst_91 = arith.constant 6.400000e+01 : f32
    %522 = vector.broadcast %cst_91 : f32 to vector<8x8x1xf32>
    %523 = arith.divf %521, %522 : vector<8x8x1xf32>
    %524 = vector.broadcast %523 : vector<8x8x1xf32> to vector<8x8x64xf32>
    %525 = arith.subf %519, %524 : vector<8x8x64xf32>
    %526 = arith.mulf %525, %525 : vector<8x8x64xf32>
    %cst_92 = arith.constant dense<0.000000e+00> : vector<8x8xf32>
    %527 = vector.multi_reduction <add>, %526, %cst_92 [2] : vector<8x8x64xf32> to vector<8x8xf32>
    %528 = vector.shape_cast %527 : vector<8x8xf32> to vector<8x8x1xf32>
    %cst_93 = arith.constant 6.400000e+01 : f32
    %529 = vector.broadcast %cst_93 : f32 to vector<8x8x1xf32>
    %530 = arith.divf %528, %529 : vector<8x8x1xf32>
    %531 = vector.broadcast %523 : vector<8x8x1xf32> to vector<8x8x64xf32>
    %532 = arith.subf %519, %531 : vector<8x8x64xf32>
    %cst_94 = arith.constant 9.99999974E-6 : f32
    %533 = vector.broadcast %cst_94 : f32 to vector<8x8x1xf32>
    %534 = arith.addf %530, %533 : vector<8x8x1xf32>
    %535 = math.rsqrt %534 : vector<8x8x1xf32>
    %536 = vector.broadcast %535 : vector<8x8x1xf32> to vector<8x8x64xf32>
    %537 = arith.mulf %532, %536 : vector<8x8x64xf32>
    %538 = vector.shape_cast %507 : vector<1x64xf32> to vector<1x1x64xf32>
    %539 = vector.broadcast %538 : vector<1x1x64xf32> to vector<8x8x64xf32>
    %540 = arith.mulf %537, %539 : vector<8x8x64xf32>
    %541 = vector.shape_cast %508 : vector<1x64xf32> to vector<1x1x64xf32>
    %542 = vector.broadcast %541 : vector<1x1x64xf32> to vector<8x8x64xf32>
    %543 = arith.addf %540, %542 : vector<8x8x64xf32>
    %544 = vector.shape_cast %509 : vector<1x64xf32> to vector<1x1x64xf32>
    %545 = vector.broadcast %544 : vector<1x1x64xf32> to vector<8x8x64xf32>
    %546 = arith.mulf %543, %545 : vector<8x8x64xf32>
    %cst_95 = arith.constant dense<0.000000e+00> : vector<8x8xf32>
    %547 = vector.multi_reduction <add>, %546, %cst_95 [2] : vector<8x8x64xf32> to vector<8x8xf32>
    %548 = vector.shape_cast %547 : vector<8x8xf32> to vector<8x8x1xf32>
    %cst_96 = arith.constant dense<0xFF800000> : vector<8x1xf32>
    %549 = vector.multi_reduction <maximumf>, %548, %cst_96 [0] : vector<8x8x1xf32> to vector<8x1xf32>
    %550 = vector.shape_cast %549 : vector<8x1xf32> to vector<1x8x1xf32>
    %551 = vector.broadcast %550 : vector<1x8x1xf32> to vector<8x8x1xf32>
    %552 = arith.subf %548, %551 : vector<8x8x1xf32>
    %553 = math.exp %552 : vector<8x8x1xf32>
    %cst_97 = arith.constant dense<0.000000e+00> : vector<8x1xf32>
    %554 = vector.multi_reduction <add>, %553, %cst_97 [0] : vector<8x8x1xf32> to vector<8x1xf32>
    %555 = vector.shape_cast %554 : vector<8x1xf32> to vector<1x8x1xf32>
    %556 = tpu.reciprocal %555 {approx = true} : vector<1x8x1xf32> -> vector<1x8x1xf32>
    %557 = vector.broadcast %556 : vector<1x8x1xf32> to vector<8x8x1xf32>
    %558 = arith.mulf %553, %557 : vector<8x8x1xf32>
    %559 = vector.broadcast %558 : vector<8x8x1xf32> to vector<8x8x64xf32>
    %560 = arith.mulf %543, %559 : vector<8x8x64xf32>
    %cst_98 = arith.constant dense<0.000000e+00> : vector<8x64xf32>
    %561 = vector.multi_reduction <add>, %560, %cst_98 [0] : vector<8x8x64xf32> to vector<8x64xf32>
    %562 = arith.truncf %561 : vector<8x64xf32> to vector<8x64xbf16>
    %c0_99 = arith.constant 0 : index
    %c0_100 = arith.constant 0 : index
    %563 = vector.load %arg9[%c0_99, %c0_100] : memref<64x64xbf16, #tpu.memory_space<vmem>>, vector<64x64xbf16>
    %cst_101 = arith.constant dense<0.000000e+00> : vector<8x64xf32>
    %564 = tpu.matmul %562, %563, %cst_101 {dimension_numbers = #tpu.dot_dimension_numbers<[1], [0], [0], [1], [0, 0, 1, 1], [], []>} : vector<8x64xbf16>, vector<64x64xbf16>, vector<8x64xf32> -> vector<8x64xf32>
    %565 = vector.broadcast %510 : vector<1x64xf32> to vector<8x64xf32>
    %566 = arith.addf %564, %565 : vector<8x64xf32>
    %cst_102 = arith.constant 0.000000e+00 : f32
    %567 = vector.broadcast %cst_102 : f32 to vector<8x64xf32>
    %568 = arith.maximumf %566, %567 : vector<8x64xf32>
    %569 = arith.truncf %568 : vector<8x64xf32> to vector<8x64xbf16>
    %c0_103 = arith.constant 0 : index
    %c0_104 = arith.constant 0 : index
    %570 = vector.load %arg10[%c0_103, %c0_104] : memref<64x128xbf16, #tpu.memory_space<vmem>>, vector<64x128xbf16>
    %cst_105 = arith.constant dense<0.000000e+00> : vector<8x128xf32>
    %571 = tpu.matmul %569, %570, %cst_105 {dimension_numbers = #tpu.dot_dimension_numbers<[1], [0], [0], [1], [0, 0, 1, 1], [], []>} : vector<8x64xbf16>, vector<64x128xbf16>, vector<8x128xf32> -> vector<8x128xf32>
    %c0_106 = arith.constant 0 : index
    %c0_107 = arith.constant 0 : index
    %572 = vector.load %arg11[%c0_106, %c0_107] : memref<1x128xf32, #tpu.memory_space<vmem>>, vector<1x128xf32>
    %573 = vector.broadcast %572 : vector<1x128xf32> to vector<8x128xf32>
    %574 = arith.addf %571, %573 : vector<8x128xf32>
    %575 = tpu.iota {dimensions = array<i32: 1>} : vector<8x128xi32>
    %c8_i32 = arith.constant 8 : i32
    %576 = vector.broadcast %c8_i32 : i32 to vector<8x128xi32>
    %577 = arith.cmpi slt, %575, %576 : vector<8x128xi32>
    %578 = arith.negf %574 : vector<8x128xf32>
    %579 = math.exp %578 : vector<8x128xf32>
    %cst_108 = arith.constant 1.000000e+00 : f32
    %580 = vector.broadcast %cst_108 : f32 to vector<8x128xf32>
    %581 = arith.addf %580, %579 : vector<8x128xf32>
    %582 = arith.divf %580, %581 : vector<8x128xf32>
    %583 = arith.select %577, %574, %582 : vector<8x128xi1>, vector<8x128xf32>
    %c0_109 = arith.constant 0 : index
    %c0_110 = arith.constant 0 : index
    %584 = vector.load %arg12[%c0_109, %c0_110] : memref<8x128xf32, #tpu.memory_space<vmem>>, vector<8x128xf32>
    tpu.vector_store %arg12[%c0_109, %c0_110], %583 {strides = array<i32>} : memref<8x128xf32, #tpu.memory_space<vmem>>, vector<8x128xf32>,
    return
  }
}

</mosaic_0001>

<bundles_post_ra>
// kernel: dual_head_bilstm_forward.1
= control target key start
LH: loop header
LB: loop body
LE: loop exit
PB: predicated region body
PF: predicated region fallthrough
CT: control target
= control target key end

     0   :  { %17 = vsyncpa [#allocation3], 0  ;;  %s5880_s0 = inlined_call_operand.vmem [shape: bf16[64,256], index: 0, kind: input, shape index: {}]   ;;  %s5881_s1 = inlined_call_operand.hbm [shape: bf16[256,512], index: 1, kind: input, shape index: {}]   ;;  %s5882_s2 = inlined_call_operand.vmem [shape: f32[1,512], index: 2, kind: input, shape index: {}]   ;;  %s5883_s3 = inlined_call_operand.vmem [shape: bf16[64,512], index: 3, kind: input, shape index: {}]   ;;  %s5884_s4 = inlined_call_operand.vmem [shape: bf16[64,512], index: 4, kind: input, shape index: {}]   ;;  %s5885_s5 = inlined_call_operand.hbm [shape: bf16[64,512], index: 5, kind: input, shape index: {}]   ;;  %s5886_s6 = inlined_call_operand.vmem [shape: f32[1,512], index: 6, kind: input, shape index: {}]   ;;  %s5887_s7 = inlined_call_operand.hbm [shape: bf16[64,512], index: 7, kind: input, shape index: {}]   ;;  %s5888_s8 = inlined_call_operand.vmem [shape: f32[4,64], index: 8, kind: input, shape index: {}]   ;;  %s5889_s9 = inlined_call_operand.vmem [shape: bf16[64,64], index: 9, kind: input, shape index: {}]   ;;  %s5890_s10 = inlined_call_operand.hbm [shape: bf16[64,128], index: 10, kind: input, shape index: {}]   ;;  %s5891_s11 = inlined_call_operand.vmem [shape: f32[1,128], index: 11, kind: input, shape index: {}]   ;;  %s5892_s12 = inlined_call_operand.vmem [shape: f32[8,128], index: 12, kind: output, shape index: {}]  }
   0x1   :  { %18 = vsyncpa [#allocation5], 0 }
   0x2   :  { %19 = vsyncpa [#allocation8], 0  ;;  %s4649_s21 = smov [#allocation4]   ;;  %s4650_s23 = smov [#allocation2]  }
   0x3   :  { %s45_s22 = sshll.u32 %s4649_s21, 4  ;;  %s27_s24 = sshll.u32 %s4650_s23, 4  ;;  %s46_s22 = int_to_ptr.vmem [resolvable:$true] %s45_s22  ;;  %s4725_s24 = int_to_ptr.vmem [resolvable:$true] %s27_s24 }
   0x4   :  { %s4555_s27 = scalar_lea.hbm %s5885_s5, 2048 }
   0x5   :  { %p4556_p0 = scmp.ne.s32.totalorder %s5885_s5, %s4555_s27  ;;  %p4559_p1 = scmp.lt.u32.totalorder %s4555_s27, %s5885_s5 }
   0x7   :  { %p4561_p2 = pnand %p4559_p1, %p4556_p0 }
   0x9   :  { %4564 = shalt.err (!%p4561_p2)
}
   0xa   :  { %s4565_s14 = scalar_lea.vmem %s46_s22, 2048  ;;  %p4570_p4 = scmp.lt.s32.totalorder %s46_s22, %s46_s22 }
   0xb   :  { %p4566_p3 = scmp.ne.s32.totalorder %s46_s22, %s4565_s14  ;;  %p4571_p5 = scmp.lt.s32.totalorder %s4565_s14, %s4565_s14 }
   0xd   :  { %p4572_p6 = por %p4571_p5, %p4570_p4 }
   0xf   :  { %p4573_p7 = pnand %p4572_p6, %p4566_p3 }
  0x11   :  { %4576 = shalt.err (!%p4573_p7)
}
  0x12   :  { %s4651_s15 = smov 256   ;;  %s4652_s16 = smov 16  }
  0x13   :  { %51 = dma.hbm_to_vmem [thread:$0]  %s5885_s5, 2048, %s46_s22, [#allocation5], %s4651_s15, %s4651_s15, %s4652_s16  }
  0x14   :  { %s4577_s21 = scalar_lea.hbm %s5881_s1, 8192 }
  0x15   :  { %p4578_p8 = scmp.ne.s32.totalorder %s5881_s1, %s4577_s21  ;;  %p4581_p9 = scmp.lt.u32.totalorder %s4577_s21, %s5881_s1 }
  0x17   :  { %p4583_p10 = pnand %p4581_p9, %p4578_p8 }
  0x19   :  { %4586 = shalt.err (!%p4583_p10)
}
  0x1a   :  { %s4587_s28 = scalar_lea.vmem %s4725_s24, 8192  ;;  %p4592_p12 = scmp.lt.s32.totalorder %s4725_s24, %s4725_s24 }
  0x1b   :  { %p4588_p11 = scmp.ne.s32.totalorder %s4725_s24, %s4587_s28  ;;  %p4593_p13 = scmp.lt.s32.totalorder %s4587_s28, %s4587_s28 }
  0x1d   :  { %p4594_p0 = por %p4593_p13, %p4592_p12 }
  0x1f   :  { %p4595_p1 = pnand %p4594_p0, %p4588_p11 }
  0x21   :  { %4598 = shalt.err (!%p4595_p1)
}
  0x22   :  { %33 = dma.hbm_to_vmem [thread:$0]  %s5881_s1, 8192, %s4725_s24, [#allocation3], %s4651_s15, %s4651_s15, %s4652_s16  }
  0x23   :  { %s4653_s29 = smov [#allocation6]   ;;  %s4654_s13 = smov [#allocation7]  }
  0x24   :  { %s59_s30 = sshll.u32 %s4653_s29, 4  ;;  %s75_s14 = sshll.u32 %s4654_s13, 4  ;;  %s60_s30 = int_to_ptr.vmem [resolvable:$true] %s59_s30  ;;  %s4762_s14 = int_to_ptr.vmem [resolvable:$true] %s75_s14 }
  0x25   :  { %s4599_s19 = scalar_lea.hbm %s5887_s7, 2048 }
  0x26   :  { %p4600_p2 = scmp.ne.s32.totalorder %s5887_s7, %s4599_s19  ;;  %p4603_p3 = scmp.lt.u32.totalorder %s4599_s19, %s5887_s7 }
  0x28   :  { %p4605_p4 = pnand %p4603_p3, %p4600_p2 }
  0x2a   :  { %4608 = shalt.err (!%p4605_p4)
}
  0x2b   :  { %s4609_s1 = scalar_lea.vmem %s60_s30, 2048  ;;  %p4614_p6 = scmp.lt.s32.totalorder %s60_s30, %s60_s30 }
  0x2c   :  { %p4610_p5 = scmp.ne.s32.totalorder %s60_s30, %s4609_s1  ;;  %p4615_p7 = scmp.lt.s32.totalorder %s4609_s1, %s4609_s1 }
  0x2e   :  { %p4616_p8 = por %p4615_p7, %p4614_p6 }
  0x30   :  { %p4617_p9 = pnand %p4616_p8, %p4610_p5 }
  0x32   :  { %4620 = shalt.err (!%p4617_p9)
}
  0x33   :  { %65 = dma.hbm_to_vmem [thread:$0]  %s5887_s7, 2048, %s60_s30, [#allocation5], %s4651_s15, %s4651_s15, %s4652_s16  }
  0x34   :  { %s4621_s5 = scalar_lea.hbm %s5890_s10, 512 }
  0x35   :  { %p4622_p10 = scmp.ne.s32.totalorder %s5890_s10, %s4621_s5  ;;  %p4625_p11 = scmp.lt.u32.totalorder %s4621_s5, %s5890_s10 }
  0x37   :  { %p4627_p12 = pnand %p4625_p11, %p4622_p10 }
  0x39   :  { %4630 = shalt.err (!%p4627_p12)
}
  0x3a   :  { %s4631_s18 = scalar_lea.vmem %s4762_s14, 512  ;;  %p4636_p0 = scmp.lt.s32.totalorder %s4762_s14, %s4762_s14 }
  0x3b   :  { %p4632_p13 = scmp.ne.s32.totalorder %s4762_s14, %s4631_s18  ;;  %p4637_p1 = scmp.lt.s32.totalorder %s4631_s18, %s4631_s18 }
  0x3d   :  { %p4638_p2 = por %p4637_p1, %p4636_p0 }
  0x3f   :  { %p4639_p3 = pnand %p4638_p2, %p4632_p13 }
  0x41   :  { %4642 = shalt.err (!%p4639_p3)
}
  0x42   :  { %s4655_s7 = smov 64   ;;  %s4656_s15 = smov 4  }
  0x43   :  { %81 = dma.hbm_to_vmem [thread:$0]  %s5890_s10, 512, %s4762_s14, [#allocation8], %s4655_s7, %s4655_s7, %s4656_s15  }
  0x44   :  { %4643 = dma.done.wait [#allocation3], 8192  }
  0x45   :  { %4644 = vsyncadd [#allocation3], 4294959104 }
  0x46   :  { %4645 = dma.done.wait [#allocation5], 4096  }
  0x47   :  { %4646 = vsyncadd [#allocation5], 4294963200 }
  0x48   :  { %4647 = dma.done.wait [#allocation8], 512  }
  0x49   :  { %4648 = vsyncadd [#allocation8], 4294966784  ;;  %v4038_v0 = vld [vmem:[#allocation2 + $0x4] ss:$16 sps:$4 sm:$0xff]   ;;  %v4040_v1 = vld [vmem:[#allocation2 + $0xc] ss:$16 sps:$4 sm:$0xff]  }
  0x4a   :  { %554 = vmatprep.subr.bf16.mxu0 %v4038_v0  ;;  %v4042_v2 = vld [vmem:[#allocation2] ss:$16 sps:$4 sm:$0xff]   ;;  %v4043_v3 = vld [vmem:[#allocation2 + $0x8] ss:$16 sps:$4 sm:$0xff]   ;;  %627 = vmatprep.subr.bf16.mxu1 %v4040_v1  ;;  %v4044_v4 = vld [vmem:[#allocation2 + $0x24] ss:$16 sps:$4 sm:$0xff]  }
  0x4b   :  { %555 = vmatpush1.bf16.msra.mxu0 %v4042_v2  ;;  %628 = vmatpush1.bf16.msra.mxu1 %v4043_v3  ;;  %v4046_v5 = vld [vmem:[#allocation2 + $0x2c] ss:$16 sps:$4 sm:$0xff]   ;;  %v4048_v6 = vld [vmem:[#allocation2 + $0x20] ss:$16 sps:$4 sm:$0xff]   ;;  %v4049_v7 = vld [vmem:[#allocation2 + $0x28] ss:$16 sps:$4 sm:$0xff]  }
  0x4c   :  { %556 = vmatprep.subr.bf16.mxu0 %v4044_v4  ;;  %629 = vmatprep.subr.bf16.mxu1 %v4046_v5  ;;  %v4050_v8 = vld [vmem:[#allocation2 + $0x44] ss:$16 sps:$4 sm:$0xff]   ;;  %v4052_v9 = vld [vmem:[#allocation2 + $0x4c] ss:$16 sps:$4 sm:$0xff]   ;;  %v4054_v10 = vld [vmem:[#allocation2 + $0x40] ss:$16 sps:$4 sm:$0xff]  }
  0x4d   :  { %v4055_v11 = vld [vmem:[#allocation2 + $0x48] ss:$16 sps:$4 sm:$0xff]   ;;  %v4056_v12 = vld [vmem:[#allocation2 + $0x64] ss:$16 sps:$4 sm:$0xff]   ;;  %v4058_v13 = vld [vmem:[#allocation2 + $0x6c] ss:$16 sps:$4 sm:$0xff]  }
  0x4e   :  { %v4060_v14 = vld [vmem:[#allocation2 + $0x60] ss:$16 sps:$4 sm:$0xff]   ;;  %v4061_v15 = vld [vmem:[#allocation2 + $0x68] ss:$16 sps:$4 sm:$0xff]   ;;  %v4062_v16 = vld [vmem:[#allocation2 + $0x84] ss:$16 sps:$4 sm:$0xff]  }
  0x4f   :  { %557 = vmatpush1.bf16.msra.mxu0 %v4048_v6  ;;  %630 = vmatpush1.bf16.msra.mxu1 %v4049_v7  ;;  %v4064_v17 = vld [vmem:[#allocation2 + $0x8c] ss:$16 sps:$4 sm:$0xff]   ;;  %v4066_v18 = vld [vmem:[#allocation2 + $0x80] ss:$16 sps:$4 sm:$0xff]   ;;  %v4067_v19 = vld [vmem:[#allocation2 + $0x88] ss:$16 sps:$4 sm:$0xff]  }
  0x50   :  { %558 = vmatprep.subr.bf16.mxu0 %v4050_v8  ;;  %631 = vmatprep.subr.bf16.mxu1 %v4052_v9  ;;  %v4068_v20 = vld [vmem:[#allocation2 + $0xa4] ss:$16 sps:$4 sm:$0xff]   ;;  %v4070_v21 = vld [vmem:[#allocation2 + $0xac] ss:$16 sps:$4 sm:$0xff]   ;;  %v4072_v22 = vld [vmem:[#allocation2 + $0xa0] ss:$16 sps:$4 sm:$0xff]  }
  0x51   :  { %v4073_v23 = vld [vmem:[#allocation2 + $0xa8] ss:$16 sps:$4 sm:$0xff]   ;;  %v4074_v24 = vld [vmem:[#allocation2 + $0xc4] ss:$16 sps:$4 sm:$0xff]   ;;  %v4076_v25 = vld [vmem:[#allocation2 + $0xcc] ss:$16 sps:$4 sm:$0xff]  }
  0x52   :  { %v4078_v26 = vld [vmem:[#allocation2 + $0xc0] ss:$16 sps:$4 sm:$0xff]   ;;  %v4079_v27 = vld [vmem:[#allocation2 + $0xc8] ss:$16 sps:$4 sm:$0xff]   ;;  %v4080_v28 = vld [vmem:[#allocation2 + $0xe4] ss:$16 sps:$4 sm:$0xff]  }
  0x53   :  { %559 = vmatpush1.bf16.msra.mxu0 %v4054_v10  ;;  %632 = vmatpush1.bf16.msra.mxu1 %v4055_v11  ;;  %v4082_v29 = vld [vmem:[#allocation2 + $0xec] ss:$16 sps:$4 sm:$0xff]   ;;  %v4084_v30 = vld [vmem:[#allocation2 + $0xe0] ss:$16 sps:$4 sm:$0xff]   ;;  %v4085_v31 = vld [vmem:[#allocation2 + $0xe8] ss:$16 sps:$4 sm:$0xff]  }
  0x54   :  { %560 = vmatprep.subr.bf16.mxu0 %v4056_v12  ;;  %633 = vmatprep.subr.bf16.mxu1 %v4058_v13  ;;  %v4086_v32 = vld [vmem:[#allocation2 + $0x104] ss:$16 sps:$4 sm:$0xff]   ;;  %v4088_v33 = vld [vmem:[#allocation2 + $0x10c] ss:$16 sps:$4 sm:$0xff]   ;;  %v4090_v34 = vld [vmem:[#allocation2 + $0x100] ss:$16 sps:$4 sm:$0xff]  }
  0x55   :  { %v4091_v35 = vld [vmem:[#allocation2 + $0x108] ss:$16 sps:$4 sm:$0xff]   ;;  %v4092_v36 = vld [vmem:[#allocation2 + $0x124] ss:$16 sps:$4 sm:$0xff]   ;;  %v4094_v37 = vld [vmem:[#allocation2 + $0x12c] ss:$16 sps:$4 sm:$0xff]  }
  0x56   :  { %v4096_v38 = vld [vmem:[#allocation2 + $0x120] ss:$16 sps:$4 sm:$0xff]   ;;  %v4097_v39 = vld [vmem:[#allocation2 + $0x128] ss:$16 sps:$4 sm:$0xff]   ;;  %v4098_v40 = vld [vmem:[#allocation2 + $0x144] ss:$16 sps:$4 sm:$0xff]  }
  0x57   :  { %561 = vmatpush1.bf16.msra.mxu0 %v4060_v14  ;;  %634 = vmatpush1.bf16.msra.mxu1 %v4061_v15  ;;  %v4100_v41 = vld [vmem:[#allocation2 + $0x14c] ss:$16 sps:$4 sm:$0xff]   ;;  %v4102_v42 = vld [vmem:[#allocation2 + $0x140] ss:$16 sps:$4 sm:$0xff]   ;;  %v4103_v43 = vld [vmem:[#allocation2 + $0x148] ss:$16 sps:$4 sm:$0xff]  }
  0x58   :  { %562 = vmatprep.subr.bf16.mxu0 %v4062_v16  ;;  %635 = vmatprep.subr.bf16.mxu1 %v4064_v17  ;;  %v4104_v44 = vld [vmem:[#allocation2 + $0x164] ss:$16 sps:$4 sm:$0xff]   ;;  %v4106_v45 = vld [vmem:[#allocation2 + $0x16c] ss:$16 sps:$4 sm:$0xff]   ;;  %v4108_v46 = vld [vmem:[#allocation2 + $0x160] ss:$16 sps:$4 sm:$0xff]  }
  0x59   :  { %v4109_v47 = vld [vmem:[#allocation2 + $0x168] ss:$16 sps:$4 sm:$0xff]   ;;  %v4136_v48 = vld [vmem:[%s5880_s0 + $0x4] ss:$8 sps:$4 sm:$0xff]   ;;  %v4114_v51 = vld [vmem:[#allocation2 + $0x180] ss:$16 sps:$4 sm:$0xff]  }
  0x5a   :  { %v4110_v49 = vld [vmem:[#allocation2 + $0x184] ss:$16 sps:$4 sm:$0xff]   ;;  %v4112_v50 = vld [vmem:[#allocation2 + $0x18c] ss:$16 sps:$4 sm:$0xff]   ;;  %586 = vmatprep.mubr.bf16.mxu0 %v4136_v48  ;;  %659 = vmatprep.mubr.bf16.mxu1 %v4136_v48  ;;  %v4115_v52 = vld [vmem:[#allocation2 + $0x188] ss:$16 sps:$4 sm:$0xff]  }
  0x5b   :  { %563 = vmatpush1.bf16.msra.mxu0 %v4066_v18  ;;  %636 = vmatpush1.bf16.msra.mxu1 %v4067_v19  ;;  %v4116_v53 = vld [vmem:[#allocation2 + $0x1a4] ss:$16 sps:$4 sm:$0xff]   ;;  %v4118_v54 = vld [vmem:[#allocation2 + $0x1ac] ss:$16 sps:$4 sm:$0xff]   ;;  %v4120_v55 = vld [vmem:[#allocation2 + $0x1a0] ss:$16 sps:$4 sm:$0xff]  }
  0x5c   :  { %564 = vmatprep.subr.bf16.mxu0 %v4068_v20  ;;  %637 = vmatprep.subr.bf16.mxu1 %v4070_v21  ;;  %v4121_v56 = vld [vmem:[#allocation2 + $0x1a8] ss:$16 sps:$4 sm:$0xff]   ;;  %v4122_v57 = vld [vmem:[#allocation2 + $0x1c4] ss:$16 sps:$4 sm:$0xff]   ;;  %v4124_v58 = vld [vmem:[#allocation2 + $0x1cc] ss:$16 sps:$4 sm:$0xff]  }
  0x5d   :  { %v4126_v59 = vld [vmem:[#allocation2 + $0x1c0] ss:$16 sps:$4 sm:$0xff]   ;;  %v4127_v60 = vld [vmem:[#allocation2 + $0x1c8] ss:$16 sps:$4 sm:$0xff]   ;;  %v4128_v61 = vld [vmem:[#allocation2 + $0x1e4] ss:$16 sps:$4 sm:$0xff]  }
  0x5e   :  { %v4130_v62 = vld [vmem:[#allocation2 + $0x1ec] ss:$16 sps:$4 sm:$0xff]   ;;  %v4132_v63 = vld [vmem:[#allocation2 + $0x1e0] ss:$16 sps:$4 sm:$0xff]   ;;  %v4133_v0 = vld [vmem:[#allocation2 + $0x1e8] ss:$16 sps:$4 sm:$0xff]  }
  0x5f   :  { %565 = vmatpush1.bf16.msra.mxu0 %v4072_v22  ;;  %638 = vmatpush1.bf16.msra.mxu1 %v4073_v23  ;;  %v4802_v1 = vld [vmem:[%s5883_s3 + $0x4] ss:$16 sps:$4 sm:$0xff]   ;;  %v4807_v2 = vld [vmem:[%s5883_s3 + $0xc] ss:$16 sps:$4 sm:$0xff]   ;;  %v4134_v3 = vld [vmem:[%s5880_s0] ss:$8 sps:$4 sm:$0xff]  }
  0x60   :  { %566 = vmatprep.subr.bf16.mxu0 %v4074_v24  ;;  %639 = vmatprep.subr.bf16.mxu1 %v4076_v25  ;;  %v4815_v4 = vld [vmem:[%s5883_s3] ss:$16 sps:$4 sm:$0xff]   ;;  %v4140_v5 = vld [vmem:[%s5880_s0 + $0x14] ss:$8 sps:$4 sm:$0xff]   ;;  %v4828_v7 = vld [vmem:[%s5883_s3 + $0x8] ss:$16 sps:$4 sm:$0xff]   ;;  %v5897_v25 = vlaneseq }
  0x61   :  { %v4823_v6 = vld [vmem:[%s5883_s3 + $0x24] ss:$16 sps:$4 sm:$0xff]   ;;  %v4835_v8 = vld [vmem:[%s5883_s3 + $0x2c] ss:$16 sps:$4 sm:$0xff]   ;;  %v4840_v9 = vld [vmem:[%s5883_s3 + $0x20] ss:$16 sps:$4 sm:$0xff]  }
  0x62   :  { %v4845_v10 = vld [vmem:[%s5883_s3 + $0x44] ss:$16 sps:$4 sm:$0xff]   ;;  %v4851_v11 = vld [vmem:[%s5883_s3 + $0x28] ss:$16 sps:$4 sm:$0xff]   ;;  %v4864_v14 = vld [vmem:[%s5883_s3 + $0x40] ss:$16 sps:$4 sm:$0xff]  }
  0x63   :  { %567 = vmatpush1.bf16.msra.mxu0 %v4078_v26  ;;  %640 = vmatpush1.bf16.msra.mxu1 %v4079_v27  ;;  %v4142_v12 = vld [vmem:[%s5880_s0 + $0x10] ss:$8 sps:$4 sm:$0xff]   ;;  %v4146_v13 = vld [vmem:[%s5880_s0 + $0x24] ss:$8 sps:$4 sm:$0xff]   ;;  %v4150_v21 = vld [vmem:[%s5880_s0 + $0x20] ss:$8 sps:$4 sm:$0xff]  }
  0x64   :  { %568 = vmatprep.subr.bf16.mxu0 %v4080_v28  ;;  %641 = vmatprep.subr.bf16.mxu1 %v4082_v29  ;;  %v4870_v15 = vld [vmem:[%s5883_s3 + $0x4c] ss:$16 sps:$4 sm:$0xff]   ;;  %v4876_v16 = vld [vmem:[%s5883_s3 + $0x64] ss:$16 sps:$4 sm:$0xff]   ;;  %v4881_v17 = vld [vmem:[%s5883_s3 + $0x48] ss:$16 sps:$4 sm:$0xff]  }
  0x65   :  { %v4887_v18 = vld [vmem:[%s5883_s3 + $0x6c] ss:$16 sps:$4 sm:$0xff]   ;;  %v4893_v19 = vld [vmem:[%s5883_s3 + $0x60] ss:$16 sps:$4 sm:$0xff]   ;;  %v4898_v20 = vld [vmem:[%s5883_s3 + $0x68] ss:$16 sps:$4 sm:$0xff]  }
  0x66   :  { %v4158_v22 = vld [vmem:[%s5880_s0 + $0x34] ss:$8 sps:$4 sm:$0xff]   ;;  %v4160_v23 = vld [vmem:[%s5880_s0 + $0x30] ss:$8 sps:$4 sm:$0xff]   ;;  %v5898_v24 = vmov 0   ;;  %v4941_v26 = vshrl.u32 %v5897_v25, 7 }
  0x67   :  { %569 = vmatpush1.bf16.msra.mxu0 %v4084_v30  ;;  %642 = vmatpush1.bf16.msra.mxu1 %v4085_v31  ;;  %v172_v30 = vld [vmem:[%s5882_s2] sm:$0xf]  ;;  %vm796_vm0 = vcmask 523264   ;;  %vm4659_vm2 = vmmov 0  }
  0x68   :  { %570 = vmatprep.subr.bf16.mxu0 %v4086_v32  ;;  %643 = vmatprep.subr.bf16.mxu1 %v4088_v33  ;;  %5902 = vst [vmem:[#allocation12_spill] sm:$0xff] %v4941_v26  ;;  %v5895_v27 = vsub.s32 2, %v4941_v26  ;;  %v5893_v28 = vsub.s32 3, %v4941_v26  ;;  %v5896_v29 = vsub.s32 0, %v4941_v26  ;;  %v5894_v31 = vsub.s32 1, %v4941_v26 }
  0x6a   :  { %v4952_v32 = vrot.slane %v172_v30, %v5895_v27 }
  0x6b   :  { %571 = vmatpush1.bf16.msra.mxu0 %v4090_v34  ;;  %644 = vmatpush1.bf16.msra.mxu1 %v4091_v35  ;;  %v4960_v35 = vrot.slane %v172_v30, %v5893_v28 }
  0x6c   :  { %572 = vmatprep.subr.bf16.mxu0 %v4092_v36  ;;  %645 = vmatprep.subr.bf16.mxu1 %v4094_v37  ;;  %v177_v36 = vrot.slane %v172_v30, %v5896_v29 }
  0x6f   :  { %573 = vmatpush1.bf16.msra.mxu0 %v4096_v38  ;;  %646 = vmatpush1.bf16.msra.mxu1 %v4097_v39  ;;  %v181_v39 = vrot.slane %v172_v30, %v5894_v31 }
  0x70   :  { %574 = vmatprep.subr.bf16.mxu0 %v4098_v40  ;;  %647 = vmatprep.subr.bf16.mxu1 %v4100_v41 }
  0x73   :  { %575 = vmatpush1.bf16.msra.mxu0 %v4102_v42  ;;  %648 = vmatpush1.bf16.msra.mxu1 %v4103_v43 }
  0x74   :  { %576 = vmatprep.subr.bf16.mxu0 %v4104_v44  ;;  %649 = vmatprep.subr.bf16.mxu1 %v4106_v45 }
  0x77   :  { %577 = vmatpush1.bf16.msra.mxu0 %v4108_v46  ;;  %650 = vmatpush1.bf16.msra.mxu1 %v4109_v47 }
  0x78   :  { %578 = vmatprep.subr.bf16.mxu0 %v4110_v49  ;;  %651 = vmatprep.subr.bf16.mxu1 %v4112_v50 }
  0x7b   :  { %579 = vmatpush1.bf16.msra.mxu0 %v4114_v51  ;;  %652 = vmatpush1.bf16.msra.mxu1 %v4115_v52 }
  0x7c   :  { %580 = vmatprep.subr.bf16.mxu0 %v4116_v53  ;;  %653 = vmatprep.subr.bf16.mxu1 %v4118_v54 }
  0x7f   :  { %581 = vmatpush1.bf16.msra.mxu0 %v4120_v55  ;;  %654 = vmatpush1.bf16.msra.mxu1 %v4121_v56 }
  0x80   :  { %582 = vmatprep.subr.bf16.mxu0 %v4122_v57  ;;  %655 = vmatprep.subr.bf16.mxu1 %v4124_v58 }
  0x83   :  { %583 = vmatpush1.bf16.msra.mxu0 %v4126_v59  ;;  %656 = vmatpush1.bf16.msra.mxu1 %v4127_v60 }
  0x84   :  { %584 = vmatprep.subr.bf16.mxu0 %v4128_v61  ;;  %657 = vmatprep.subr.bf16.mxu1 %v4130_v62 }
  0x87   :  { %585 = vmatpush1.bf16.msra.mxu0 %v4132_v63  ;;  %658 = vmatpush1.bf16.msra.mxu1 %v4133_v0 }
  0x88   :  { %800 = vmatprep.subr.bf16.mxu0 %v4802_v1  ;;  %841 = vmatprep.subr.bf16.mxu1 %v4807_v2 }
  0x8a   :  { %587 = vmatmul.mubr.bf16.vlgmr.msra.gmra.mrb[0].mxu0 %v4134_v3  ;;  %660 = vmatmul.mubr.bf16.vlgmr.msra.gmra.mrb[0].mxu1 %v4134_v3 }
  0x8b   :  { %801 = vmatpush1.bf16.msra.mxu0 %v4815_v4  ;;  %596 = vmatprep.mubr.bf16.mxu0 %v4140_v5 }
  0x8c   :  { %669 = vmatprep.mubr.bf16.mxu1 %v4140_v5  ;;  %802 = vmatprep.subr.bf16.mxu0 %v4823_v6 }
  0x8d   :  { %842 = vmatpush1.bf16.msra.mxu1 %v4828_v7 }
  0x8e   :  { %843 = vmatprep.subr.bf16.mxu1 %v4835_v8 }
  0x8f   :  { %803 = vmatpush1.bf16.msra.mxu0 %v4840_v9 }
  0x90   :  { %804 = vmatprep.subr.bf16.mxu0 %v4845_v10 }
  0x91   :  { %844 = vmatpush1.bf16.msra.mxu1 %v4851_v11 }
  0x92   :  { %597 = vmatmul.mubr.bf16.gmra.mrb[4].mxu0 %v4142_v12  ;;  %670 = vmatmul.mubr.bf16.gmra.mrb[4].mxu1 %v4142_v12 }
  0x93   :  { %606 = vmatprep.mubr.bf16.mxu0 %v4146_v13  ;;  %679 = vmatprep.mubr.bf16.mxu1 %v4146_v13 }
  0x94   :  { %805 = vmatpush1.bf16.msra.mxu0 %v4864_v14  ;;  %845 = vmatprep.subr.bf16.mxu1 %v4870_v15 }
  0x95   :  { %806 = vmatprep.subr.bf16.mxu0 %v4876_v16  ;;  %846 = vmatpush1.bf16.msra.mxu1 %v4881_v17 }
  0x96   :  { %847 = vmatprep.subr.bf16.mxu1 %v4887_v18 }
  0x98   :  { %807 = vmatpush1.bf16.msra.mxu0 %v4893_v19 }
  0x99   :  { %848 = vmatpush1.bf16.msra.mxu1 %v4898_v20  ;;  %914 = vmatprep.subr.bf16.mxu0 %v4802_v1 }
  0x9a   :  { %607 = vmatmul.mubr.bf16.gmra.mrb[8].mxu0 %v4150_v21  ;;  %680 = vmatmul.mubr.bf16.gmra.mrb[8].mxu1 %v4150_v21 }
  0x9b   :  { %616 = vmatprep.mubr.bf16.mxu0 %v4158_v22  ;;  %689 = vmatprep.mubr.bf16.mxu1 %v4158_v22 }
  0x9c   :  { %955 = vmatprep.subr.bf16.mxu1 %v4807_v2 }
  0xa2   :  { %617 = vmatmul.mubr.bf16.gmra.mrb[12].mxu0 %v4160_v23  ;;  %690 = vmatmul.mubr.bf16.gmra.mrb[12].mxu1 %v4160_v23 }
  0xa3   :  { %832 = vmatprep.mubr.bf16.mxu0 %v5898_v24  ;;  %873 = vmatprep.mubr.bf16.mxu1 %v5898_v24 }
  0xaa   :  { %833 = vmatmul.mubr.bf16.vlgmr.msra.gmra.mrb[16].mxu0 %v5898_v24  ;;  %874 = vmatmul.mubr.bf16.vlgmr.msra.gmra.mrb[16].mxu1 %v5898_v24 }
  0xab   :  { %915 = vmatpush1.bf16.msra.mxu0 %v4815_v4  ;;  %956 = vmatpush1.bf16.msra.mxu1 %v4828_v7 }
  0xac   :  { %916 = vmatprep.subr.bf16.mxu0 %v4823_v6  ;;  %957 = vmatprep.subr.bf16.mxu1 %v4835_v8 }
  0xad   :  { %946 = vmatprep.mubr.bf16.mxu0 %v5898_v24  ;;  %987 = vmatprep.mubr.bf16.mxu1 %v5898_v24 }
  0xaf   :  { %917 = vmatpush1.bf16.msra.mxu0 %v4840_v9  ;;  %958 = vmatpush1.bf16.msra.mxu1 %v4851_v11 }
  0xb0   :  { %918 = vmatprep.subr.bf16.mxu0 %v4845_v10  ;;  %959 = vmatprep.subr.bf16.mxu1 %v4870_v15 }
  0xb3   :  { %919 = vmatpush1.bf16.msra.mxu0 %v4864_v14  ;;  %960 = vmatpush1.bf16.msra.mxu1 %v4881_v17 }
  0xb4   :  { %920 = vmatprep.subr.bf16.mxu0 %v4876_v16  ;;  %961 = vmatprep.subr.bf16.mxu1 %v4887_v18 }
  0xb7   :  { %921 = vmatpush1.bf16.msra.mxu0 %v4893_v19  ;;  %962 = vmatpush1.bf16.msra.mxu1 %v4898_v20 }
  0xb8   :  { %1028 = vmatprep.subr.bf16.mxu0 %v4802_v1  ;;  %1069 = vmatprep.subr.bf16.mxu1 %v4807_v2 }
 0x15d   :  { %v4954_v33 = vpop.f32.mrb[0].mxu0  ;;  %v4956_v34 = vpop.f32.mrb[0].mxu1 }
 0x15e   :  { %v590_v37 = vpop.f32.mrb[1].mxu0  ;;  %v663_v38 = vpop.f32.mrb[1].mxu1  ;;  %v662_v31 = vadd.f32 %v4956_v34, %v4952_v32 }
 0x15f   :  { %v592_v40 = vpop.f32.mrb[2].mxu0  ;;  %v665_v41 = vpop.f32.mrb[2].mxu1  ;;  %v664_v27 = vadd.f32 %v663_v38, %v4960_v35 }
 0x160   :  { %v4966_v42 = vadd.f32 %v592_v40, %v177_v36  ;;  %v594_v43 = vpop.f32.mrb[3].mxu0  ;;  %v4969_v44 = vadd.f32 %v665_v41, %v4952_v32  ;;  %v667_v45 = vpop.f32.mrb[3].mxu1 }
 0x161   :  { %v4971_v46 = vadd.f32 %v594_v43, %v181_v39  ;;  %v4974_v47 = vadd.f32 %v667_v45, %v4960_v35 }
 0x165   :  { %v598_v48 = vpop.f32.mrb[4].mxu0  ;;  %v671_v49 = vpop.f32.mrb[4].mxu1 }
 0x166   :  { %v4976_v50 = vadd.f32 %v598_v48, %v177_v36  ;;  %v600_v51 = vpop.f32.mrb[5].mxu0  ;;  %v4979_v52 = vadd.f32 %v671_v49, %v4952_v32  ;;  %v673_v53 = vpop.f32.mrb[5].mxu1 }
 0x167   :  { %v4981_v54 = vadd.f32 %v600_v51, %v181_v39  ;;  %v602_v55 = vpop.f32.mrb[6].mxu0  ;;  %v4984_v56 = vadd.f32 %v673_v53, %v4960_v35  ;;  %v675_v57 = vpop.f32.mrb[6].mxu1 }
 0x168   :  { %v4986_v58 = vadd.f32 %v602_v55, %v177_v36  ;;  %v604_v59 = vpop.f32.mrb[7].mxu0  ;;  %v4989_v60 = vadd.f32 %v675_v57, %v4952_v32  ;;  %v677_v61 = vpop.f32.mrb[7].mxu1 }
 0x169   :  { %v4991_v62 = vadd.f32 %v604_v59, %v181_v39  ;;  %v4994_v63 = vadd.f32 %v677_v61, %v4960_v35 }
 0x16d   :  { %v608_v0 = vpop.f32.mrb[8].mxu0  ;;  %v681_v3 = vpop.f32.mrb[8].mxu1 }
 0x16e   :  { %v4996_v5 = vadd.f32 %v608_v0, %v177_v36  ;;  %v610_v12 = vpop.f32.mrb[9].mxu0  ;;  %v4999_v13 = vadd.f32 %v681_v3, %v4952_v32  ;;  %v683_v21 = vpop.f32.mrb[9].mxu1 }
 0x16f   :  { %v5001_v22 = vadd.f32 %v610_v12, %v181_v39  ;;  %v612_v23 = vpop.f32.mrb[10].mxu0  ;;  %v5004_v30 = vadd.f32 %v683_v21, %v4960_v35  ;;  %v685_v40 = vpop.f32.mrb[10].mxu1 }
 0x170   :  { %v5006_v41 = vadd.f32 %v612_v23, %v177_v36  ;;  %v614_v43 = vpop.f32.mrb[11].mxu0  ;;  %v5009_v45 = vadd.f32 %v685_v40, %v4952_v32  ;;  %v687_v48 = vpop.f32.mrb[11].mxu1 }
 0x171   :  { %v5011_v49 = vadd.f32 %v614_v43, %v181_v39  ;;  %v5014_v51 = vadd.f32 %v687_v48, %v4960_v35 }
 0x175   :  { %v618_v53 = vpop.f32.mrb[12].mxu0  ;;  %v691_v55 = vpop.f32.mrb[12].mxu1 }
 0x176   :  { %v5016_v57 = vadd.f32 %v618_v53, %v177_v36  ;;  %v620_v59 = vpop.f32.mrb[13].mxu0  ;;  %v5019_v61 = vadd.f32 %v691_v55, %v4952_v32  ;;  %v693_v0 = vpop.f32.mrb[13].mxu1 }
 0x177   :  { %v5021_v3 = vadd.f32 %v620_v59, %v181_v39  ;;  %v622_v12 = vpop.f32.mrb[14].mxu0  ;;  %v5024_v21 = vadd.f32 %v693_v0, %v4960_v35  ;;  %v695_v23 = vpop.f32.mrb[14].mxu1  ;;  %v589_v59 = vadd.f32 %v4954_v33, %v177_v36  ;;  %v591_v0 = vadd.f32 %v590_v37, %v181_v39 }
 0x178   :  { %v5026_v40 = vadd.f32 %v622_v12, %v177_v36  ;;  %v624_v43 = vpop.f32.mrb[15].mxu0  ;;  %v5029_v48 = vadd.f32 %v695_v23, %v4952_v32  ;;  %v697_v53 = vpop.f32.mrb[15].mxu1 }
 0x179   :  { %5903 = vst [vmem:[#allocation13_spill] sm:$0xff] %v5024_v21  ;;  %v5031_v28 = vadd.f32 %v624_v43, %v181_v39  ;;  %v5034_v55 = vadd.f32 %v697_v53, %v4960_v35 }
 0x17a   :  { %5904 = vst [vmem:[#allocation14_spill] sm:$0xff] %v5026_v40  ;;  %5905 = vst [vmem:[#allocation15_spill] sm:$0xff] %v5029_v48 }
 0x17b   :  { %5906 = vst [vmem:[#allocation16_spill] sm:$0xff] %v5031_v28  ;;  %5907 = vst [vmem:[#allocation17_spill] sm:$0xff] %v5034_v55 }
 0x17d   :  { %v834_v12 = vpop.f32.mrb[16].mxu0  ;;  %v875_v29 = vpop.f32.mrb[16].mxu1 }
 0x17e   :  { %v882_v25 = vadd.f32 %v834_v12, %v589_v59  ;;  %v884_v24 = vadd.f32 %v875_v29, %v662_v31  ;;  %v836_v23 = vpop.f32.mrb[17].mxu0  ;;  %v877_v26 = vpop.f32.mrb[17].mxu1 }
 0x17f   :  { %v883_v48 = vadd.f32 %v836_v23, %v591_v0  ;;  %v885_v43 = vadd.f32 %v877_v26, %v664_v27  ;;  %v838_v28 = vpop.f32.mrb[18].mxu0  ;;  %v879_v40 = vpop.f32.mrb[18].mxu1 }
 0x180   :  { %v3805_v53 = vmul.f32 -1.442695, %v882_v25  ;;  %v839_v55 = vpop.f32.mrb[19].mxu0  ;;  %v880_v21 = vpop.f32.mrb[19].mxu1  ;;  %v3807_v32 = vmul.f32 -1.442695, %v884_v24 }
 0x181   :  { %v3806_v33 = vmul.f32 -1.442695, %v883_v48  ;;  %v5908_v55 = vmov 0  }
 0x182   :  { %4250 = vpow2.f32 %v3805_v53 }
 0x183   :  { %4252 = vpow2.f32 %v3806_v33 }
 0x184   :  { %4254 = vtanh.f32 %v885_v43 }
 0x185   :  { %4256 = vpow2.f32 %v3807_v32 }
 0x18c   :  { %v4251_v34 = vpop.eup %4250 }
 0x18d   :  { %v889_v36 = vadd.f32 1.0, %v4251_v34  ;;  %v4253_v35 = vpop.eup %4252 }
 0x18e   :  { %v895_v29 = vadd.f32 1.0, %v4253_v35  ;;  %v4255_v31 = vpop.eup %4254 }
 0x18f   :  { %4258 = vrcp.f32 %v889_v36  ;;  %v4257_v37 = vpop.eup %4256 }
 0x190   :  { %4260 = vrcp.f32 %v895_v29  ;;  %v901_v25 = vadd.f32 1.0, %v4257_v37 }
 0x192   :  { %4262 = vrcp.f32 %v901_v25 }
 0x199   :  { %v4259_v26 = vpop.eup %4258 }
 0x19a   :  { %v906_v27 = vmul.f32 %v4259_v26, %v4255_v31  ;;  %v4261_v28 = vpop.eup %4260 }
 0x19b   :  { %v905_v38 = vmul.f32 0.0, %v4261_v28 }
 0x19c   :  { %v4263_v21 = vpop.eup %4262 }
 0x19d   :  { %v907_v39 = vadd.f32 %v906_v27, %v905_v38 }
 0x19f   :  { %4264 = vtanh.f32 %v907_v39 }
 0x1a9   :  { %v4265_v24 = vpop.eup %4264 }
 0x1aa   :  { %v5040_v40 = vmul.f32 %v4265_v24, %v4263_v21 }
 0x1ac   :  { %v910_v48 = vpack.c.bf16 %v5040_v40, %v5040_v40 }
 0x1ae   :  { %3808 = vmatmul.mubr.msk.bf16.vlgmr.msra.gmra.mrb[20].mxu0 %vm796_vm0, %v910_v48  ;;  %3809 = vmatmul.mubr.msk.bf16.vlgmr.msra.gmra.mrb[20].mxu1 %vm796_vm0, %v910_v48 }
 0x1af   :  { %1029 = vmatpush1.bf16.msra.mxu0 %v4815_v4  ;;  %1070 = vmatpush1.bf16.msra.mxu1 %v4828_v7 }
 0x1b0   :  { %1030 = vmatprep.subr.bf16.mxu0 %v4823_v6  ;;  %1071 = vmatprep.subr.bf16.mxu1 %v4835_v8 }
 0x1b1   :  { %1060 = vmatprep.mubr.bf16.mxu0 %v5908_v55  ;;  %1101 = vmatprep.mubr.bf16.mxu1 %v5908_v55 }
 0x1b3   :  { %1031 = vmatpush1.bf16.msra.mxu0 %v4840_v9  ;;  %1072 = vmatpush1.bf16.msra.mxu1 %v4851_v11 }
 0x1b4   :  { %1032 = vmatprep.subr.bf16.mxu0 %v4845_v10  ;;  %1073 = vmatprep.subr.bf16.mxu1 %v4870_v15 }
 0x1b7   :  { %1033 = vmatpush1.bf16.msra.mxu0 %v4864_v14  ;;  %1074 = vmatpush1.bf16.msra.mxu1 %v4881_v17 }
 0x1b8   :  { %1034 = vmatprep.subr.bf16.mxu0 %v4876_v16  ;;  %1075 = vmatprep.subr.bf16.mxu1 %v4887_v18 }
 0x1bb   :  { %1035 = vmatpush1.bf16.msra.mxu0 %v4893_v19  ;;  %1076 = vmatpush1.bf16.msra.mxu1 %v4898_v20 }
 0x1bc   :  { %1142 = vmatprep.subr.bf16.mxu0 %v4802_v1  ;;  %1183 = vmatprep.subr.bf16.mxu1 %v4807_v2 }
 0x281   :  { %v948_v59 = vpop.f32.mrb[20].mxu0  ;;  %v989_v0 = vpop.f32.mrb[20].mxu1 }
 0x282   :  { %v996_v12 = vadd.f32 %v948_v59, %v4966_v42  ;;  %v998_v23 = vadd.f32 %v989_v0, %v4969_v44  ;;  %v950_v43 = vpop.f32.mrb[21].mxu0  ;;  %v991_v53 = vpop.f32.mrb[21].mxu1 }
 0x283   :  { %v997_v33 = vadd.f32 %v950_v43, %v4971_v46  ;;  %v999_v32 = vadd.f32 %v991_v53, %v4974_v47  ;;  %v952_v34 = vpop.f32.mrb[22].mxu0  ;;  %v993_v36 = vpop.f32.mrb[22].mxu1 }
 0x284   :  { %v3810_v35 = vmul.f32 -1.442695, %v996_v12  ;;  %v953_v29 = vpop.f32.mrb[23].mxu0  ;;  %v994_v31 = vpop.f32.mrb[23].mxu1  ;;  %v3812_v26 = vmul.f32 -1.442695, %v998_v23 }
 0x285   :  { %v3811_v37 = vmul.f32 -1.442695, %v997_v33 }
 0x286   :  { %4266 = vpow2.f32 %v3810_v35 }
 0x287   :  { %4268 = vpow2.f32 %v3811_v37 }
 0x288   :  { %4270 = vtanh.f32 %v999_v32 }
 0x289   :  { %4272 = vpow2.f32 %v3812_v26 }
 0x290   :  { %v4267_v27 = vpop.eup %4266 }
 0x291   :  { %v1003_v28 = vadd.f32 1.0, %v4267_v27  ;;  %v4269_v42 = vpop.eup %4268 }
 0x292   :  { %v1009_v44 = vadd.f32 1.0, %v4269_v42  ;;  %v4271_v46 = vpop.eup %4270 }
 0x293   :  { %4274 = vrcp.f32 %v1003_v28  ;;  %v4273_v25 = vpop.eup %4272 }
 0x294   :  { %4276 = vrcp.f32 %v1009_v44  ;;  %v1015_v24 = vadd.f32 1.0, %v4273_v25 }
 0x296   :  { %4278 = vrcp.f32 %v1015_v24 }
 0x29d   :  { %v4275_v47 = vpop.eup %4274 }
 0x29e   :  { %v1020_v38 = vmul.f32 %v4275_v47, %v4271_v46  ;;  %v4277_v21 = vpop.eup %4276 }
 0x29f   :  { %v1019_v48 = vmul.f32 %v4277_v21, %v907_v39 }
 0x2a0   :  { %v4279_v0 = vpop.eup %4278 }
 0x2a1   :  { %v1021_v59 = vadd.f32 %v1020_v38, %v1019_v48 }
 0x2a3   :  { %4280 = vtanh.f32 %v1021_v59 }
 0x2ad   :  { %v4281_v12 = vpop.eup %4280 }
 0x2ae   :  { %v5068_v23 = vmul.f32 %v4281_v12, %v4279_v0 }
 0x2b0   :  { %v1024_v43 = vpack.c.bf16 %v5068_v23, %v5068_v23 }
 0x2b2   :  { %3813 = vmatmul.mubr.msk.bf16.vlgmr.msra.gmra.mrb[24].mxu0 %vm796_vm0, %v1024_v43  ;;  %3814 = vmatmul.mubr.msk.bf16.vlgmr.msra.gmra.mrb[24].mxu1 %vm796_vm0, %v1024_v43 }
 0x2b3   :  { %1143 = vmatpush1.bf16.msra.mxu0 %v4815_v4  ;;  %1184 = vmatpush1.bf16.msra.mxu1 %v4828_v7 }
 0x2b4   :  { %1144 = vmatprep.subr.bf16.mxu0 %v4823_v6  ;;  %1185 = vmatprep.subr.bf16.mxu1 %v4835_v8 }
 0x2b5   :  { %1174 = vmatprep.mubr.bf16.mxu0 %v5908_v55  ;;  %1215 = vmatprep.mubr.bf16.mxu1 %v5908_v55 }
 0x2b7   :  { %1145 = vmatpush1.bf16.msra.mxu0 %v4840_v9  ;;  %1186 = vmatpush1.bf16.msra.mxu1 %v4851_v11 }
 0x2b8   :  { %1146 = vmatprep.subr.bf16.mxu0 %v4845_v10  ;;  %1187 = vmatprep.subr.bf16.mxu1 %v4870_v15 }
 0x2bb   :  { %1147 = vmatpush1.bf16.msra.mxu0 %v4864_v14  ;;  %1188 = vmatpush1.bf16.msra.mxu1 %v4881_v17 }
 0x2bc   :  { %1148 = vmatprep.subr.bf16.mxu0 %v4876_v16  ;;  %1189 = vmatprep.subr.bf16.mxu1 %v4887_v18 }
 0x2bf   :  { %1149 = vmatpush1.bf16.msra.mxu0 %v4893_v19  ;;  %1190 = vmatpush1.bf16.msra.mxu1 %v4898_v20 }
 0x2c0   :  { %1256 = vmatprep.subr.bf16.mxu0 %v4802_v1  ;;  %1297 = vmatprep.subr.bf16.mxu1 %v4807_v2 }
 0x385   :  { %v1062_v39 = vpop.f32.mrb[24].mxu0  ;;  %v1103_v53 = vpop.f32.mrb[24].mxu1 }
 0x386   :  { %v1110_v33 = vadd.f32 %v1062_v39, %v4976_v50  ;;  %v1112_v32 = vadd.f32 %v1103_v53, %v4979_v52  ;;  %v1064_v34 = vpop.f32.mrb[25].mxu0  ;;  %v1105_v36 = vpop.f32.mrb[25].mxu1 }
 0x387   :  { %v1111_v35 = vadd.f32 %v1064_v34, %v4981_v54  ;;  %v1113_v29 = vadd.f32 %v1105_v36, %v4984_v56  ;;  %v1066_v31 = vpop.f32.mrb[26].mxu0  ;;  %v1107_v37 = vpop.f32.mrb[26].mxu1 }
 0x388   :  { %v3815_v26 = vmul.f32 -1.442695, %v1110_v33  ;;  %v1067_v27 = vpop.f32.mrb[27].mxu0  ;;  %v1108_v28 = vpop.f32.mrb[27].mxu1  ;;  %v3817_v44 = vmul.f32 -1.442695, %v1112_v32 }
 0x389   :  { %v3816_v42 = vmul.f32 -1.442695, %v1111_v35 }
 0x38a   :  { %4282 = vpow2.f32 %v3815_v26 }
 0x38b   :  { %4284 = vpow2.f32 %v3816_v42 }
 0x38c   :  { %4286 = vtanh.f32 %v1113_v29 }
 0x38d   :  { %4288 = vpow2.f32 %v3817_v44 }
 0x394   :  { %v4283_v46 = vpop.eup %4282 }
 0x395   :  { %v1117_v25 = vadd.f32 1.0, %v4283_v46  ;;  %v4285_v50 = vpop.eup %4284 }
 0x396   :  { %v1123_v52 = vadd.f32 1.0, %v4285_v50  ;;  %v4287_v54 = vpop.eup %4286 }
 0x397   :  { %4290 = vrcp.f32 %v1117_v25  ;;  %v4289_v47 = vpop.eup %4288 }
 0x398   :  { %4292 = vrcp.f32 %v1123_v52  ;;  %v1129_v24 = vadd.f32 1.0, %v4289_v47 }
 0x39a   :  { %4294 = vrcp.f32 %v1129_v24 }
 0x3a1   :  { %v4291_v56 = vpop.eup %4290 }
 0x3a2   :  { %v1134_v38 = vmul.f32 %v4291_v56, %v4287_v54  ;;  %v4293_v21 = vpop.eup %4292 }
 0x3a3   :  { %v1133_v48 = vmul.f32 %v4293_v21, %v1021_v59 }
 0x3a4   :  { %v4295_v12 = vpop.eup %4294 }
 0x3a5   :  { %v1135_v0 = vadd.f32 %v1134_v38, %v1133_v48 }
 0x3a7   :  { %4296 = vtanh.f32 %v1135_v0 }
 0x3b1   :  { %v4297_v43 = vpop.eup %4296 }
 0x3b2   :  { %v5096_v39 = vmul.f32 %v4297_v43, %v4295_v12 }
 0x3b4   :  { %v1138_v53 = vpack.c.bf16 %v5096_v39, %v5096_v39 }
 0x3b6   :  { %3818 = vmatmul.mubr.msk.bf16.vlgmr.msra.gmra.mrb[28].mxu0 %vm796_vm0, %v1138_v53  ;;  %3819 = vmatmul.mubr.msk.bf16.vlgmr.msra.gmra.mrb[28].mxu1 %vm796_vm0, %v1138_v53 }
 0x3b7   :  { %1257 = vmatpush1.bf16.msra.mxu0 %v4815_v4  ;;  %1298 = vmatpush1.bf16.msra.mxu1 %v4828_v7 }
 0x3b8   :  { %1258 = vmatprep.subr.bf16.mxu0 %v4823_v6  ;;  %1299 = vmatprep.subr.bf16.mxu1 %v4835_v8 }
 0x3b9   :  { %1288 = vmatprep.mubr.bf16.mxu0 %v5908_v55  ;;  %1329 = vmatprep.mubr.bf16.mxu1 %v5908_v55 }
 0x3bb   :  { %1259 = vmatpush1.bf16.msra.mxu0 %v4840_v9  ;;  %1300 = vmatpush1.bf16.msra.mxu1 %v4851_v11 }
 0x3bc   :  { %1260 = vmatprep.subr.bf16.mxu0 %v4845_v10  ;;  %1301 = vmatprep.subr.bf16.mxu1 %v4870_v15 }
 0x3bf   :  { %1261 = vmatpush1.bf16.msra.mxu0 %v4864_v14  ;;  %1302 = vmatpush1.bf16.msra.mxu1 %v4881_v17 }
 0x3c0   :  { %1262 = vmatprep.subr.bf16.mxu0 %v4876_v16  ;;  %1303 = vmatprep.subr.bf16.mxu1 %v4887_v18 }
 0x3c3   :  { %1263 = vmatpush1.bf16.msra.mxu0 %v4893_v19  ;;  %1304 = vmatpush1.bf16.msra.mxu1 %v4898_v20 }
 0x3c4   :  { %1370 = vmatprep.subr.bf16.mxu0 %v4802_v1  ;;  %1411 = vmatprep.subr.bf16.mxu1 %v4807_v2 }
 0x489   :  { %v1176_v59 = vpop.f32.mrb[28].mxu0  ;;  %v1217_v33 = vpop.f32.mrb[28].mxu1 }
 0x48a   :  { %v1224_v32 = vadd.f32 %v1176_v59, %v4986_v58  ;;  %v1226_v34 = vadd.f32 %v1217_v33, %v4989_v60  ;;  %v1178_v36 = vpop.f32.mrb[29].mxu0  ;;  %v1219_v35 = vpop.f32.mrb[29].mxu1 }
 0x48b   :  { %v1225_v29 = vadd.f32 %v1178_v36, %v4991_v62  ;;  %v1227_v31 = vadd.f32 %v1219_v35, %v4994_v63  ;;  %v1180_v37 = vpop.f32.mrb[30].mxu0  ;;  %v1221_v26 = vpop.f32.mrb[30].mxu1 }
 0x48c   :  { %v3820_v27 = vmul.f32 -1.442695, %v1224_v32  ;;  %v1181_v28 = vpop.f32.mrb[31].mxu0  ;;  %v1222_v42 = vpop.f32.mrb[31].mxu1  ;;  %v3822_v46 = vmul.f32 -1.442695, %v1226_v34 }
 0x48d   :  { %v3821_v44 = vmul.f32 -1.442695, %v1225_v29 }
 0x48e   :  { %4298 = vpow2.f32 %v3820_v27 }
 0x48f   :  { %4300 = vpow2.f32 %v3821_v44 }
 0x490   :  { %4302 = vtanh.f32 %v1227_v31 }
 0x491   :  { %4304 = vpow2.f32 %v3822_v46 }
 0x498   :  { %v4299_v25 = vpop.eup %4298 }
 0x499   :  { %v1231_v50 = vadd.f32 1.0, %v4299_v25  ;;  %v4301_v58 = vpop.eup %4300 }
 0x49a   :  { %v1237_v60 = vadd.f32 1.0, %v4301_v58  ;;  %v4303_v62 = vpop.eup %4302 }
 0x49b   :  { %4306 = vrcp.f32 %v1231_v50  ;;  %v4305_v52 = vpop.eup %4304 }
 0x49c   :  { %4308 = vrcp.f32 %v1237_v60  ;;  %v1243_v56 = vadd.f32 1.0, %v4305_v52 }
 0x49e   :  { %4310 = vrcp.f32 %v1243_v56 }
 0x4a5   :  { %v4307_v63 = vpop.eup %4306 }
 0x4a6   :  { %v1248_v54 = vmul.f32 %v4307_v63, %v4303_v62  ;;  %v4309_v47 = vpop.eup %4308 }
 0x4a7   :  { %v1247_v38 = vmul.f32 %v4309_v47, %v1135_v0 }
 0x4a8   :  { %v4311_v24 = vpop.eup %4310 }
 0x4a9   :  { %v1249_v21 = vadd.f32 %v1248_v54, %v1247_v38 }
 0x4ab   :  { %4312 = vtanh.f32 %v1249_v21 }
 0x4b5   :  { %v4313_v48 = vpop.eup %4312 }
 0x4b6   :  { %v5124_v12 = vmul.f32 %v4313_v48, %v4311_v24 }
 0x4b8   :  { %v1252_v43 = vpack.c.bf16 %v5124_v12, %v5124_v12 }
 0x4ba   :  { %3823 = vmatmul.mubr.msk.bf16.vlgmr.msra.gmra.mrb[32].mxu0 %vm796_vm0, %v1252_v43  ;;  %3824 = vmatmul.mubr.msk.bf16.vlgmr.msra.gmra.mrb[32].mxu1 %vm796_vm0, %v1252_v43 }
 0x4bb   :  { %1371 = vmatpush1.bf16.msra.mxu0 %v4815_v4  ;;  %1412 = vmatpush1.bf16.msra.mxu1 %v4828_v7 }
 0x4bc   :  { %1372 = vmatprep.subr.bf16.mxu0 %v4823_v6  ;;  %1413 = vmatprep.subr.bf16.mxu1 %v4835_v8 }
 0x4bd   :  { %1402 = vmatprep.mubr.bf16.mxu0 %v5908_v55  ;;  %1443 = vmatprep.mubr.bf16.mxu1 %v5908_v55 }
 0x4bf   :  { %1373 = vmatpush1.bf16.msra.mxu0 %v4840_v9  ;;  %1414 = vmatpush1.bf16.msra.mxu1 %v4851_v11 }
 0x4c0   :  { %1374 = vmatprep.subr.bf16.mxu0 %v4845_v10  ;;  %1415 = vmatprep.subr.bf16.mxu1 %v4870_v15 }
 0x4c3   :  { %1375 = vmatpush1.bf16.msra.mxu0 %v4864_v14  ;;  %1416 = vmatpush1.bf16.msra.mxu1 %v4881_v17 }
 0x4c4   :  { %1376 = vmatprep.subr.bf16.mxu0 %v4876_v16  ;;  %1417 = vmatprep.subr.bf16.mxu1 %v4887_v18 }
 0x4c7   :  { %1377 = vmatpush1.bf16.msra.mxu0 %v4893_v19  ;;  %1418 = vmatpush1.bf16.msra.mxu1 %v4898_v20 }
 0x4c8   :  { %1484 = vmatprep.subr.bf16.mxu0 %v4802_v1  ;;  %1525 = vmatprep.subr.bf16.mxu1 %v4807_v2 }
 0x58d   :  { %v1290_v0 = vpop.f32.mrb[32].mxu0  ;;  %v1331_v53 = vpop.f32.mrb[32].mxu1 }
 0x58e   :  { %v1338_v59 = vadd.f32 %v1290_v0, %v4996_v5  ;;  %v1340_v33 = vadd.f32 %v1331_v53, %v4999_v13  ;;  %v1292_v32 = vpop.f32.mrb[33].mxu0  ;;  %v1333_v34 = vpop.f32.mrb[33].mxu1 }
 0x58f   :  { %v1339_v36 = vadd.f32 %v1292_v32, %v5001_v22  ;;  %v1341_v35 = vadd.f32 %v1333_v34, %v5004_v30  ;;  %v1294_v29 = vpop.f32.mrb[34].mxu0  ;;  %v1335_v31 = vpop.f32.mrb[34].mxu1 }
 0x590   :  { %v3825_v37 = vmul.f32 -1.442695, %v1338_v59  ;;  %v1295_v26 = vpop.f32.mrb[35].mxu0  ;;  %v1336_v27 = vpop.f32.mrb[35].mxu1  ;;  %v3827_v2 = vmul.f32 -1.442695, %v1340_v33  ;;  %v5909_v31 = vlaneseq }
 0x591   :  { %v3826_v1 = vmul.f32 -1.442695, %v1339_v36 }
 0x592   :  { %4314 = vpow2.f32 %v3825_v37  ;;  %v5188_v37 = vand.u32 127, %v5909_v31  ;;  %v4179_v31 = vld [vmem:[#allocation4 + $0x28] ss:$16 sps:$4 sm:$0xff]  }
 0x593   :  { %4316 = vpow2.f32 %v3826_v1 }
 0x594   :  { %4318 = vtanh.f32 %v1341_v35  ;;  %vm99_vm1 = vcmp.lt.s32.totalorder %v5188_v37, 32  ;;  %vm3701_vm3 = vcmp.lt.s32.totalorder %v5188_v37, 8 }
 0x595   :  { %4320 = vpow2.f32 %v3827_v2 }
 0x59c   :  { %v4315_v28 = vpop.eup %4314 }
 0x59d   :  { %v1345_v42 = vadd.f32 1.0, %v4315_v28  ;;  %v4317_v5 = vpop.eup %4316 }
 0x59e   :  { %v1351_v13 = vadd.f32 1.0, %v4317_v5  ;;  %v4319_v22 = vpop.eup %4318 }
 0x59f   :  { %4322 = vrcp.f32 %v1345_v42  ;;  %v4321_v44 = vpop.eup %4320 }
 0x5a0   :  { %4324 = vrcp.f32 %v1351_v13  ;;  %v1357_v50 = vadd.f32 1.0, %v4321_v44 }
 0x5a2   :  { %4326 = vrcp.f32 %v1357_v50  ;;  %v4549_v50 = vld [vmem:[%s5883_s3 + $0x2c] ss:$16 sps:$4 sm:$0xff]  }
 0x5a9   :  { %v4323_v30 = vpop.eup %4322 }
 0x5aa   :  { %v1362_v46 = vmul.f32 %v4323_v30, %v4319_v22  ;;  %v4325_v25 = vpop.eup %4324 }
 0x5ab   :  { %v1361_v58 = vmul.f32 %v4325_v25, %v1249_v21  ;;  %v4548_v25 = vld [vmem:[%s5883_s3 + $0x24] ss:$16 sps:$4 sm:$0xff]  }
 0x5ac   :  { %v4327_v62 = vpop.eup %4326 }
 0x5ad   :  { %v1363_v60 = vadd.f32 %v1362_v46, %v1361_v58  ;;  %v4550_v58 = vld [vmem:[%s5883_s3 + $0x20] ss:$16 sps:$4 sm:$0xff]  }
 0x5af   :  { %4328 = vtanh.f32 %v1363_v60 }
 0x5b9   :  { %v4329_v52 = vpop.eup %4328 }
 0x5ba   :  { %v5152_v63 = vmul.f32 %v4329_v52, %v4327_v62  ;;  %v4552_v62 = vld [vmem:[%s5883_s3 + $0x44] ss:$16 sps:$4 sm:$0xff]   ;;  %v4553_v52 = vld [vmem:[%s5883_s3 + $0x4c] ss:$16 sps:$4 sm:$0xff]  }
 0x5bc   :  { %v1366_v54 = vpack.c.bf16 %v5152_v63, %v5152_v63  ;;  %v1712_v2 = vsel %vm99_vm1, %v5152_v63, %v5124_v12  ;;  %v1711_v13 = vsel %vm99_vm1, %v5124_v12, %v5152_v63  ;;  %v4547_v12 = vld [vmem:[%s5883_s3 + $0x8] ss:$16 sps:$4 sm:$0xff]   ;;  %v4554_v63 = vld [vmem:[%s5883_s3 + $0x40] ss:$16 sps:$4 sm:$0xff]  }
 0x5be   :  { %3828 = vmatmul.mubr.msk.bf16.vlgmr.msra.gmra.mrb[36].mxu0 %vm796_vm0, %v1366_v54  ;;  %3829 = vmatmul.mubr.msk.bf16.vlgmr.msra.gmra.mrb[36].mxu1 %vm796_vm0, %v1366_v54 }
 0x5bf   :  { %1485 = vmatpush1.bf16.msra.mxu0 %v4815_v4  ;;  %1526 = vmatpush1.bf16.msra.mxu1 %v4828_v7  ;;  %v4544_v4 = vld [vmem:[%s5883_s3 + $0x4] ss:$16 sps:$4 sm:$0xff]  }
 0x5c0   :  { %1486 = vmatprep.subr.bf16.mxu0 %v4823_v6  ;;  %1527 = vmatprep.subr.bf16.mxu1 %v4835_v8  ;;  %v4545_v6 = vld [vmem:[%s5883_s3 + $0xc] ss:$16 sps:$4 sm:$0xff]  }
 0x5c1   :  { %1516 = vmatprep.mubr.bf16.mxu0 %v5908_v55  ;;  %1557 = vmatprep.mubr.bf16.mxu1 %v5908_v55 }
 0x5c3   :  { %1487 = vmatpush1.bf16.msra.mxu0 %v4840_v9  ;;  %1528 = vmatpush1.bf16.msra.mxu1 %v4851_v11 }
 0x5c4   :  { %1488 = vmatprep.subr.bf16.mxu0 %v4845_v10  ;;  %1529 = vmatprep.subr.bf16.mxu1 %v4870_v15 }
 0x5c7   :  { %1489 = vmatpush1.bf16.msra.mxu0 %v4864_v14  ;;  %1530 = vmatpush1.bf16.msra.mxu1 %v4881_v17 }
 0x5c8   :  { %1490 = vmatprep.subr.bf16.mxu0 %v4876_v16  ;;  %1531 = vmatprep.subr.bf16.mxu1 %v4887_v18 }
 0x5cb   :  { %1491 = vmatpush1.bf16.msra.mxu0 %v4893_v19  ;;  %1532 = vmatpush1.bf16.msra.mxu1 %v4898_v20 }
 0x5cc   :  { %1598 = vmatprep.subr.bf16.mxu0 %v4544_v4  ;;  %1639 = vmatprep.subr.bf16.mxu1 %v4545_v6 }
 0x691   :  { %v1404_v7 = vpop.f32.mrb[36].mxu0  ;;  %v1445_v8 = vpop.f32.mrb[36].mxu1 }
 0x692   :  { %v1452_v9 = vadd.f32 %v1404_v7, %v5006_v41  ;;  %v1454_v10 = vadd.f32 %v1445_v8, %v5009_v45  ;;  %v1406_v11 = vpop.f32.mrb[37].mxu0  ;;  %v1447_v14 = vpop.f32.mrb[37].mxu1 }
 0x693   :  { %v1453_v15 = vadd.f32 %v1406_v11, %v5011_v49  ;;  %v1455_v47 = vadd.f32 %v1447_v14, %v5014_v51  ;;  %v1408_v56 = vpop.f32.mrb[38].mxu0  ;;  %v1449_v38 = vpop.f32.mrb[38].mxu1  ;;  %v5910_v11 = vld [vmem:[#allocation13_spill] sm:$0xff] }
 0x694   :  { %v3830_v21 = vmul.f32 -1.442695, %v1452_v9  ;;  %v1409_v24 = vpop.f32.mrb[39].mxu0  ;;  %v1450_v48 = vpop.f32.mrb[39].mxu1  ;;  %v3832_v0 = vmul.f32 -1.442695, %v1454_v10 }
 0x695   :  { %v3831_v43 = vmul.f32 -1.442695, %v1453_v15 }
 0x696   :  { %4330 = vpow2.f32 %v3830_v21 }
 0x697   :  { %4332 = vpow2.f32 %v3831_v43 }
 0x698   :  { %4334 = vtanh.f32 %v1455_v47 }
 0x699   :  { %4336 = vpow2.f32 %v3832_v0 }
 0x6a0   :  { %v4331_v53 = vpop.eup %4330 }
 0x6a1   :  { %v1459_v59 = vadd.f32 1.0, %v4331_v53  ;;  %v4333_v41 = vpop.eup %4332 }
 0x6a2   :  { %v1465_v45 = vadd.f32 1.0, %v4333_v41  ;;  %v4335_v49 = vpop.eup %4334 }
 0x6a3   :  { %4338 = vrcp.f32 %v1459_v59  ;;  %v4337_v33 = vpop.eup %4336 }
 0x6a4   :  { %4340 = vrcp.f32 %v1465_v45  ;;  %v1471_v36 = vadd.f32 1.0, %v4337_v33 }
 0x6a6   :  { %4342 = vrcp.f32 %v1471_v36  ;;  %v4173_v36 = vld [vmem:[#allocation4 + $0x8] ss:$16 sps:$4 sm:$0xff]  }
 0x6ad   :  { %v4339_v51 = vpop.eup %4338 }
 0x6ae   :  { %v1476_v32 = vmul.f32 %v4339_v51, %v4335_v49  ;;  %v4341_v34 = vpop.eup %4340  ;;  %v4172_v51 = vld [vmem:[#allocation4 + $0x4] ss:$16 sps:$4 sm:$0xff]  }
 0x6af   :  { %v1475_v35 = vmul.f32 %v4341_v34, %v1363_v60  ;;  %v4551_v60 = vld [vmem:[%s5883_s3 + $0x28] ss:$16 sps:$4 sm:$0xff]   ;;  %v4170_v34 = vld [vmem:[#allocation4] ss:$16 sps:$4 sm:$0xff]  }
 0x6b0   :  { %v4343_v26 = vpop.eup %4342 }
 0x6b1   :  { %v5184_v29 = vadd.f32 %v1476_v32, %v1475_v35  ;;  %v4175_v32 = vld [vmem:[#allocation4 + $0xc] ss:$16 sps:$4 sm:$0xff]   ;;  %v4178_v35 = vld [vmem:[#allocation4 + $0x24] ss:$16 sps:$4 sm:$0xff]  }
 0x6b3   :  { %4344 = vtanh.f32 %v5184_v29 }
 0x6bd   :  { %v4345_v27 = vpop.eup %4344 }
 0x6be   :  { %v1479_v1 = vmul.f32 %v4345_v27, %v4343_v26  ;;  %v4181_v26 = vld [vmem:[#allocation4 + $0x2c] ss:$16 sps:$4 sm:$0xff]   ;;  %v4184_v27 = vld [vmem:[#allocation4 + $0x44] ss:$16 sps:$4 sm:$0xff]  }
 0x6c0   :  { %v1480_v28 = vpack.c.bf16 %v1479_v1, %v1479_v1  ;;  %v1713_v42 = vsel %vm99_vm1, %v1479_v1, %v5096_v39  ;;  %v1710_v5 = vsel %vm99_vm1, %v5096_v39, %v1479_v1  ;;  %v4546_v39 = vld [vmem:[%s5883_s3] ss:$16 sps:$4 sm:$0xff]   ;;  %v4187_v1 = vld [vmem:[#allocation4 + $0x4c] ss:$16 sps:$4 sm:$0xff]  }
 0x6c1   :  { %v5205_v22 = vpack.c.bf16 %v1712_v2, %v1713_v42  ;;  %v5207_v44 = vpack.c.bf16 %v1710_v5, %v1711_v13  ;;  %v5209_v30 = vpack.c.bf16 %v1711_v13, %v1710_v5  ;;  %v5211_v46 = vpack.c.bf16 %v1713_v42, %v1712_v2  ;;  %v4182_v2 = vld [vmem:[#allocation4 + $0x40] ss:$16 sps:$4 sm:$0xff]   ;;  %v4190_v42 = vld [vmem:[#allocation4 + $0x64] ss:$16 sps:$4 sm:$0xff]   ;;  %v4193_v5 = vld [vmem:[#allocation4 + $0x6c] ss:$16 sps:$4 sm:$0xff]  }
 0x6c2   :  { %3833 = vmatmul.mubr.msk.bf16.vlgmr.msra.gmra.mrb[40].mxu0 %vm796_vm0, %v1480_v28  ;;  %3834 = vmatmul.mubr.msk.bf16.vlgmr.msra.gmra.mrb[40].mxu1 %vm796_vm0, %v1480_v28  ;;  %v4185_v28 = vld [vmem:[#allocation4 + $0x48] ss:$16 sps:$4 sm:$0xff]   ;;  %v4188_v13 = vld [vmem:[#allocation4 + $0x60] ss:$16 sps:$4 sm:$0xff]  }
 0x6c3   :  { %1599 = vmatpush1.bf16.msra.mxu0 %v4546_v39  ;;  %1640 = vmatpush1.bf16.msra.mxu1 %v4547_v12  ;;  %v4191_v39 = vld [vmem:[#allocation4 + $0x68] ss:$16 sps:$4 sm:$0xff]   ;;  %v4196_v12 = vld [vmem:[%s5884_s4 + $0x4] ss:$16 sps:$4 sm:$0xff]  }
 0x6c4   :  { %1600 = vmatprep.subr.bf16.mxu0 %v4548_v25  ;;  %1641 = vmatprep.subr.bf16.mxu1 %v4549_v50  ;;  %v4202_v25 = vld [vmem:[%s5884_s4 + $0xc] ss:$16 sps:$4 sm:$0xff]  }
 0x6c5   :  { %1630 = vmatprep.mubr.bf16.mxu0 %v5908_v55  ;;  %1671 = vmatprep.mubr.bf16.mxu1 %v5908_v55 }
 0x6c7   :  { %1601 = vmatpush1.bf16.msra.mxu0 %v4550_v58  ;;  %1642 = vmatpush1.bf16.msra.mxu1 %v4551_v60  ;;  %v5911_v60 = vld [vmem:[#allocation14_spill] sm:$0xff] }
 0x6c8   :  { %1602 = vmatprep.subr.bf16.mxu0 %v4552_v62  ;;  %1643 = vmatprep.subr.bf16.mxu1 %v4553_v52  ;;  %v5912_v52 = vld [vmem:[#allocation15_spill] sm:$0xff] }
 0x6cb   :  { %1603 = vmatpush1.bf16.msra.mxu0 %v4554_v63  ;;  %1644 = vmatpush1.bf16.msra.mxu1 %v4881_v17 }
 0x6cc   :  { %1604 = vmatprep.subr.bf16.mxu0 %v4876_v16  ;;  %1645 = vmatprep.subr.bf16.mxu1 %v4887_v18 }
 0x6cf   :  { %1605 = vmatpush1.bf16.msra.mxu0 %v4893_v19  ;;  %1646 = vmatpush1.bf16.msra.mxu1 %v4898_v20 }
 0x6d0   :  { %1848 = vmatprep.subr.bf16.mxu0 %v4172_v51  ;;  %1921 = vmatprep.subr.bf16.mxu1 %v4175_v32  ;;  %v4194_v51 = vld [vmem:[%s5884_s4] ss:$16 sps:$4 sm:$0xff]  }
 0x795   :  { %v1518_v54 = vpop.f32.mrb[40].mxu0  ;;  %v1559_v4 = vpop.f32.mrb[40].mxu1 }
 0x796   :  { %v1566_v6 = vadd.f32 %v1518_v54, %v5016_v57  ;;  %v1568_v7 = vadd.f32 %v1559_v4, %v5019_v61  ;;  %v1520_v8 = vpop.f32.mrb[41].mxu0  ;;  %v1561_v9 = vpop.f32.mrb[41].mxu1 }
 0x797   :  { %v1567_v10 = vadd.f32 %v1520_v8, %v5021_v3  ;;  %v1569_v17 = vadd.f32 %v1561_v9, %v5910_v11  ;;  %v1522_v14 = vpop.f32.mrb[42].mxu0  ;;  %v1563_v16 = vpop.f32.mrb[42].mxu1  ;;  %v5914_v8 = vld [vmem:[#allocation17_spill] sm:$0xff] }
 0x798   :  { %v3835_v15 = vmul.f32 -1.442695, %v1566_v6  ;;  %v1523_v18 = vpop.f32.mrb[43].mxu0  ;;  %v1564_v47 = vpop.f32.mrb[43].mxu1  ;;  %v3837_v20 = vmul.f32 -1.442695, %v1568_v7 }
 0x799   :  { %v3836_v19 = vmul.f32 -1.442695, %v1567_v10  ;;  %v5913_v6 = vld [vmem:[#allocation16_spill] sm:$0xff] }
 0x79a   :  { %4346 = vpow2.f32 %v3835_v15 }
 0x79b   :  { %4348 = vpow2.f32 %v3836_v19 }
 0x79c   :  { %4350 = vtanh.f32 %v1569_v17 }
 0x79d   :  { %4352 = vpow2.f32 %v3837_v20 }
 0x7a4   :  { %v4347_v56 = vpop.eup %4346 }
 0x7a5   :  { %v1573_v38 = vadd.f32 1.0, %v4347_v56  ;;  %v4349_v57 = vpop.eup %4348 }
 0x7a6   :  { %v1579_v61 = vadd.f32 1.0, %v4349_v57  ;;  %v4351_v3 = vpop.eup %4350 }
 0x7a7   :  { %4354 = vrcp.f32 %v1573_v38  ;;  %v4353_v21 = vpop.eup %4352 }
 0x7a8   :  { %4356 = vrcp.f32 %v1579_v61  ;;  %v1585_v0 = vadd.f32 1.0, %v4353_v21 }
 0x7aa   :  { %4358 = vrcp.f32 %v1585_v0 }
 0x7b1   :  { %v4355_v24 = vpop.eup %4354 }
 0x7b2   :  { %v1590_v48 = vmul.f32 %v4355_v24, %v4351_v3  ;;  %v4357_v43 = vpop.eup %4356 }
 0x7b3   :  { %v1589_v53 = vmul.f32 %v4357_v43, %v5184_v29  ;;  %v4176_v29 = vld [vmem:[#allocation4 + $0x20] ss:$16 sps:$4 sm:$0xff]  }
 0x7b4   :  { %v4359_v41 = vpop.eup %4358 }
 0x7b5   :  { %v5254_v59 = vadd.f32 %v1590_v48, %v1589_v53 }
 0x7b7   :  { %4360 = vtanh.f32 %v5254_v59 }
 0x7c1   :  { %v4361_v45 = vpop.eup %4360 }
 0x7c2   :  { %v5257_v49 = vmul.f32 %v4361_v45, %v4359_v41 }
 0x7c4   :  { %v1594_v33 = vpack.c.bf16 %v5257_v49, %v5257_v49  ;;  %v1714_v45 = vsel %vm99_vm1, %v5257_v49, %v5068_v23  ;;  %v1709_v32 = vsel %vm99_vm1, %v5068_v23, %v5257_v49  ;;  %v4197_v23 = vld [vmem:[%s5884_s4 + $0x20] ss:$16 sps:$4 sm:$0xff]   ;;  %v4205_v49 = vld [vmem:[%s5884_s4 + $0x44] ss:$16 sps:$4 sm:$0xff]  }
 0x7c6   :  { %3838 = vmatmul.mubr.msk.bf16.vlgmr.msra.gmra.mrb[44].mxu0 %vm796_vm0, %v1594_v33  ;;  %3839 = vmatmul.mubr.msk.bf16.vlgmr.msra.gmra.mrb[44].mxu1 %vm796_vm0, %v1594_v33 }
 0x7c7   :  { %1880 = vmatprep.mubr.bf16.mxu0 %v5908_v55  ;;  %1953 = vmatprep.mubr.bf16.mxu1 %v5908_v55 }
 0x7c8   :  { %1849 = vmatpush1.bf16.msra.mxu0 %v4170_v34  ;;  %1922 = vmatpush1.bf16.msra.mxu1 %v4173_v36  ;;  %v4199_v36 = vld [vmem:[%s5884_s4 + $0x24] ss:$16 sps:$4 sm:$0xff]  }
 0x7c9   :  { %1850 = vmatprep.subr.bf16.mxu0 %v4178_v35  ;;  %1923 = vmatprep.subr.bf16.mxu1 %v4181_v26  ;;  %v4200_v26 = vld [vmem:[%s5884_s4 + $0x8] ss:$16 sps:$4 sm:$0xff]  }
 0x7cc   :  { %1851 = vmatpush1.bf16.msra.mxu0 %v4176_v29  ;;  %1924 = vmatpush1.bf16.msra.mxu1 %v4179_v31 }
 0x7cd   :  { %1852 = vmatprep.subr.bf16.mxu0 %v4184_v27  ;;  %1925 = vmatprep.subr.bf16.mxu1 %v4187_v1  ;;  %v4206_v27 = vld [vmem:[%s5884_s4 + $0x28] ss:$16 sps:$4 sm:$0xff]   ;;  %v4203_v1 = vld [vmem:[%s5884_s4 + $0x40] ss:$16 sps:$4 sm:$0xff]  }
 0x7d0   :  { %1853 = vmatpush1.bf16.msra.mxu0 %v4182_v2  ;;  %1926 = vmatpush1.bf16.msra.mxu1 %v4185_v28  ;;  %v4214_v2 = vld [vmem:[%s5884_s4 + $0x4c] ss:$16 sps:$4 sm:$0xff]   ;;  %v4211_v28 = vld [vmem:[%s5884_s4 + $0x64] ss:$16 sps:$4 sm:$0xff]  }
 0x7d1   :  { %1854 = vmatprep.subr.bf16.mxu0 %v4190_v42  ;;  %1927 = vmatprep.subr.bf16.mxu1 %v4193_v5  ;;  %v4212_v42 = vld [vmem:[%s5884_s4 + $0x48] ss:$16 sps:$4 sm:$0xff]   ;;  %v4217_v5 = vld [vmem:[%s5884_s4 + $0x6c] ss:$16 sps:$4 sm:$0xff]  }
 0x7d4   :  { %1855 = vmatpush1.bf16.msra.mxu0 %v4188_v13  ;;  %1928 = vmatpush1.bf16.msra.mxu1 %v4191_v39  ;;  %v4209_v13 = vld [vmem:[%s5884_s4 + $0x60] ss:$16 sps:$4 sm:$0xff]   ;;  %v5344_v39 = vld [vmem:[#allocation6 + $0x4] ss:$16 sps:$4 sm:$0xff]  }
 0x7d5   :  { %2086 = vmatprep.subr.bf16.mxu0 %v4196_v12  ;;  %2159 = vmatprep.subr.bf16.mxu1 %v4202_v25  ;;  %v5346_v12 = vld [vmem:[#allocation6 + $0xc] ss:$16 sps:$4 sm:$0xff]   ;;  %v5360_v25 = vld [vmem:[#allocation6] ss:$16 sps:$4 sm:$0xff]  }
 0x899   :  { %v1632_v50 = vpop.f32.mrb[44].mxu0  ;;  %v1673_v58 = vpop.f32.mrb[44].mxu1 }
 0x89a   :  { %v1680_v62 = vadd.f32 %v1632_v50, %v5911_v60  ;;  %v1682_v63 = vadd.f32 %v1673_v58, %v5912_v52  ;;  %v1634_v54 = vpop.f32.mrb[45].mxu0  ;;  %v1675_v4 = vpop.f32.mrb[45].mxu1  ;;  %v5362_v50 = vld [vmem:[#allocation6 + $0x24] ss:$16 sps:$4 sm:$0xff]   ;;  %v5364_v58 = vld [vmem:[#allocation6 + $0x8] ss:$16 sps:$4 sm:$0xff]  }
 0x89b   :  { %v1681_v7 = vadd.f32 %v1634_v54, %v5913_v6  ;;  %v1683_v9 = vadd.f32 %v1675_v4, %v5914_v8  ;;  %v1636_v10 = vpop.f32.mrb[46].mxu0  ;;  %v1677_v11 = vpop.f32.mrb[46].mxu1  ;;  %v5372_v60 = vld [vmem:[#allocation6 + $0x20] ss:$16 sps:$4 sm:$0xff]   ;;  %v5379_v52 = vld [vmem:[#allocation6 + $0x28] ss:$16 sps:$4 sm:$0xff]  }
 0x89c   :  { %v3840_v17 = vmul.f32 -1.442695, %v1680_v62  ;;  %v1637_v14 = vpop.f32.mrb[47].mxu0  ;;  %v1678_v16 = vpop.f32.mrb[47].mxu1  ;;  %v3842_v18 = vmul.f32 -1.442695, %v1682_v63 }
 0x89d   :  { %v3841_v15 = vmul.f32 -1.442695, %v1681_v7  ;;  %v5376_v62 = vld [vmem:[#allocation6 + $0x44] ss:$16 sps:$4 sm:$0xff]   ;;  %v5384_v63 = vld [vmem:[#allocation6 + $0x40] ss:$16 sps:$4 sm:$0xff]  }
 0x89e   :  { %4362 = vpow2.f32 %v3840_v17  ;;  %v5386_v54 = vld [vmem:[#allocation6 + $0x4c] ss:$16 sps:$4 sm:$0xff]   ;;  %v5389_v4 = vld [vmem:[#allocation6 + $0x64] ss:$16 sps:$4 sm:$0xff]   ;;  %v5391_v6 = vld [vmem:[#allocation6 + $0x48] ss:$16 sps:$4 sm:$0xff]  }
 0x89f   :  { %4364 = vpow2.f32 %v3841_v15  ;;  %v5397_v7 = vld [vmem:[#allocation6 + $0x6c] ss:$16 sps:$4 sm:$0xff]   ;;  %v5403_v8 = vld [vmem:[#allocation6 + $0x60] ss:$16 sps:$4 sm:$0xff]  }
 0x8a0   :  { %4366 = vtanh.f32 %v1683_v9  ;;  %v5407_v9 = vld [vmem:[#allocation6 + $0x68] ss:$16 sps:$4 sm:$0xff]   ;;  %v5915_v11 = vld [vmem:[#allocation12_spill] sm:$0xff] }
 0x8a1   :  { %4368 = vpow2.f32 %v3842_v18  ;;  %v5916_v17 = vsub.s32 0, %v5915_v11  ;;  %v5917_v16 = vsub.s32 2, %v5915_v11 }
 0x8a8   :  { %v4363_v47 = vpop.eup %4362 }
 0x8a9   :  { %v1687_v19 = vadd.f32 1.0, %v4363_v47  ;;  %v4365_v20 = vpop.eup %4364 }
 0x8aa   :  { %v1693_v56 = vadd.f32 1.0, %v4365_v20  ;;  %v4367_v38 = vpop.eup %4366 }
 0x8ab   :  { %4370 = vrcp.f32 %v1687_v19  ;;  %v4369_v57 = vpop.eup %4368  ;;  %v5918_v19 = vsub.s32 1, %v5915_v11 }
 0x8ac   :  { %4372 = vrcp.f32 %v1693_v56  ;;  %v1699_v24 = vadd.f32 1.0, %v4369_v57  ;;  %v5919_v56 = vsub.s32 3, %v5915_v11 }
 0x8ae   :  { %4374 = vrcp.f32 %v1699_v24 }
 0x8b5   :  { %v4371_v61 = vpop.eup %4370 }
 0x8b6   :  { %v1704_v3 = vmul.f32 %v4371_v61, %v4367_v38  ;;  %v4373_v21 = vpop.eup %4372 }
 0x8b7   :  { %v1703_v48 = vmul.f32 %v4373_v21, %v5254_v59 }
 0x8b8   :  { %v4375_v0 = vpop.eup %4374 }
 0x8b9   :  { %v1705_v43 = vadd.f32 %v1704_v3, %v1703_v48 }
 0x8bb   :  { %4376 = vtanh.f32 %v1705_v43 }
 0x8c5   :  { %v4377_v53 = vpop.eup %4376 }
 0x8c6   :  { %v1707_v41 = vmul.f32 %v4377_v53, %v4375_v0 }
 0x8c8   :  { %v1715_v33 = vsel %vm99_vm1, %v1707_v41, %v5040_v40  ;;  %v1708_v59 = vsel %vm99_vm1, %v5040_v40, %v1707_v41  ;;  %v4208_v40 = vld [vmem:[%s5884_s4 + $0x2c] ss:$16 sps:$4 sm:$0xff]  }
 0x8c9   :  { %v1720_v34 = vpack.c.bf16 %v1714_v45, %v1715_v33  ;;  %v1716_v35 = vpack.c.bf16 %v1709_v32, %v1708_v59  ;;  %v1723_v29 = vpack.c.bf16 %v1708_v59, %v1709_v32  ;;  %v5296_v31 = vpack.c.bf16 %v1715_v33, %v1714_v45 }
 0x8cb   :  { %3859 = vmatmul.mubr.msk.bf16.vlgmr.msra.gmra.mrb[48].mxu0 %vm796_vm0, %v1720_v34  ;;  %3863 = vmatmul.mubr.msk.bf16.vlgmr.msra.gmra.mrb[48].mxu1 %vm796_vm0, %v1720_v34 }
 0x8cc   :  { %2087 = vmatpush1.bf16.msra.mxu0 %v4194_v51  ;;  %1890 = vmatprep.mubr.bf16.mxu0 %v5908_v55 }
 0x8cd   :  { %1963 = vmatprep.mubr.bf16.mxu1 %v5908_v55  ;;  %2088 = vmatprep.subr.bf16.mxu0 %v4199_v36 }
 0x8ce   :  { %2160 = vmatpush1.bf16.msra.mxu1 %v4200_v26 }
 0x8cf   :  { %2161 = vmatprep.subr.bf16.mxu1 %v4208_v40 }
 0x8d0   :  { %2089 = vmatpush1.bf16.msra.mxu0 %v4197_v23 }
 0x8d1   :  { %2090 = vmatprep.subr.bf16.mxu0 %v4205_v49 }
 0x8d2   :  { %2162 = vmatpush1.bf16.msra.mxu1 %v4206_v27 }
 0x8d3   :  { %3860 = vmatmul.mubr.msk.bf16.gmra.mrb[52].mxu0 %vm796_vm0, %v5205_v22  ;;  %3864 = vmatmul.mubr.msk.bf16.gmra.mrb[52].mxu1 %vm796_vm0, %v5205_v22  ;;  %v4215_v22 = vld [vmem:[%s5884_s4 + $0x68] ss:$16 sps:$4 sm:$0xff]  }
 0x8d4   :  { %1900 = vmatprep.mubr.bf16.mxu0 %v5908_v55  ;;  %1973 = vmatprep.mubr.bf16.mxu1 %v5908_v55 }
 0x8d5   :  { %2091 = vmatpush1.bf16.msra.mxu0 %v4203_v1  ;;  %2163 = vmatprep.subr.bf16.mxu1 %v4214_v2 }
 0x8d6   :  { %2092 = vmatprep.subr.bf16.mxu0 %v4211_v28  ;;  %2164 = vmatpush1.bf16.msra.mxu1 %v4212_v42 }
 0x8d7   :  { %2165 = vmatprep.subr.bf16.mxu1 %v4217_v5 }
 0x8d9   :  { %2093 = vmatpush1.bf16.msra.mxu0 %v4209_v13 }
 0x8da   :  { %2166 = vmatpush1.bf16.msra.mxu1 %v4215_v22  ;;  %2382 = vmatprep.subr.bf16.mxu0 %v5344_v39 }
 0x8db   :  { %3861 = vmatmul.mubr.msk.bf16.gmra.mrb[56].mxu0 %vm796_vm0, %v5207_v44  ;;  %3865 = vmatmul.mubr.msk.bf16.gmra.mrb[56].mxu1 %vm796_vm0, %v5207_v44  ;;  %v5368_v44 = vld [vmem:[#allocation6 + $0x2c] ss:$16 sps:$4 sm:$0xff]  }
 0x8dc   :  { %1910 = vmatprep.mubr.bf16.mxu0 %v5908_v55  ;;  %1983 = vmatprep.mubr.bf16.mxu1 %v5908_v55 }
 0x8dd   :  { %2423 = vmatprep.subr.bf16.mxu1 %v5346_v12 }
 0x8e3   :  { %3862 = vmatmul.mubr.msk.bf16.gmra.mrb[60].mxu0 %vm796_vm0, %v1723_v29  ;;  %3866 = vmatmul.mubr.msk.bf16.gmra.mrb[60].mxu1 %vm796_vm0, %v1723_v29 }
 0x8e4   :  { %2118 = vmatprep.mubr.bf16.mxu0 %v5908_v55  ;;  %2191 = vmatprep.mubr.bf16.mxu1 %v5908_v55 }
 0x8eb   :  { %3883 = vmatmul.mubr.msk.bf16.vlgmr.msra.gmra.mrb[48].mxu0 %vm796_vm0, %v1716_v35  ;;  %3887 = vmatmul.mubr.msk.bf16.vlgmr.msra.gmra.mrb[48].mxu1 %vm796_vm0, %v1716_v35 }
 0x8ec   :  { %2383 = vmatpush1.bf16.msra.mxu0 %v5360_v25  ;;  %2128 = vmatprep.mubr.bf16.mxu0 %v5908_v55 }
 0x8ed   :  { %2201 = vmatprep.mubr.bf16.mxu1 %v5908_v55  ;;  %2384 = vmatprep.subr.bf16.mxu0 %v5362_v50 }
 0x8ee   :  { %2424 = vmatpush1.bf16.msra.mxu1 %v5364_v58 }
 0x8ef   :  { %2425 = vmatprep.subr.bf16.mxu1 %v5368_v44 }
 0x8f0   :  { %2385 = vmatpush1.bf16.msra.mxu0 %v5372_v60 }
 0x8f1   :  { %2386 = vmatprep.subr.bf16.mxu0 %v5376_v62 }
 0x8f2   :  { %2426 = vmatpush1.bf16.msra.mxu1 %v5379_v52 }
 0x8f3   :  { %3884 = vmatmul.mubr.msk.bf16.gmra.mrb[52].mxu0 %vm796_vm0, %v5209_v30  ;;  %3888 = vmatmul.mubr.msk.bf16.gmra.mrb[52].mxu1 %vm796_vm0, %v5209_v30  ;;  %v2232_v30 = vld [vmem:[%s5886_s6] sm:$0xf] }
 0x8f4   :  { %2138 = vmatprep.mubr.bf16.mxu0 %v5908_v55  ;;  %2211 = vmatprep.mubr.bf16.mxu1 %v5908_v55  ;;  %v2237_v14 = vrot.slane %v2232_v30, %v5916_v17  ;;  %v2245_v15 = vrot.slane %v2232_v30, %v5917_v16  ;;  %v2241_v20 = vrot.slane %v2232_v30, %v5918_v19 }
 0x8f5   :  { %2387 = vmatpush1.bf16.msra.mxu0 %v5384_v63  ;;  %2427 = vmatprep.subr.bf16.mxu1 %v5386_v54  ;;  %v2249_v38 = vrot.slane %v2232_v30, %v5919_v56 }
 0x8f6   :  { %2388 = vmatprep.subr.bf16.mxu0 %v5389_v4  ;;  %2428 = vmatpush1.bf16.msra.mxu1 %v5391_v6 }
 0x8f7   :  { %2429 = vmatprep.subr.bf16.mxu1 %v5397_v7 }
 0x8f9   :  { %2389 = vmatpush1.bf16.msra.mxu0 %v5403_v8 }
 0x8fa   :  { %2430 = vmatpush1.bf16.msra.mxu1 %v5407_v9  ;;  %2496 = vmatprep.subr.bf16.mxu0 %v5344_v39 }
 0x8fb   :  { %3885 = vmatmul.mubr.msk.bf16.gmra.mrb[56].mxu0 %vm796_vm0, %v5211_v46  ;;  %3889 = vmatmul.mubr.msk.bf16.gmra.mrb[56].mxu1 %vm796_vm0, %v5211_v46 }
 0x8fc   :  { %2148 = vmatprep.mubr.bf16.mxu0 %v5908_v55  ;;  %2221 = vmatprep.mubr.bf16.mxu1 %v5908_v55 }
 0x8fd   :  { %2537 = vmatprep.subr.bf16.mxu1 %v5346_v12 }
 0x903   :  { %3886 = vmatmul.mubr.msk.bf16.gmra.mrb[60].mxu0 %vm796_vm0, %v5296_v31  ;;  %3890 = vmatmul.mubr.msk.bf16.gmra.mrb[60].mxu1 %vm796_vm0, %v5296_v31 }
 0x904   :  { %2414 = vmatprep.mubr.bf16.mxu0 %v5908_v55  ;;  %2455 = vmatprep.mubr.bf16.mxu1 %v5908_v55 }
 0x90b   :  { %2415 = vmatmul.mubr.bf16.vlgmr.msra.gmra.mrb[64].mxu0 %v5908_v55  ;;  %2456 = vmatmul.mubr.bf16.vlgmr.msra.gmra.mrb[64].mxu1 %v5908_v55 }
 0x90c   :  { %2497 = vmatpush1.bf16.msra.mxu0 %v5360_v25  ;;  %2538 = vmatpush1.bf16.msra.mxu1 %v5364_v58 }
 0x90d   :  { %2498 = vmatprep.subr.bf16.mxu0 %v5362_v50  ;;  %2539 = vmatprep.subr.bf16.mxu1 %v5368_v44 }
 0x90e   :  { %2528 = vmatprep.mubr.bf16.mxu0 %v5908_v55  ;;  %2569 = vmatprep.mubr.bf16.mxu1 %v5908_v55 }
 0x910   :  { %2499 = vmatpush1.bf16.msra.mxu0 %v5372_v60  ;;  %2540 = vmatpush1.bf16.msra.mxu1 %v5379_v52 }
 0x911   :  { %2500 = vmatprep.subr.bf16.mxu0 %v5376_v62  ;;  %2541 = vmatprep.subr.bf16.mxu1 %v5386_v54 }
 0x914   :  { %2501 = vmatpush1.bf16.msra.mxu0 %v5384_v63  ;;  %2542 = vmatpush1.bf16.msra.mxu1 %v5391_v6 }
 0x915   :  { %2502 = vmatprep.subr.bf16.mxu0 %v5389_v4  ;;  %2543 = vmatprep.subr.bf16.mxu1 %v5397_v7 }
 0x918   :  { %2503 = vmatpush1.bf16.msra.mxu0 %v5403_v8  ;;  %2544 = vmatpush1.bf16.msra.mxu1 %v5407_v9 }
 0x919   :  { %2610 = vmatprep.subr.bf16.mxu0 %v5344_v39  ;;  %2651 = vmatprep.subr.bf16.mxu1 %v5346_v12 }
 0x9be   :  { %v5449_v46 = vpop.f32.mrb[48].mxu0  ;;  %v5451_v10 = vpop.f32.mrb[48].mxu1 }
 0x9bf   :  { %v2122_v18 = vpop.f32.mrb[49].mxu0  ;;  %v2195_v47 = vpop.f32.mrb[49].mxu1 }
 0x9c0   :  { %v2124_v57 = vpop.f32.mrb[50].mxu0  ;;  %v2197_v61 = vpop.f32.mrb[50].mxu1 }
 0x9c1   :  { %v5461_v3 = vadd.f32 %v2237_v14, %v2124_v57  ;;  %v5463_v21 = vadd.f32 %v2245_v15, %v2197_v61  ;;  %v2126_v24 = vpop.f32.mrb[51].mxu0  ;;  %v2199_v48 = vpop.f32.mrb[51].mxu1 }
 0x9c2   :  { %v5465_v43 = vadd.f32 %v2241_v20, %v2126_v24  ;;  %v5467_v0 = vadd.f32 %v2249_v38, %v2199_v48 }
 0x9c6   :  { %v2130_v53 = vpop.f32.mrb[52].mxu0  ;;  %v2203_v41 = vpop.f32.mrb[52].mxu1 }
 0x9c7   :  { %v5469_v45 = vadd.f32 %v2237_v14, %v2130_v53  ;;  %v5471_v33 = vadd.f32 %v2245_v15, %v2203_v41  ;;  %v2132_v51 = vpop.f32.mrb[53].mxu0  ;;  %v2205_v59 = vpop.f32.mrb[53].mxu1 }
 0x9c8   :  { %v5473_v32 = vadd.f32 %v2241_v20, %v2132_v51  ;;  %v5475_v34 = vadd.f32 %v2249_v38, %v2205_v59  ;;  %v2134_v36 = vpop.f32.mrb[54].mxu0  ;;  %v2207_v35 = vpop.f32.mrb[54].mxu1 }
 0x9c9   :  { %v5477_v29 = vadd.f32 %v2237_v14, %v2134_v36  ;;  %v5479_v31 = vadd.f32 %v2245_v15, %v2207_v35  ;;  %v2136_v26 = vpop.f32.mrb[55].mxu0  ;;  %v2209_v40 = vpop.f32.mrb[55].mxu1 }
 0x9ca   :  { %v5481_v23 = vadd.f32 %v2241_v20, %v2136_v26  ;;  %v5483_v49 = vadd.f32 %v2249_v38, %v2209_v40 }
 0x9ce   :  { %v2140_v27 = vpop.f32.mrb[56].mxu0  ;;  %v2213_v1 = vpop.f32.mrb[56].mxu1 }
 0x9cf   :  { %v5485_v2 = vadd.f32 %v2237_v14, %v2140_v27  ;;  %v5487_v28 = vadd.f32 %v2245_v15, %v2213_v1  ;;  %v2142_v42 = vpop.f32.mrb[57].mxu0  ;;  %v2215_v5 = vpop.f32.mrb[57].mxu1 }
 0x9d0   :  { %v5489_v13 = vadd.f32 %v2241_v20, %v2142_v42  ;;  %v5491_v22 = vadd.f32 %v2249_v38, %v2215_v5  ;;  %v2144_v30 = vpop.f32.mrb[58].mxu0  ;;  %v2217_v11 = vpop.f32.mrb[58].mxu1 }
 0x9d1   :  { %v5493_v17 = vadd.f32 %v2237_v14, %v2144_v30  ;;  %v5495_v16 = vadd.f32 %v2245_v15, %v2217_v11  ;;  %v2146_v19 = vpop.f32.mrb[59].mxu0  ;;  %v2219_v56 = vpop.f32.mrb[59].mxu1 }
 0x9d2   :  { %v5497_v57 = vadd.f32 %v2241_v20, %v2146_v19  ;;  %v5499_v61 = vadd.f32 %v2249_v38, %v2219_v56  ;;  %v2254_v19 = vadd.f32 %v2237_v14, %v5449_v46  ;;  %v2256_v56 = vadd.f32 %v2245_v15, %v5451_v10 }
 0x9d6   :  { %v2150_v24 = vpop.f32.mrb[60].mxu0  ;;  %v2223_v48 = vpop.f32.mrb[60].mxu1 }
 0x9d7   :  { %v5501_v53 = vadd.f32 %v2237_v14, %v2150_v24  ;;  %v5503_v41 = vadd.f32 %v2245_v15, %v2223_v48  ;;  %v2152_v51 = vpop.f32.mrb[61].mxu0  ;;  %v2225_v59 = vpop.f32.mrb[61].mxu1  ;;  %v2255_v24 = vadd.f32 %v2241_v20, %v2122_v18  ;;  %v2257_v48 = vadd.f32 %v2249_v38, %v2195_v47 }
 0x9d8   :  { %v5505_v36 = vadd.f32 %v2241_v20, %v2152_v51  ;;  %v5507_v35 = vadd.f32 %v2249_v38, %v2225_v59  ;;  %v2154_v26 = vpop.f32.mrb[62].mxu0  ;;  %v2227_v40 = vpop.f32.mrb[62].mxu1 }
 0x9d9   :  { %5920 = vst [vmem:[#allocation13_spill] sm:$0xff] %v5501_v53  ;;  %5921 = vst [vmem:[#allocation14_spill] sm:$0xff] %v5503_v41  ;;  %v5509_v27 = vadd.f32 %v2237_v14, %v2154_v26  ;;  %v5511_v1 = vadd.f32 %v2245_v15, %v2227_v40  ;;  %v2156_v42 = vpop.f32.mrb[63].mxu0  ;;  %v2229_v5 = vpop.f32.mrb[63].mxu1 }
 0x9da   :  { %5922 = vst [vmem:[#allocation15_spill] sm:$0xff] %v5505_v36  ;;  %5923 = vst [vmem:[#allocation16_spill] sm:$0xff] %v5507_v35  ;;  %v5513_v30 = vadd.f32 %v2241_v20, %v2156_v42  ;;  %v5515_v11 = vadd.f32 %v2249_v38, %v2229_v5 }
 0x9db   :  { %5924 = vst [vmem:[#allocation17_spill] sm:$0xff] %v5509_v27  ;;  %5925 = vst [vmem:[#allocation12_spill] sm:$0xff] %v5511_v1 }
 0x9dc   :  { %5926 = vst [vmem:[#allocation18_spill] sm:$0xff] %v5513_v30  ;;  %5927 = vst [vmem:[#allocation19_spill] sm:$0xff] %v5515_v11 }
 0x9de   :  { %v2416_v51 = vpop.f32.mrb[64].mxu0  ;;  %v2457_v59 = vpop.f32.mrb[64].mxu1 }
 0x9df   :  { %v2464_v35 = vadd.f32 %v2416_v51, %v2254_v19  ;;  %v2466_v36 = vadd.f32 %v2457_v59, %v2256_v56  ;;  %v2418_v26 = vpop.f32.mrb[65].mxu0  ;;  %v2459_v27 = vpop.f32.mrb[65].mxu1 }
 0x9e0   :  { %v2465_v40 = vadd.f32 %v2418_v26, %v2255_v24  ;;  %v2467_v1 = vadd.f32 %v2459_v27, %v2257_v48  ;;  %v2420_v41 = vpop.f32.mrb[66].mxu0  ;;  %v2461_v53 = vpop.f32.mrb[66].mxu1 }
 0x9e1   :  { %v3907_v42 = vmul.f32 -1.442695, %v2464_v35  ;;  %v2421_v30 = vpop.f32.mrb[67].mxu0  ;;  %v2462_v5 = vpop.f32.mrb[67].mxu1  ;;  %v3909_v46 = vmul.f32 -1.442695, %v2466_v36 }
 0x9e2   :  { %v3908_v11 = vmul.f32 -1.442695, %v2465_v40 }
 0x9e3   :  { %4378 = vpow2.f32 %v3907_v42 }
 0x9e4   :  { %4380 = vpow2.f32 %v3908_v11 }
 0x9e5   :  { %4382 = vtanh.f32 %v2467_v1 }
 0x9e6   :  { %4384 = vpow2.f32 %v3909_v46 }
 0x9ed   :  { %v4379_v10 = vpop.eup %4378 }
 0x9ee   :  { %v2471_v14 = vadd.f32 1.0, %v4379_v10  ;;  %v4381_v15 = vpop.eup %4380 }
 0x9ef   :  { %v2477_v18 = vadd.f32 1.0, %v4381_v15  ;;  %v4383_v47 = vpop.eup %4382 }
 0x9f0   :  { %4386 = vrcp.f32 %v2471_v14  ;;  %v4385_v20 = vpop.eup %4384 }
 0x9f1   :  { %4388 = vrcp.f32 %v2477_v18  ;;  %v2483_v35 = vadd.f32 1.0, %v4385_v20 }
 0x9f3   :  { %4390 = vrcp.f32 %v2483_v35 }
 0x9fa   :  { %v4387_v38 = vpop.eup %4386 }
 0x9fb   :  { %v2488_v41 = vmul.f32 %v4387_v38, %v4383_v47  ;;  %v4389_v53 = vpop.eup %4388 }
 0x9fc   :  { %v2487_v27 = vmul.f32 0.0, %v4389_v53 }
 0x9fd   :  { %v4391_v11 = vpop.eup %4390 }
 0x9fe   :  { %v2489_v30 = vadd.f32 %v2488_v41, %v2487_v27 }
 0xa00   :  { %4392 = vtanh.f32 %v2489_v30 }
 0xa0a   :  { %v4393_v36 = vpop.eup %4392 }
 0xa0b   :  { %v5519_v19 = vmul.f32 %v4393_v36, %v4391_v11 }
 0xa0d   :  { %v2492_v1 = vpack.c.bf16 %v5519_v19, %v5519_v19 }
 0xa0f   :  { %3910 = vmatmul.mubr.msk.bf16.vlgmr.msra.gmra.mrb[68].mxu0 %vm796_vm0, %v2492_v1  ;;  %3911 = vmatmul.mubr.msk.bf16.vlgmr.msra.gmra.mrb[68].mxu1 %vm796_vm0, %v2492_v1 }
 0xa10   :  { %2611 = vmatpush1.bf16.msra.mxu0 %v5360_v25  ;;  %2652 = vmatpush1.bf16.msra.mxu1 %v5364_v58 }
 0xa11   :  { %2612 = vmatprep.subr.bf16.mxu0 %v5362_v50  ;;  %2653 = vmatprep.subr.bf16.mxu1 %v5368_v44 }
 0xa12   :  { %2642 = vmatprep.mubr.bf16.mxu0 %v5908_v55  ;;  %2683 = vmatprep.mubr.bf16.mxu1 %v5908_v55 }
 0xa14   :  { %2613 = vmatpush1.bf16.msra.mxu0 %v5372_v60  ;;  %2654 = vmatpush1.bf16.msra.mxu1 %v5379_v52 }
 0xa15   :  { %2614 = vmatprep.subr.bf16.mxu0 %v5376_v62  ;;  %2655 = vmatprep.subr.bf16.mxu1 %v5386_v54 }
 0xa18   :  { %2615 = vmatpush1.bf16.msra.mxu0 %v5384_v63  ;;  %2656 = vmatpush1.bf16.msra.mxu1 %v5391_v6 }
 0xa19   :  { %2616 = vmatprep.subr.bf16.mxu0 %v5389_v4  ;;  %2657 = vmatprep.subr.bf16.mxu1 %v5397_v7 }
 0xa1c   :  { %2617 = vmatpush1.bf16.msra.mxu0 %v5403_v8  ;;  %2658 = vmatpush1.bf16.msra.mxu1 %v5407_v9 }
 0xa1d   :  { %2724 = vmatprep.subr.bf16.mxu0 %v5344_v39  ;;  %2765 = vmatprep.subr.bf16.mxu1 %v5346_v12 }
 0xae2   :  { %v2530_v56 = vpop.f32.mrb[68].mxu0  ;;  %v2571_v24 = vpop.f32.mrb[68].mxu1 }
 0xae3   :  { %v2578_v48 = vadd.f32 %v2530_v56, %v5461_v3  ;;  %v2580_v51 = vadd.f32 %v2571_v24, %v5463_v21  ;;  %v2532_v59 = vpop.f32.mrb[69].mxu0  ;;  %v2573_v26 = vpop.f32.mrb[69].mxu1 }
 0xae4   :  { %v2579_v40 = vadd.f32 %v2532_v59, %v5465_v43  ;;  %v2581_v42 = vadd.f32 %v2573_v26, %v5467_v0  ;;  %v2534_v5 = vpop.f32.mrb[70].mxu0  ;;  %v2575_v46 = vpop.f32.mrb[70].mxu1 }
 0xae5   :  { %v3912_v10 = vmul.f32 -1.442695, %v2578_v48  ;;  %v2535_v14 = vpop.f32.mrb[71].mxu0  ;;  %v2576_v15 = vpop.f32.mrb[71].mxu1  ;;  %v3914_v47 = vmul.f32 -1.442695, %v2580_v51 }
 0xae6   :  { %v3913_v18 = vmul.f32 -1.442695, %v2579_v40 }
 0xae7   :  { %4394 = vpow2.f32 %v3912_v10 }
 0xae8   :  { %4396 = vpow2.f32 %v3913_v18 }
 0xae9   :  { %4398 = vtanh.f32 %v2581_v42 }
 0xaea   :  { %4400 = vpow2.f32 %v3914_v47 }
 0xaf1   :  { %v4395_v20 = vpop.eup %4394 }
 0xaf2   :  { %v2585_v38 = vadd.f32 1.0, %v4395_v20  ;;  %v4397_v3 = vpop.eup %4396 }
 0xaf3   :  { %v2591_v21 = vadd.f32 1.0, %v4397_v3  ;;  %v4399_v43 = vpop.eup %4398 }
 0xaf4   :  { %4402 = vrcp.f32 %v2585_v38  ;;  %v4401_v41 = vpop.eup %4400 }
 0xaf5   :  { %4404 = vrcp.f32 %v2591_v21  ;;  %v2597_v27 = vadd.f32 1.0, %v4401_v41 }
 0xaf7   :  { %4406 = vrcp.f32 %v2597_v27 }
 0xafe   :  { %v4403_v0 = vpop.eup %4402 }
 0xaff   :  { %v2602_v53 = vmul.f32 %v4403_v0, %v4399_v43  ;;  %v4405_v35 = vpop.eup %4404 }
 0xb00   :  { %v2601_v11 = vmul.f32 %v4405_v35, %v2489_v30 }
 0xb01   :  { %v4407_v1 = vpop.eup %4406 }
 0xb02   :  { %v2603_v36 = vadd.f32 %v2602_v53, %v2601_v11 }
 0xb04   :  { %4408 = vtanh.f32 %v2603_v36 }
 0xb0e   :  { %v4409_v56 = vpop.eup %4408 }
 0xb0f   :  { %v5547_v24 = vmul.f32 %v4409_v56, %v4407_v1 }
 0xb11   :  { %v2606_v48 = vpack.c.bf16 %v5547_v24, %v5547_v24 }
 0xb13   :  { %3915 = vmatmul.mubr.msk.bf16.vlgmr.msra.gmra.mrb[72].mxu0 %vm796_vm0, %v2606_v48  ;;  %3916 = vmatmul.mubr.msk.bf16.vlgmr.msra.gmra.mrb[72].mxu1 %vm796_vm0, %v2606_v48 }
 0xb14   :  { %2725 = vmatpush1.bf16.msra.mxu0 %v5360_v25  ;;  %2766 = vmatpush1.bf16.msra.mxu1 %v5364_v58 }
 0xb15   :  { %2726 = vmatprep.subr.bf16.mxu0 %v5362_v50  ;;  %2767 = vmatprep.subr.bf16.mxu1 %v5368_v44 }
 0xb16   :  { %2756 = vmatprep.mubr.bf16.mxu0 %v5908_v55  ;;  %2797 = vmatprep.mubr.bf16.mxu1 %v5908_v55 }
 0xb18   :  { %2727 = vmatpush1.bf16.msra.mxu0 %v5372_v60  ;;  %2768 = vmatpush1.bf16.msra.mxu1 %v5379_v52 }
 0xb19   :  { %2728 = vmatprep.subr.bf16.mxu0 %v5376_v62  ;;  %2769 = vmatprep.subr.bf16.mxu1 %v5386_v54 }
 0xb1c   :  { %2729 = vmatpush1.bf16.msra.mxu0 %v5384_v63  ;;  %2770 = vmatpush1.bf16.msra.mxu1 %v5391_v6 }
 0xb1d   :  { %2730 = vmatprep.subr.bf16.mxu0 %v5389_v4  ;;  %2771 = vmatprep.subr.bf16.mxu1 %v5397_v7 }
 0xb20   :  { %2731 = vmatpush1.bf16.msra.mxu0 %v5403_v8  ;;  %2772 = vmatpush1.bf16.msra.mxu1 %v5407_v9 }
 0xb21   :  { %2838 = vmatprep.subr.bf16.mxu0 %v5344_v39  ;;  %2879 = vmatprep.subr.bf16.mxu1 %v5346_v12 }
 0xbe6   :  { %v2644_v30 = vpop.f32.mrb[72].mxu0  ;;  %v2685_v51 = vpop.f32.mrb[72].mxu1 }
 0xbe7   :  { %v2692_v59 = vadd.f32 %v2644_v30, %v5469_v45  ;;  %v2694_v26 = vadd.f32 %v2685_v51, %v5471_v33  ;;  %v2646_v40 = vpop.f32.mrb[73].mxu0  ;;  %v2687_v42 = vpop.f32.mrb[73].mxu1 }
 0xbe8   :  { %v2693_v5 = vadd.f32 %v2646_v40, %v5473_v32  ;;  %v2695_v46 = vadd.f32 %v2687_v42, %v5475_v34  ;;  %v2648_v10 = vpop.f32.mrb[74].mxu0  ;;  %v2689_v14 = vpop.f32.mrb[74].mxu1 }
 0xbe9   :  { %v3917_v15 = vmul.f32 -1.442695, %v2692_v59  ;;  %v2649_v18 = vpop.f32.mrb[75].mxu0  ;;  %v2690_v47 = vpop.f32.mrb[75].mxu1  ;;  %v3919_v38 = vmul.f32 -1.442695, %v2694_v26 }
 0xbea   :  { %v3918_v20 = vmul.f32 -1.442695, %v2693_v5 }
 0xbeb   :  { %4410 = vpow2.f32 %v3917_v15 }
 0xbec   :  { %4412 = vpow2.f32 %v3918_v20 }
 0xbed   :  { %4414 = vtanh.f32 %v2695_v46 }
 0xbee   :  { %4416 = vpow2.f32 %v3919_v38 }
 0xbf5   :  { %v4411_v3 = vpop.eup %4410 }
 0xbf6   :  { %v2699_v21 = vadd.f32 1.0, %v4411_v3  ;;  %v4413_v45 = vpop.eup %4412 }
 0xbf7   :  { %v2705_v33 = vadd.f32 1.0, %v4413_v45  ;;  %v4415_v32 = vpop.eup %4414 }
 0xbf8   :  { %4418 = vrcp.f32 %v2699_v21  ;;  %v4417_v43 = vpop.eup %4416 }
 0xbf9   :  { %4420 = vrcp.f32 %v2705_v33  ;;  %v2711_v53 = vadd.f32 1.0, %v4417_v43 }
 0xbfb   :  { %4422 = vrcp.f32 %v2711_v53 }
 0xc02   :  { %v4419_v34 = vpop.eup %4418 }
 0xc03   :  { %v2716_v41 = vmul.f32 %v4419_v34, %v4415_v32  ;;  %v4421_v0 = vpop.eup %4420 }
 0xc04   :  { %v2715_v35 = vmul.f32 %v4421_v0, %v2603_v36 }
 0xc05   :  { %v4423_v11 = vpop.eup %4422 }
 0xc06   :  { %v2717_v27 = vadd.f32 %v2716_v41, %v2715_v35 }
 0xc08   :  { %4424 = vtanh.f32 %v2717_v27 }
 0xc12   :  { %v4425_v1 = vpop.eup %4424 }
 0xc13   :  { %v5575_v56 = vmul.f32 %v4425_v1, %v4423_v11 }
 0xc15   :  { %v2720_v48 = vpack.c.bf16 %v5575_v56, %v5575_v56 }
 0xc17   :  { %3920 = vmatmul.mubr.msk.bf16.vlgmr.msra.gmra.mrb[76].mxu0 %vm796_vm0, %v2720_v48  ;;  %3921 = vmatmul.mubr.msk.bf16.vlgmr.msra.gmra.mrb[76].mxu1 %vm796_vm0, %v2720_v48 }
 0xc18   :  { %2839 = vmatpush1.bf16.msra.mxu0 %v5360_v25  ;;  %2880 = vmatpush1.bf16.msra.mxu1 %v5364_v58 }
 0xc19   :  { %2840 = vmatprep.subr.bf16.mxu0 %v5362_v50  ;;  %2881 = vmatprep.subr.bf16.mxu1 %v5368_v44 }
 0xc1a   :  { %2870 = vmatprep.mubr.bf16.mxu0 %v5908_v55  ;;  %2911 = vmatprep.mubr.bf16.mxu1 %v5908_v55 }
 0xc1c   :  { %2841 = vmatpush1.bf16.msra.mxu0 %v5372_v60  ;;  %2882 = vmatpush1.bf16.msra.mxu1 %v5379_v52 }
 0xc1d   :  { %2842 = vmatprep.subr.bf16.mxu0 %v5376_v62  ;;  %2883 = vmatprep.subr.bf16.mxu1 %v5386_v54 }
 0xc20   :  { %2843 = vmatpush1.bf16.msra.mxu0 %v5384_v63  ;;  %2884 = vmatpush1.bf16.msra.mxu1 %v5391_v6 }
 0xc21   :  { %2844 = vmatprep.subr.bf16.mxu0 %v5389_v4  ;;  %2885 = vmatprep.subr.bf16.mxu1 %v5397_v7 }
 0xc24   :  { %2845 = vmatpush1.bf16.msra.mxu0 %v5403_v8  ;;  %2886 = vmatpush1.bf16.msra.mxu1 %v5407_v9 }
 0xc25   :  { %2952 = vmatprep.subr.bf16.mxu0 %v5344_v39  ;;  %2993 = vmatprep.subr.bf16.mxu1 %v5346_v12 }
 0xcea   :  { %v2758_v36 = vpop.f32.mrb[76].mxu0  ;;  %v2799_v30 = vpop.f32.mrb[76].mxu1 }
 0xceb   :  { %v2806_v51 = vadd.f32 %v2758_v36, %v5477_v29  ;;  %v2808_v59 = vadd.f32 %v2799_v30, %v5479_v31  ;;  %v2760_v26 = vpop.f32.mrb[77].mxu0  ;;  %v2801_v40 = vpop.f32.mrb[77].mxu1 }
 0xcec   :  { %v2807_v42 = vadd.f32 %v2760_v26, %v5481_v23  ;;  %v2809_v5 = vadd.f32 %v2801_v40, %v5483_v49  ;;  %v2762_v46 = vpop.f32.mrb[78].mxu0  ;;  %v2803_v10 = vpop.f32.mrb[78].mxu1 }
 0xced   :  { %v3922_v14 = vmul.f32 -1.442695, %v2806_v51  ;;  %v2763_v15 = vpop.f32.mrb[79].mxu0  ;;  %v2804_v18 = vpop.f32.mrb[79].mxu1  ;;  %v3924_v20 = vmul.f32 -1.442695, %v2808_v59 }
 0xcee   :  { %v3923_v47 = vmul.f32 -1.442695, %v2807_v42 }
 0xcef   :  { %4426 = vpow2.f32 %v3922_v14 }
 0xcf0   :  { %4428 = vpow2.f32 %v3923_v47 }
 0xcf1   :  { %4430 = vtanh.f32 %v2809_v5 }
 0xcf2   :  { %4432 = vpow2.f32 %v3924_v20 }
 0xcf9   :  { %v4427_v38 = vpop.eup %4426 }
 0xcfa   :  { %v2813_v3 = vadd.f32 1.0, %v4427_v38  ;;  %v4429_v29 = vpop.eup %4428 }
 0xcfb   :  { %v2819_v31 = vadd.f32 1.0, %v4429_v29  ;;  %v4431_v23 = vpop.eup %4430 }
 0xcfc   :  { %4434 = vrcp.f32 %v2813_v3  ;;  %v4433_v21 = vpop.eup %4432 }
 0xcfd   :  { %4436 = vrcp.f32 %v2819_v31  ;;  %v2825_v32 = vadd.f32 1.0, %v4433_v21 }
 0xcff   :  { %4438 = vrcp.f32 %v2825_v32 }
 0xd06   :  { %v4435_v49 = vpop.eup %4434 }
 0xd07   :  { %v2830_v45 = vmul.f32 %v4435_v49, %v4431_v23  ;;  %v4437_v33 = vpop.eup %4436 }
 0xd08   :  { %v2829_v43 = vmul.f32 %v4437_v33, %v2717_v27 }
 0xd09   :  { %v4439_v41 = vpop.eup %4438 }
 0xd0a   :  { %v2831_v34 = vadd.f32 %v2830_v45, %v2829_v43 }
 0xd0c   :  { %4440 = vtanh.f32 %v2831_v34 }
 0xd16   :  { %v4441_v0 = vpop.eup %4440 }
 0xd17   :  { %v5603_v53 = vmul.f32 %v4441_v0, %v4439_v41 }
 0xd19   :  { %v2834_v35 = vpack.c.bf16 %v5603_v53, %v5603_v53 }
 0xd1b   :  { %3925 = vmatmul.mubr.msk.bf16.vlgmr.msra.gmra.mrb[80].mxu0 %vm796_vm0, %v2834_v35  ;;  %3926 = vmatmul.mubr.msk.bf16.vlgmr.msra.gmra.mrb[80].mxu1 %vm796_vm0, %v2834_v35 }
 0xd1c   :  { %2953 = vmatpush1.bf16.msra.mxu0 %v5360_v25  ;;  %2994 = vmatpush1.bf16.msra.mxu1 %v5364_v58 }
 0xd1d   :  { %2954 = vmatprep.subr.bf16.mxu0 %v5362_v50  ;;  %2995 = vmatprep.subr.bf16.mxu1 %v5368_v44 }
 0xd1e   :  { %2984 = vmatprep.mubr.bf16.mxu0 %v5908_v55  ;;  %3025 = vmatprep.mubr.bf16.mxu1 %v5908_v55 }
 0xd20   :  { %2955 = vmatpush1.bf16.msra.mxu0 %v5372_v60  ;;  %2996 = vmatpush1.bf16.msra.mxu1 %v5379_v52 }
 0xd21   :  { %2956 = vmatprep.subr.bf16.mxu0 %v5376_v62  ;;  %2997 = vmatprep.subr.bf16.mxu1 %v5386_v54 }
 0xd24   :  { %2957 = vmatpush1.bf16.msra.mxu0 %v5384_v63  ;;  %2998 = vmatpush1.bf16.msra.mxu1 %v5391_v6 }
 0xd25   :  { %2958 = vmatprep.subr.bf16.mxu0 %v5389_v4  ;;  %2999 = vmatprep.subr.bf16.mxu1 %v5397_v7 }
 0xd28   :  { %2959 = vmatpush1.bf16.msra.mxu0 %v5403_v8  ;;  %3000 = vmatpush1.bf16.msra.mxu1 %v5407_v9 }
 0xd29   :  { %3066 = vmatprep.subr.bf16.mxu0 %v5344_v39  ;;  %3107 = vmatprep.subr.bf16.mxu1 %v5346_v12 }
 0xdee   :  { %v2872_v27 = vpop.f32.mrb[80].mxu0  ;;  %v2913_v11 = vpop.f32.mrb[80].mxu1 }
 0xdef   :  { %v2920_v1 = vadd.f32 %v2872_v27, %v5485_v2  ;;  %v2922_v48 = vadd.f32 %v2913_v11, %v5487_v28  ;;  %v2874_v36 = vpop.f32.mrb[81].mxu0  ;;  %v2915_v30 = vpop.f32.mrb[81].mxu1 }
 0xdf0   :  { %v2921_v51 = vadd.f32 %v2874_v36, %v5489_v13  ;;  %v2923_v59 = vadd.f32 %v2915_v30, %v5491_v22  ;;  %v2876_v26 = vpop.f32.mrb[82].mxu0  ;;  %v2917_v40 = vpop.f32.mrb[82].mxu1 }
 0xdf1   :  { %v3927_v42 = vmul.f32 -1.442695, %v2920_v1  ;;  %v2877_v5 = vpop.f32.mrb[83].mxu0  ;;  %v2918_v46 = vpop.f32.mrb[83].mxu1  ;;  %v3929_v14 = vmul.f32 -1.442695, %v2922_v48 }
 0xdf2   :  { %v3928_v10 = vmul.f32 -1.442695, %v2921_v51 }
 0xdf3   :  { %4442 = vpow2.f32 %v3927_v42 }
 0xdf4   :  { %4444 = vpow2.f32 %v3928_v10 }
 0xdf5   :  { %4446 = vtanh.f32 %v2923_v59 }
 0xdf6   :  { %4448 = vpow2.f32 %v3929_v14 }
 0xdfd   :  { %v4443_v15 = vpop.eup %4442 }
 0xdfe   :  { %v2927_v18 = vadd.f32 1.0, %v4443_v15  ;;  %v4445_v2 = vpop.eup %4444 }
 0xdff   :  { %v2933_v28 = vadd.f32 1.0, %v4445_v2  ;;  %v4447_v13 = vpop.eup %4446 }
 0xe00   :  { %4450 = vrcp.f32 %v2927_v18  ;;  %v4449_v47 = vpop.eup %4448 }
 0xe01   :  { %4452 = vrcp.f32 %v2933_v28  ;;  %v2939_v3 = vadd.f32 1.0, %v4449_v47 }
 0xe03   :  { %4454 = vrcp.f32 %v2939_v3 }
 0xe0a   :  { %v4451_v22 = vpop.eup %4450 }
 0xe0b   :  { %v2944_v20 = vmul.f32 %v4451_v22, %v4447_v13  ;;  %v4453_v38 = vpop.eup %4452 }
 0xe0c   :  { %v2943_v29 = vmul.f32 %v4453_v38, %v2831_v34 }
 0xe0d   :  { %v4455_v23 = vpop.eup %4454 }
 0xe0e   :  { %v5631_v31 = vadd.f32 %v2944_v20, %v2943_v29  ;;  %v5931_v29 = vld [vmem:[#allocation16_spill] sm:$0xff] }
 0xe10   :  { %4456 = vtanh.f32 %v5631_v31 }
 0xe1a   :  { %v4457_v21 = vpop.eup %4456 }
 0xe1b   :  { %v2947_v49 = vmul.f32 %v4457_v21, %v4455_v23 }
 0xe1d   :  { %v5637_v45 = vsel %vm99_vm1, %v2947_v49, %v5603_v53  ;;  %v2948_v33 = vpack.c.bf16 %v2947_v49, %v2947_v49  ;;  %v5642_v32 = vsel %vm99_vm1, %v5603_v53, %v2947_v49 }
 0xe1e   :  { %v3314_v43 = vsel %vm796_vm0, %v5637_v45, 0.0  ;;  %v3311_v34 = vsel %vm796_vm0, %v5642_v32, 0.0 }
 0xe1f   :  { %3315 = vadd.xlane.f32.xlu0 %v3314_v43  ;;  %3312 = vadd.xlane.f32.xlu1 %v3311_v34 }
 0xe20   :  { %3930 = vmatmul.mubr.msk.bf16.vlgmr.msra.gmra.mrb[84].mxu0 %vm796_vm0, %v2948_v33  ;;  %3931 = vmatmul.mubr.msk.bf16.vlgmr.msra.gmra.mrb[84].mxu1 %vm796_vm0, %v2948_v33 }
 0xe21   :  { %3067 = vmatpush1.bf16.msra.mxu0 %v5360_v25  ;;  %3108 = vmatpush1.bf16.msra.mxu1 %v5364_v58 }
 0xe22   :  { %3068 = vmatprep.subr.bf16.mxu0 %v5362_v50  ;;  %3109 = vmatprep.subr.bf16.mxu1 %v5368_v44 }
 0xe23   :  { %3098 = vmatprep.mubr.bf16.mxu0 %v5908_v55  ;;  %3139 = vmatprep.mubr.bf16.mxu1 %v5908_v55 }
 0xe25   :  { %3069 = vmatpush1.bf16.msra.mxu0 %v5372_v60  ;;  %3110 = vmatpush1.bf16.msra.mxu1 %v5379_v52 }
 0xe26   :  { %3070 = vmatprep.subr.bf16.mxu0 %v5376_v62  ;;  %3111 = vmatprep.subr.bf16.mxu1 %v5386_v54 }
 0xe29   :  { %3071 = vmatpush1.bf16.msra.mxu0 %v5384_v63  ;;  %3112 = vmatpush1.bf16.msra.mxu1 %v5391_v6 }
 0xe2a   :  { %3072 = vmatprep.subr.bf16.mxu0 %v5389_v4  ;;  %3113 = vmatprep.subr.bf16.mxu1 %v5397_v7 }
 0xe2d   :  { %3073 = vmatpush1.bf16.msra.mxu0 %v5403_v8  ;;  %3114 = vmatpush1.bf16.msra.mxu1 %v5407_v9 }
 0xe2e   :  { %3180 = vmatprep.subr.bf16.mxu0 %v5344_v39  ;;  %3221 = vmatprep.subr.bf16.mxu1 %v5346_v12 }
 0xef3   :  { %v2986_v41 = vpop.f32.mrb[84].mxu0  ;;  %v3027_v0 = vpop.f32.mrb[84].mxu1 }
 0xef4   :  { %v3034_v53 = vadd.f32 %v2986_v41, %v5493_v17  ;;  %v3036_v35 = vadd.f32 %v3027_v0, %v5495_v16  ;;  %v2988_v27 = vpop.f32.mrb[85].mxu0  ;;  %v3029_v11 = vpop.f32.mrb[85].mxu1 }
 0xef5   :  { %v3035_v1 = vadd.f32 %v2988_v27, %v5497_v57  ;;  %v3037_v48 = vadd.f32 %v3029_v11, %v5499_v61  ;;  %v2990_v36 = vpop.f32.mrb[86].mxu0  ;;  %v3031_v30 = vpop.f32.mrb[86].mxu1 }
 0xef6   :  { %v3932_v51 = vmul.f32 -1.442695, %v3034_v53  ;;  %v2991_v59 = vpop.f32.mrb[87].mxu0  ;;  %v3032_v26 = vpop.f32.mrb[87].mxu1  ;;  %v3934_v12 = vmul.f32 -1.442695, %v3036_v35 }
 0xef7   :  { %v3933_v39 = vmul.f32 -1.442695, %v3035_v1 }
 0xef8   :  { %4458 = vpow2.f32 %v3932_v51 }
 0xef9   :  { %4460 = vpow2.f32 %v3933_v39 }
 0xefa   :  { %4462 = vtanh.f32 %v3037_v48 }
 0xefb   :  { %4464 = vpow2.f32 %v3934_v12  ;;  %v5932_v12 = vld [vmem:[#allocation17_spill] sm:$0xff] }
 0xf02   :  { %v4459_v40 = vpop.eup %4458 }
 0xf03   :  { %v3041_v42 = vadd.f32 1.0, %v4459_v40  ;;  %v4461_v17 = vpop.eup %4460 }
 0xf04   :  { %v3047_v16 = vadd.f32 1.0, %v4461_v17  ;;  %v4463_v57 = vpop.eup %4462 }
 0xf05   :  { %4466 = vrcp.f32 %v3041_v42  ;;  %v4465_v5 = vpop.eup %4464 }
 0xf06   :  { %4468 = vrcp.f32 %v3047_v16  ;;  %v3053_v14 = vadd.f32 1.0, %v4465_v5  ;;  %v5933_v16 = vld [vmem:[#allocation12_spill] sm:$0xff]  ;;  %v5934_v5 = vld [vmem:[#allocation18_spill] sm:$0xff] }
 0xf08   :  { %4470 = vrcp.f32 %v3053_v14 }
 0xf0f   :  { %v4467_v61 = vpop.eup %4466 }
 0xf10   :  { %v3058_v46 = vmul.f32 %v4467_v61, %v4463_v57  ;;  %v4469_v10 = vpop.eup %4468 }
 0xf11   :  { %v3057_v15 = vmul.f32 %v4469_v10, %v5631_v31 }
 0xf12   :  { %v4471_v2 = vpop.eup %4470 }
 0xf13   :  { %v3059_v18 = vadd.f32 %v3058_v46, %v3057_v15  ;;  %v5935_v15 = vld [vmem:[#allocation19_spill] sm:$0xff] }
 0xf15   :  { %4472 = vtanh.f32 %v3059_v18 }
 0xf1f   :  { %v4473_v28 = vpop.eup %4472 }
 0xf20   :  { %v3061_v13 = vmul.f32 %v4473_v28, %v4471_v2 }
 0xf22   :  { %v5676_v47 = vsel %vm99_vm1, %v5575_v56, %v3061_v13  ;;  %v3062_v22 = vpack.c.bf16 %v3061_v13, %v3061_v13  ;;  %v5684_v38 = vsel %vm99_vm1, %v3061_v13, %v5575_v56 }
 0xf23   :  { %v3308_v20 = vsel %vm796_vm0, %v5676_v47, 0.0  ;;  %v3317_v3 = vsel %vm796_vm0, %v5684_v38, 0.0 }
 0xf24   :  { %3309 = vadd.xlane.f32.xlu1 %v3308_v20  ;;  %3935 = vmatmul.mubr.msk.bf16.vlgmr.msra.gmra.mrb[88].mxu0 %vm796_vm0, %v3062_v22 }
 0xf25   :  { %3936 = vmatmul.mubr.msk.bf16.vlgmr.msra.gmra.mrb[88].mxu1 %vm796_vm0, %v3062_v22  ;;  %3181 = vmatpush1.bf16.msra.mxu0 %v5360_v25  ;;  %v5928_v25 = vld [vmem:[#allocation13_spill] sm:$0xff] }
 0xf26   :  { %3222 = vmatpush1.bf16.msra.mxu1 %v5364_v58  ;;  %3182 = vmatprep.subr.bf16.mxu0 %v5362_v50 }
 0xf27   :  { %3223 = vmatprep.subr.bf16.mxu1 %v5368_v44  ;;  %3212 = vmatprep.mubr.bf16.mxu0 %v5908_v55 }
 0xf28   :  { %3318 = vadd.xlane.f32.xlu1 %v3317_v3  ;;  %3253 = vmatprep.mubr.bf16.mxu1 %v5908_v55 }
 0xf29   :  { %3183 = vmatpush1.bf16.msra.mxu0 %v5372_v60  ;;  %v5929_v60 = vld [vmem:[#allocation14_spill] sm:$0xff] }
 0xf2a   :  { %3224 = vmatpush1.bf16.msra.mxu1 %v5379_v52  ;;  %3184 = vmatprep.subr.bf16.mxu0 %v5376_v62  ;;  %v5930_v52 = vld [vmem:[#allocation15_spill] sm:$0xff] }
 0xf2b   :  { %3225 = vmatprep.subr.bf16.mxu1 %v5386_v54 }
 0xf2d   :  { %3185 = vmatpush1.bf16.msra.mxu0 %v5384_v63 }
 0xf2e   :  { %3226 = vmatpush1.bf16.msra.mxu1 %v5391_v6  ;;  %3186 = vmatprep.subr.bf16.mxu0 %v5389_v4 }
 0xf2f   :  { %3227 = vmatprep.subr.bf16.mxu1 %v5397_v7 }
 0xf31   :  { %3187 = vmatpush1.bf16.msra.mxu0 %v5403_v8 }
 0xf32   :  { %3228 = vmatpush1.bf16.msra.mxu1 %v5407_v9 }
 0xff7   :  { %v3100_v55 = vpop.f32.mrb[88].mxu0 }
 0xff8   :  { %v3148_v50 = vadd.f32 %v3100_v55, %v5928_v25  ;;  %v3141_v58 = vpop.f32.mrb[88].mxu1  ;;  %v3102_v44 = vpop.f32.mrb[89].mxu0 }
 0xff9   :  { %v3150_v62 = vadd.f32 %v3141_v58, %v5929_v60  ;;  %v3149_v54 = vadd.f32 %v3102_v44, %v5930_v52  ;;  %v3143_v63 = vpop.f32.mrb[89].mxu1  ;;  %v3104_v56 = vpop.f32.mrb[90].mxu0 }
 0xffa   :  { %v3937_v6 = vmul.f32 -1.442695, %v3148_v50  ;;  %v3151_v4 = vadd.f32 %v3143_v63, %v5931_v29  ;;  %v3145_v31 = vpop.f32.mrb[90].mxu1  ;;  %v3105_v7 = vpop.f32.mrb[91].mxu0 }
 0xffb   :  { %v3938_v23 = vmul.f32 -1.442695, %v3149_v54  ;;  %v3146_v8 = vpop.f32.mrb[91].mxu1  ;;  %v3939_v9 = vmul.f32 -1.442695, %v3150_v62  ;;  %v3313_v29 = vpop.xlane.xlu1 %3312 }
 0xffc   :  { %4474 = vpow2.f32 %v3937_v6  ;;  %v3316_v6 = vpop.xlane.xlu0 %3315  ;;  %v3330_v8 = vmul.f32 0.015625, %v3313_v29 }
 0xffd   :  { %4476 = vpow2.f32 %v3938_v23 }
 0xffe   :  { %4478 = vpow2.f32 %v3939_v9 }
 0xfff   :  { %4480 = vtanh.f32 %v3151_v4  ;;  %v3310_v31 = vpop.xlane.xlu1 %3309 }
0x1000   :  { %v3329_v9 = vmul.f32 0.015625, %v3310_v31 }
0x1006   :  { %v4475_v21 = vpop.eup %4474 }
0x1007   :  { %v3155_v49 = vadd.f32 1.0, %v4475_v21  ;;  %v4477_v33 = vpop.eup %4476 }
0x1008   :  { %v3161_v43 = vadd.f32 1.0, %v4477_v33  ;;  %v4479_v34 = vpop.eup %4478  ;;  %v3319_v33 = vpop.xlane.xlu1 %3318 }
0x1009   :  { %4482 = vrcp.f32 %v3155_v49  ;;  %v4481_v41 = vpop.eup %4480  ;;  %v3167_v27 = vadd.f32 1.0, %v4479_v34  ;;  %v3331_v34 = vmul.f32 0.015625, %v3316_v6 }
0x100a   :  { %4484 = vrcp.f32 %v3161_v43 }
0x100b   :  { %4486 = vrcp.f32 %v3167_v27  ;;  %v3332_v27 = vmul.f32 0.015625, %v3319_v33 }
0x1013   :  { %v4483_v0 = vpop.eup %4482 }
0x1014   :  { %v3172_v53 = vmul.f32 %v4483_v0, %v4481_v41  ;;  %v4485_v35 = vpop.eup %4484  ;;  %v5727_v41 = vsub.f32 %v5642_v32, %v3330_v8  ;;  %v5730_v0 = vsub.f32 %v5676_v47, %v3329_v9  ;;  %v3947_v9 = vld [vmem:[%s5888_s8 + $0x2] ss:$0 sm:$0xff] }
0x1015   :  { %v3171_v11 = vmul.f32 %v4485_v35, %v3059_v18  ;;  %v4487_v48 = vpop.eup %4486 }
0x1017   :  { %v3173_v1 = vadd.f32 %v3172_v53, %v3171_v11 }
0x1019   :  { %4488 = vtanh.f32 %v3173_v1 }
0x1023   :  { %v4489_v36 = vpop.eup %4488 }
0x1024   :  { %v5709_v30 = vmul.f32 %v4489_v36, %v4487_v48  ;;  %v5747_v48 = vsub.f32 %v5637_v45, %v3331_v34  ;;  %v5752_v36 = vsub.f32 %v5684_v38, %v3332_v27 }
0x1026   :  { %v3291_v51 = vsel %vm99_vm1, %v5547_v24, %v5709_v30  ;;  %v3176_v59 = vpack.c.bf16 %v5709_v30, %v5709_v30  ;;  %v3296_v47 = vsel %vm99_vm1, %v5709_v30, %v5547_v24  ;;  %v3348_v30 = vmul.f32 %v5752_v36, %v5752_v36 }
0x1027   :  { %v3305_v26 = vsel %vm796_vm0, %v3291_v51, 0.0  ;;  %v3347_v38 = vmul.f32 %v5747_v48, %v5747_v48 }
0x1028   :  { %3306 = vadd.xlane.f32.xlu0 %v3305_v26  ;;  %3940 = vmatmul.mubr.msk.bf16.vlgmr.msra.gmra.mrb[92].mxu0 %vm796_vm0, %v3176_v59  ;;  %v3345_v26 = vmul.f32 %v5730_v0, %v5730_v0 }
0x1029   :  { %3941 = vmatmul.mubr.msk.bf16.vlgmr.msra.gmra.mrb[92].mxu1 %vm796_vm0, %v3176_v59  ;;  %v3320_v59 = vsel %vm796_vm0, %v3296_v47, 0.0 }
0x102a   :  { %v3357_v45 = vsel %vm796_vm0, %v3345_v26, 0.0 }
0x10b5   :  { %v3307_v4 = vpop.xlane.xlu0 %3306 }
0x10b6   :  { %v3328_v7 = vmul.f32 0.015625, %v3307_v4  ;;  %v3945_v4 = vld [vmem:[%s5888_s8] ss:$0 sm:$0xff] }
0x10b8   :  { %v5724_v49 = vsub.f32 %v3291_v51, %v3328_v7  ;;  %v3946_v7 = vld [vmem:[%s5888_s8 + $0x1] ss:$0 sm:$0xff] }
0x10ba   :  { %v3344_v32 = vmul.f32 %v5724_v49, %v5724_v49 }
0x10bc   :  { %v3354_v51 = vsel %vm796_vm0, %v3344_v32, 0.0 }
0x10fb   :  { %v3214_v39 = vpop.f32.mrb[92].mxu0 }
0x10fc   :  { %v3262_v40 = vadd.f32 %v3214_v39, %v5932_v12  ;;  %v3255_v42 = vpop.f32.mrb[92].mxu1  ;;  %v3216_v17 = vpop.f32.mrb[93].mxu0  ;;  %v3366_v39 = vsel %vm796_vm0, %v3348_v30, 0.0  ;;  %v3363_v12 = vsel %vm796_vm0, %v3347_v38, 0.0 }
0x10fd   :  { %v3264_v57 = vadd.f32 %v3255_v42, %v5933_v16  ;;  %v3263_v61 = vadd.f32 %v3216_v17, %v5934_v5  ;;  %v3257_v46 = vpop.f32.mrb[93].mxu1  ;;  %v3218_v10 = vpop.f32.mrb[94].mxu0 }
0x10fe   :  { %v3942_v14 = vmul.f32 -1.442695, %v3262_v40  ;;  %v3265_v18 = vadd.f32 %v3257_v46, %v5935_v15  ;;  %v3259_v2 = vpop.f32.mrb[94].mxu1  ;;  %v3219_v28 = vpop.f32.mrb[95].mxu0 }
0x10ff   :  { %v3943_v13 = vmul.f32 -1.442695, %v3263_v61  ;;  %v3260_v22 = vpop.f32.mrb[95].mxu1  ;;  %v3944_v20 = vmul.f32 -1.442695, %v3264_v57 }
0x1100   :  { %4490 = vpow2.f32 %v3942_v14 }
0x1101   :  { %4492 = vpow2.f32 %v3943_v13 }
0x1102   :  { %4494 = vpow2.f32 %v3944_v20 }
0x1103   :  { %4496 = vtanh.f32 %v3265_v18 }
0x110a   :  { %v4491_v3 = vpop.eup %4490 }
0x110b   :  { %v3269_v55 = vadd.f32 1.0, %v4491_v3  ;;  %v4493_v25 = vpop.eup %4492 }
0x110c   :  { %v3275_v50 = vadd.f32 1.0, %v4493_v25  ;;  %v4495_v58 = vpop.eup %4494 }
0x110d   :  { %4498 = vrcp.f32 %v3269_v55  ;;  %v4497_v44 = vpop.eup %4496  ;;  %v3281_v54 = vadd.f32 1.0, %v4495_v58 }
0x110e   :  { %4500 = vrcp.f32 %v3275_v50 }
0x110f   :  { %4502 = vrcp.f32 %v3281_v54 }
0x1117   :  { %v4499_v60 = vpop.eup %4498 }
0x1118   :  { %v3286_v62 = vmul.f32 %v4499_v60, %v4497_v44  ;;  %v4501_v52 = vpop.eup %4500 }
0x1119   :  { %v3285_v63 = vmul.f32 %v4501_v52, %v3173_v1  ;;  %v4503_v23 = vpop.eup %4502 }
0x111b   :  { %v3287_v56 = vadd.f32 %v3286_v62, %v3285_v63 }
0x111d   :  { %4504 = vtanh.f32 %v3287_v56 }
0x1127   :  { %v4505_v21 = vpop.eup %4504 }
0x1128   :  { %v3289_v43 = vmul.f32 %v4505_v21, %v4503_v23 }
0x112a   :  { %v3297_v53 = vsel %vm99_vm1, %v3289_v43, %v5519_v19  ;;  %v3290_v35 = vsel %vm99_vm1, %v5519_v19, %v3289_v43  ;;  %v3346_v19 = vmul.f32 %v5727_v41, %v5727_v41 }
0x112b   :  { %v3323_v11 = vsel %vm796_vm0, %v3297_v53, 0.0  ;;  %v3302_v1 = vsel %vm796_vm0, %v3290_v35, 0.0 }
0x112c   :  { %3324 = vadd.xlane.f32.xlu1 %v3323_v11  ;;  %3303 = vadd.xlane.f32.xlu0 %v3302_v1  ;;  %v3360_v24 = vsel %vm796_vm0, %v3346_v19, 0.0 }
0x1130   :  { %3355 = vadd.xlane.f32.xlu1 %v3354_v51  ;;  %3321 = vadd.xlane.f32.xlu0 %v3320_v59 }
0x1134   :  { %3361 = vadd.xlane.f32.xlu1 %v3360_v24  ;;  %3358 = vadd.xlane.f32.xlu0 %v3357_v45 }
0x1138   :  { %3367 = vadd.xlane.f32.xlu1 %v3366_v39  ;;  %3364 = vadd.xlane.f32.xlu0 %v3363_v12 }
0x11b9   :  { %v3325_v40 = vpop.xlane.xlu1 %3324  ;;  %v3304_v42 = vpop.xlane.xlu0 %3303 }
0x11ba   :  { %v3334_v17 = vmul.f32 0.015625, %v3325_v40  ;;  %v3327_v16 = vmul.f32 0.015625, %v3304_v42 }
0x11bc   :  { %v5766_v57 = vsub.f32 %v3297_v53, %v3334_v17  ;;  %v5768_v5 = vsub.f32 %v3290_v35, %v3327_v16 }
0x11bd   :  { %v3356_v61 = vpop.xlane.xlu1 %3355  ;;  %v3322_v46 = vpop.xlane.xlu0 %3321 }
0x11be   :  { %v3376_v10 = vmul.f32 0.015625, %v3356_v61  ;;  %v3333_v14 = vmul.f32 0.015625, %v3322_v46  ;;  %v3350_v15 = vmul.f32 %v5766_v57, %v5766_v57  ;;  %v3343_v18 = vmul.f32 %v5768_v5, %v5768_v5 }
0x11c0   :  { %v3384_v2 = vadd.f32 1e-05, %v3376_v10  ;;  %v5774_v28 = vsub.f32 %v3296_v47, %v3333_v14  ;;  %v3372_v13 = vsel %vm796_vm0, %v3350_v15, 0.0  ;;  %v3351_v22 = vsel %vm796_vm0, %v3343_v18, 0.0 }
0x11c1   :  { %3373 = vadd.xlane.f32.xlu1 %v3372_v13  ;;  %v3362_v20 = vpop.xlane.xlu1 %3361  ;;  %3352 = vadd.xlane.f32.xlu0 %v3351_v22  ;;  %v3359_v3 = vpop.xlane.xlu0 %3358 }
0x11c2   :  { %4506 = vrsqrt.f32 %v3384_v2  ;;  %v3378_v55 = vmul.f32 0.015625, %v3362_v20  ;;  %v3377_v25 = vmul.f32 0.015625, %v3359_v3  ;;  %v3349_v50 = vmul.f32 %v5774_v28, %v5774_v28 }
0x11c4   :  { %v3386_v58 = vadd.f32 1e-05, %v3378_v55  ;;  %v3385_v44 = vadd.f32 1e-05, %v3377_v25  ;;  %v3369_v60 = vsel %vm796_vm0, %v3349_v50, 0.0 }
0x11c5   :  { %v3368_v62 = vpop.xlane.xlu1 %3367  ;;  %3370 = vadd.xlane.f32.xlu0 %v3369_v60  ;;  %v3365_v52 = vpop.xlane.xlu0 %3364 }
0x11c6   :  { %4508 = vrsqrt.f32 %v3386_v58  ;;  %v3380_v54 = vmul.f32 0.015625, %v3368_v62  ;;  %v3379_v63 = vmul.f32 0.015625, %v3365_v52 }
0x11c7   :  { %4510 = vrsqrt.f32 %v3385_v44 }
0x11c8   :  { %v3388_v56 = vadd.f32 1e-05, %v3380_v54  ;;  %v3387_v6 = vadd.f32 1e-05, %v3379_v63 }
0x11ca   :  { %4512 = vrsqrt.f32 %v3388_v56  ;;  %v4658_v56 = vmov 0.0  }
0x11cb   :  { %4514 = vrsqrt.f32 %v3387_v6  ;;  %3971 = vmatprep.subr.bf16.mxu0 %v4658_v56  ;;  %3979 = vmatprep.mubr.msk.bf16.mxu0 %vm4659_vm2, %v4658_v56  ;;  %v4243_v6 = vld [vmem:[%s5889_s9 + $0x8] sm:$0xff]  }
0x11cc   :  { %v4507_v29 = vpop.eup %4506  ;;  %3983 = vmatprep.subr.bf16.mxu1 %v4658_v56  ;;  %3991 = vmatprep.mubr.msk.bf16.mxu1 %vm4659_vm2, %v4658_v56 }
0x11cd   :  { %v3400_v31 = vmul.f32 %v4507_v29, %v5724_v49  ;;  %v4244_v29 = vld [vmem:[%s5889_s9 + $0x10] sm:$0xff]  }
0x11cf   :  { %v3412_v23 = vmul.f32 %v3945_v4, %v3400_v31  ;;  %v4246_v31 = vld [vmem:[#allocation7] sm:$0xff]  }
0x11d0   :  { %v4509_v8 = vpop.eup %4508  ;;  %3984 = vmatpush3.bf16.msra.mxu1 %v4246_v31 }
0x11d1   :  { %v4511_v21 = vpop.eup %4510  ;;  %v5791_v33 = vadd.f32 %v3946_v7, %v3412_v23  ;;  %v3402_v43 = vmul.f32 %v4509_v8, %v5727_v41  ;;  %3985 = vmatprep.subr.bf16.mxu1 %v4658_v56 }
0x11d2   :  { %v3401_v34 = vmul.f32 %v4511_v21, %v5730_v0 }
0x11d3   :  { %v3436_v53 = vmul.f32 %v3947_v9, %v5791_v33  ;;  %v3414_v49 = vmul.f32 %v3945_v4, %v3402_v43 }
0x11d4   :  { %v4513_v35 = vpop.eup %4512  ;;  %v3413_v27 = vmul.f32 %v3945_v4, %v3401_v34 }
0x11d5   :  { %v4515_v11 = vpop.eup %4514  ;;  %v3446_v1 = vsel %vm796_vm0, %v3436_v53, 0.0  ;;  %v5797_v32 = vadd.f32 %v3946_v7, %v3414_v49  ;;  %v3404_v47 = vmul.f32 %v4513_v35, %v5752_v36 }
0x11d6   :  { %3447 = vadd.xlane.f32.xlu1 %v3446_v1  ;;  %v5800_v19 = vadd.f32 %v3946_v7, %v3413_v27  ;;  %v3403_v51 = vmul.f32 %v4515_v11, %v5747_v48 }
0x11d7   :  { %v3438_v41 = vmul.f32 %v3947_v9, %v5797_v32  ;;  %v3416_v0 = vmul.f32 %v3945_v4, %v3404_v47 }
0x11d8   :  { %v3437_v59 = vmul.f32 %v3947_v9, %v5800_v19  ;;  %v3415_v26 = vmul.f32 %v3945_v4, %v3403_v51 }
0x11d9   :  { %v3452_v24 = vsel %vm796_vm0, %v3438_v41, 0.0  ;;  %v5806_v45 = vadd.f32 %v3946_v7, %v3416_v0 }
0x11da   :  { %3453 = vadd.xlane.f32.xlu1 %v3452_v24  ;;  %v3449_v30 = vsel %vm796_vm0, %v3437_v59, 0.0  ;;  %v5809_v38 = vadd.f32 %v3946_v7, %v3415_v26 }
0x11db   :  { %3450 = vadd.xlane.f32.xlu0 %v3449_v30  ;;  %v3440_v36 = vmul.f32 %v3947_v9, %v5806_v45 }
0x11dc   :  { %v3439_v48 = vmul.f32 %v3947_v9, %v5809_v38 }
0x11dd   :  { %v3458_v39 = vsel %vm796_vm0, %v3440_v36, 0.0 }
0x11de   :  { %3459 = vadd.xlane.f32.xlu1 %v3458_v39  ;;  %v3455_v12 = vsel %vm796_vm0, %v3439_v48, 0.0 }
0x11df   :  { %3456 = vadd.xlane.f32.xlu0 %v3455_v12 }
0x124e   :  { %v3374_v40 = vpop.xlane.xlu1 %3373  ;;  %v3353_v42 = vpop.xlane.xlu0 %3352 }
0x124f   :  { %v3382_v17 = vmul.f32 0.015625, %v3374_v40  ;;  %v3375_v16 = vmul.f32 0.015625, %v3353_v42 }
0x1251   :  { %v3390_v61 = vadd.f32 1e-05, %v3382_v17  ;;  %v3383_v46 = vadd.f32 1e-05, %v3375_v16 }
0x1252   :  { %v3371_v10 = vpop.xlane.xlu0 %3370 }
0x1253   :  { %4516 = vrsqrt.f32 %v3390_v61  ;;  %v3381_v14 = vmul.f32 0.015625, %v3371_v10 }
0x1254   :  { %4518 = vrsqrt.f32 %v3383_v46 }
0x1255   :  { %v3389_v15 = vadd.f32 1e-05, %v3381_v14 }
0x1257   :  { %4520 = vrsqrt.f32 %v3389_v15 }
0x125d   :  { %v4517_v18 = vpop.eup %4516 }
0x125e   :  { %v4519_v2 = vpop.eup %4518  ;;  %v3406_v13 = vmul.f32 %v4517_v18, %v5766_v57 }
0x125f   :  { %v3399_v22 = vmul.f32 %v4519_v2, %v5768_v5 }
0x1260   :  { %v3418_v20 = vmul.f32 %v3945_v4, %v3406_v13 }
0x1261   :  { %v4521_v3 = vpop.eup %4520  ;;  %v3411_v55 = vmul.f32 %v3945_v4, %v3399_v22 }
0x1262   :  { %v5817_v25 = vadd.f32 %v3946_v7, %v3418_v20  ;;  %v3405_v50 = vmul.f32 %v4521_v3, %v5774_v28  ;;  %v4242_v28 = vld [vmem:[%s5889_s9] sm:$0xff]  }
0x1263   :  { %v5820_v58 = vadd.f32 %v3946_v7, %v3411_v55  ;;  %3972 = vmatpush3.bf16.msra.mxu0 %v4242_v28  ;;  %v3448_v23 = vpop.xlane.xlu1 %3447 }
0x1264   :  { %v3442_v44 = vmul.f32 %v3947_v9, %v5817_v25  ;;  %v3417_v60 = vmul.f32 %v3945_v4, %v3405_v50  ;;  %3973 = vmatprep.subr.bf16.mxu0 %v4658_v56  ;;  %v4245_v4 = vld [vmem:[%s5889_s9 + $0x18] sm:$0xff]  }
0x1265   :  { %v3435_v62 = vmul.f32 %v3947_v9, %v5820_v58 }
0x1266   :  { %v3464_v52 = vsel %vm796_vm0, %v3442_v44, 0.0  ;;  %v5825_v54 = vadd.f32 %v3946_v7, %v3417_v60  ;;  %v4247_v7 = vld [vmem:[#allocation7 + $0x8] sm:$0xff]  }
0x1267   :  { %3465 = vadd.xlane.f32.xlu1 %v3464_v52  ;;  %v3443_v57 = vsel %vm796_vm0, %v3435_v62, 0.0  ;;  %3974 = vmatpush3.bf16.msra.mxu0 %v4243_v6 }
0x1268   :  { %3444 = vadd.xlane.f32.xlu0 %v3443_v57  ;;  %v3441_v5 = vmul.f32 %v3947_v9, %v5825_v54  ;;  %3975 = vmatprep.subr.bf16.mxu0 %v4658_v56  ;;  %v3451_v8 = vpop.xlane.xlu0 %3450  ;;  %v3454_v9 = vpop.xlane.xlu1 %3453 }
0x1269   :  { %3986 = vmatpush3.bf16.msra.mxu1 %v4247_v7 }
0x126a   :  { %v3461_v63 = vsel %vm796_vm0, %v3441_v5, 0.0  ;;  %3987 = vmatprep.subr.bf16.mxu1 %v4658_v56 }
0x126b   :  { %3976 = vmatpush3.bf16.msra.mxu0 %v4244_v29 }
0x126c   :  { %3462 = vadd.xlane.f32.xlu0 %v3461_v63  ;;  %3977 = vmatprep.subr.bf16.mxu0 %v4658_v56  ;;  %v3457_v21 = vpop.xlane.xlu0 %3456  ;;  %v3460_v43 = vpop.xlane.xlu1 %3459 }
0x126d   :  { %v3468_v27 = vmax.f32 %v3448_v23, %v3460_v43 }
0x126f   :  { %3978 = vmatpush3.bf16.msra.mxu0 %v4245_v4 }
0x12f4   :  { %v3466_v53 = vpop.xlane.xlu1 %3465 }
0x12f5   :  { %v3445_v34 = vpop.xlane.xlu0 %3444  ;;  %v3470_v11 = vmax.f32 %v3454_v9, %v3466_v53 }
0x12f6   :  { %v3467_v49 = vmax.f32 %v3445_v34, %v3457_v21 }
0x12f8   :  { %v3471_v47 = vmax.f32 %v3467_v49, %v3468_v27 }
0x12f9   :  { %v3463_v35 = vpop.xlane.xlu0 %3462 }
0x12fa   :  { %v3469_v1 = vmax.f32 %v3451_v8, %v3463_v35 }
0x12fc   :  { %v3472_v51 = vmax.f32 %v3469_v1, %v3470_v11 }
0x12fe   :  { %v3473_v41 = vmax.f32 %v3471_v47, %v3472_v51 }
0x1300   :  { %v3474_v0 = vsub.f32 %v3445_v34, %v3473_v41  ;;  %v3475_v59 = vsub.f32 %v3448_v23, %v3473_v41  ;;  %v3476_v26 = vsub.f32 %v3451_v8, %v3473_v41  ;;  %v3477_v24 = vsub.f32 %v3454_v9, %v3473_v41 }
0x1301   :  { %v3478_v48 = vsub.f32 %v3457_v21, %v3473_v41  ;;  %v3479_v12 = vsub.f32 %v3460_v43, %v3473_v41  ;;  %v3480_v42 = vsub.f32 %v3463_v35, %v3473_v41  ;;  %v3481_v16 = vsub.f32 %v3466_v53, %v3473_v41 }
0x1302   :  { %v3482_v30 = vmul.f32 1.442695, %v3474_v0  ;;  %v3484_v36 = vmul.f32 1.442695, %v3475_v59  ;;  %v3486_v39 = vmul.f32 1.442695, %v3476_v26 }
0x1303   :  { %v3488_v40 = vmul.f32 1.442695, %v3477_v24  ;;  %v3490_v17 = vmul.f32 1.442695, %v3478_v48  ;;  %v3492_v61 = vmul.f32 1.442695, %v3479_v12 }
0x1304   :  { %4522 = vpow2.f32 %v3482_v30  ;;  %v3494_v46 = vmul.f32 1.442695, %v3480_v42  ;;  %v3496_v10 = vmul.f32 1.442695, %v3481_v16  ;;  %v4248_v30 = vld [vmem:[#allocation7 + $0x10] sm:$0xff]  }
0x1305   :  { %4524 = vpow2.f32 %v3484_v36  ;;  %3988 = vmatpush3.bf16.msra.mxu1 %v4248_v30  ;;  %v3954_v16 = vld [vmem:[%s5891_s11] ss:$0 sm:$0xff] }
0x1306   :  { %4526 = vpow2.f32 %v3486_v39  ;;  %3989 = vmatprep.subr.bf16.mxu1 %v4658_v56 }
0x1307   :  { %4528 = vpow2.f32 %v3488_v40 }
0x1308   :  { %4530 = vpow2.f32 %v3490_v17 }
0x1309   :  { %4532 = vpow2.f32 %v3492_v61 }
0x130a   :  { %4534 = vpow2.f32 %v3494_v46 }
0x130b   :  { %4536 = vpow2.f32 %v3496_v10 }
0x130e   :  { %v4523_v14 = vpop.eup %4522 }
0x130f   :  { %v4525_v15 = vpop.eup %4524 }
0x1310   :  { %v3498_v18 = vadd.f32 %v4525_v15, %v4523_v14  ;;  %v4527_v2 = vpop.eup %4526 }
0x1311   :  { %v4529_v22 = vpop.eup %4528 }
0x1312   :  { %v3499_v13 = vadd.f32 %v4527_v2, %v3498_v18  ;;  %v4531_v3 = vpop.eup %4530 }
0x1313   :  { %v4533_v50 = vpop.eup %4532 }
0x1314   :  { %v3500_v20 = vadd.f32 %v4529_v22, %v3499_v13  ;;  %v4535_v60 = vpop.eup %4534 }
0x1315   :  { %v4537_v52 = vpop.eup %4536 }
0x1316   :  { %v3501_v55 = vadd.f32 %v4531_v3, %v3500_v20 }
0x1318   :  { %v3502_v44 = vadd.f32 %v4533_v50, %v3501_v55 }
0x131a   :  { %v3503_v62 = vadd.f32 %v4535_v60, %v3502_v44 }
0x131c   :  { %v3504_v57 = vadd.f32 %v4537_v52, %v3503_v62 }
0x131e   :  { %4538 = vrcp.f32 %v3504_v57 }
0x1328   :  { %v4539_v5 = vpop.eup %4538 }
0x1329   :  { %v3506_v63 = vmul.f32 %v4539_v5, %v4523_v14  ;;  %v3507_v28 = vmul.f32 %v4539_v5, %v4525_v15  ;;  %v3508_v6 = vmul.f32 %v4539_v5, %v4527_v2  ;;  %v3509_v29 = vmul.f32 %v4539_v5, %v4529_v22 }
0x132a   :  { %v3510_v4 = vmul.f32 %v4539_v5, %v4531_v3  ;;  %v3511_v8 = vmul.f32 %v4539_v5, %v4533_v50  ;;  %v3512_v53 = vmul.f32 %v4539_v5, %v4535_v60  ;;  %v3513_v11 = vmul.f32 %v4539_v5, %v4537_v52 }
0x132b   :  { %v3514_v31 = vmul.f32 %v3506_v63, %v5820_v58  ;;  %v3515_v7 = vmul.f32 %v3507_v28, %v5791_v33  ;;  %v3516_v23 = vmul.f32 %v3508_v6, %v5800_v19  ;;  %v3517_v9 = vmul.f32 %v3509_v29, %v5797_v32 }
0x132c   :  { %v3518_v49 = vmul.f32 %v3510_v4, %v5809_v38  ;;  %v3519_v58 = vmul.f32 %v3511_v8, %v5806_v45  ;;  %v3520_v1 = vmul.f32 %v3512_v53, %v5825_v54  ;;  %v3521_v51 = vmul.f32 %v3513_v11, %v5817_v25  ;;  %v4249_v54 = vld [vmem:[#allocation7 + $0x18] sm:$0xff]   ;;  %v3948_v25 = vld [vmem:[%s5888_s8 + $0x3] ss:$0 sm:$0xff] }
0x132d   :  { %v3522_v21 = vsel %vm796_vm0, %v3514_v31, 0.0  ;;  %v3523_v43 = vsel %vm796_vm0, %v3515_v7, 0.0  ;;  %v3525_v35 = vsel %vm796_vm0, %v3516_v23, 0.0  ;;  %v3527_v33 = vsel %vm796_vm0, %v3517_v9, 0.0  ;;  %3990 = vmatpush3.bf16.msra.mxu1 %v4249_v54 }
0x132e   :  { %v3524_v34 = vadd.f32 %v3523_v43, %v3522_v21  ;;  %v3529_v32 = vsel %vm796_vm0, %v3518_v49, 0.0  ;;  %v3531_v41 = vsel %vm796_vm0, %v3519_v58, 0.0  ;;  %v3533_v38 = vsel %vm796_vm0, %v3520_v1, 0.0 }
0x132f   :  { %v3535_v26 = vsel %vm796_vm0, %v3521_v51, 0.0 }
0x1330   :  { %v3526_v27 = vadd.f32 %v3525_v35, %v3524_v34 }
0x1332   :  { %v3528_v19 = vadd.f32 %v3527_v33, %v3526_v27 }
0x1334   :  { %v3530_v47 = vadd.f32 %v3529_v32, %v3528_v19 }
0x1336   :  { %v3532_v0 = vadd.f32 %v3531_v41, %v3530_v47 }
0x1338   :  { %v3534_v59 = vadd.f32 %v3533_v38, %v3532_v0 }
0x133a   :  { %v3536_v24 = vadd.f32 %v3535_v26, %v3534_v59 }
0x133c   :  { %v3537_v45 = vpack.c.bf16 %v3536_v24, %v3536_v24 }
0x133e   :  { %3980 = vmatmul.mubr.msk.bf16.vlgmr.msra.gmra.mrb[96].mxu0 %vm796_vm0, %v3537_v45 }
0x1411   :  { %v3611_v36 = vpop.f32.mrb[96].mxu0 }
0x1412   :  { %v3612_v48 = vadd.f32 %v3948_v25, %v3611_v36  ;;  %v3981_v39 = vpop.f32.mrb[97].mxu0 }
0x1413   :  { %v3614_v12 = vpop.f32.mrb[98].mxu0 }
0x1414   :  { %v3617_v40 = vmax.f32 %v3612_v48, 0.0  ;;  %v3982_v42 = vpop.f32.mrb[99].mxu0 }
0x1416   :  { %v3618_v17 = vpack.c.bf16 %v3617_v40, %v3617_v40 }
0x1418   :  { %3992 = vmatmul.mubr.msk.bf16.vlgmr.msra.gmra.mrb[96].mxu1 %vm796_vm0, %v3618_v17 }
0x14eb   :  { %v3695_v61 = vpop.f32.mrb[96].mxu1 }
0x14ec   :  { %v3696_v56 = vadd.f32 %v3954_v16, %v3695_v61  ;;  %v3993_v46 = vpop.f32.mrb[97].mxu1 }
0x14ed   :  { %v3698_v10 = vpop.f32.mrb[98].mxu1 }
0x14ee   :  { %v3960_v14 = vmul.f32 -1.442695, %v3696_v56  ;;  %v3994_v15 = vpop.f32.mrb[99].mxu1 }
0x14f0   :  { %4540 = vpow2.f32 %v3960_v14 }
0x14fa   :  { %v4541_v18 = vpop.eup %4540 }
0x14fb   :  { %v3705_v2 = vadd.f32 1.0, %v4541_v18 }
0x14fd   :  { %4542 = vrcp.f32 %v3705_v2 }
0x1507   :  { %v4543_v13 = vpop.eup %4542 }
0x1508   :  { %v3708_v22 = vsel %vm3701_vm3, %v3696_v56, %v4543_v13 }
0x1509   :  { %3709 = vst [vmem:[%s5892_s12] sm:$0xff] %v3708_v22 }
0x150a   :  { %3714 = vsyncpa [#allocation3], 1 }
0x150b   :  { %3715 = vsyncpa [#allocation5], 1 }
0x150c   :  { %3716 = vsyncpa [#allocation8], 1 }

</bundles_post_ra>
